<compile_context>
chip_gen: v7x
topology: tpu7x:2x2x1
jax: 0.10.0
libtpu: 0.0.40
codegen_flags: <defaults>
</compile_context>

<pallas_src>
import functools

import jax
import jax.numpy as jnp
from jax import lax
from jax.experimental import pallas as pl
from jax.experimental.pallas import tpu as pltpu


def _adjust_condition_kernel(nhead, eps,
                             x_ref, cond_ref, pos_ref,
                             wbig_ref, w2_ref, vecs_ref, b1_ref,
                             out_ref):
    f32, bf16 = jnp.float32, jnp.bfloat16
    BB, C, S = x_ref.shape
    H = nhead
    hd = C // H
    F = w2_ref.shape[1]
    N = BB * H

    # Fused positional-embedding add (query/key/value streams all carry pos,
    # exactly as the PyTorch module adds pos before the transformer call).
    pos = pos_ref[...]                              # (C, S) f32
    x = x_ref[...] + pos[None]                      # (BB, C, S) residual/query
    src = cond_ref[...] + pos[None]                 # (BB, C, S) key/value
    xb = x.astype(bf16)
    srcb = src.astype(bf16)

    # Packed weight slab: [Wq*scale ; Wk ; Wv ; Wo ; W1], all (out, in).
    wq = wbig_ref[0:C, :]                           # (C, C)  bf16 (scale folded)
    wkv = wbig_ref[C:3 * C, :]                      # (2C, C) bf16
    wo = wbig_ref[3 * C:4 * C, :]                   # (C, C)  bf16
    w1 = wbig_ref[4 * C:4 * C + F, :]               # (F, C)  bf16
    w2 = w2_ref[...]                                # (C, F)  bf16

    vecs = vecs_ref[...]                            # (C, 9) f32, column vectors
    bq, bk, bv, bo, b2 = (vecs[:, i:i + 1] for i in range(5))
    g1, be1, g2, be2 = (vecs[:, i:i + 1] for i in range(5, 9))
    b1 = b1_ref[...]                                # (F, 1) f32

    def bmm(w, a):
        # (O, I) @ (BB, I, S) -> (BB, O, S); canonical batched dot, f32 acc.
        wb = jnp.broadcast_to(w[None], (BB,) + w.shape)
        return jnp.einsum('boi,bis->bos', wb, a, preferred_element_type=f32)

    # Full-width, lane-dense projections (contraction over C on the MXU).
    q_cs = bmm(wq, xb) + bq[None]                   # (BB, C, S) f32
    kv_cs = bmm(wkv, srcb)                          # (BB, 2C, S) f32
    k_cs = kv_cs[:, :C, :] + bk[None]
    v_cs = kv_cs[:, C:, :] + bv[None]

    # Per-head split: pure sublane reshape; only q gets a minor-dims swap so
    # both attention dots stay in the canonical batched MXU patterns.
    q_h = jnp.swapaxes(q_cs.reshape(N, hd, S), 1, 2).astype(bf16)   # (N, S, hd)
    k_h = k_cs.reshape(N, hd, S).astype(bf16)                        # (N, hd, S)
    v_h = v_cs.reshape(N, hd, S).astype(bf16)                        # (N, hd, S)

    # Attention, batched over (batch * head); softmax in f32 on the lane axis.
    s_qk = jnp.einsum('nqd,ndk->nqk', q_h, k_h,
                      preferred_element_type=f32)                    # (N, S, S)
    s_qk = s_qk - jnp.max(s_qk, axis=-1, keepdims=True)
    p = jnp.exp(s_qk)
    p = p * pl.reciprocal(jnp.sum(p, axis=-1, keepdims=True), approx=True)
    ctx = jnp.einsum('ndk,nqk->ndq', v_h, p.astype(bf16),
                     preferred_element_type=f32)                     # (N, hd, S)

    # Merge heads back to channel-major and run ONE dense (C, C) out-proj.
    ctx_cs = ctx.reshape(BB, C, S).astype(bf16)
    attn = bmm(wo, ctx_cs) + bo[None]                                # (BB, C, S)

    def layer_norm(y, g, be):
        # One-pass moments over the channel (sublane) axis.
        m1 = jnp.mean(y, axis=1, keepdims=True)
        m2 = jnp.mean(y * y, axis=1, keepdims=True)
        inv = lax.rsqrt(m2 - m1 * m1 + eps)
        return (y - m1) * inv * g[None] + be[None]

    # Residual + LayerNorm1 (post-norm), f32.
    y = layer_norm(x + attn, g1, be1)                                # (BB, C, S)

    # FFN (ReLU), channel-major, lane axis stays S.
    f = bmm(w1, y.astype(bf16)) + b1[None]                           # (BB, F, S)
    f = jnp.maximum(f, 0.0)
    z = bmm(w2, f.astype(bf16)) + b2[None]                           # (BB, C, S)

    # Residual + LayerNorm2, store channel-major (lane axis = S).
    out_ref[...] = layer_norm(y + z, g2, be2).astype(out_ref.dtype)


def init_params(key, channels, nhead, dim_ff):
    c = channels
    hd = c // nhead
    ks = jax.random.split(key, 8)

    def lin(k, dout, din):
        # PyTorch nn.Linear convention: weight is (out, in).
        return (0.02 * jax.random.normal(k, (dout, din), jnp.float32),
                jnp.zeros((dout,), jnp.float32))

    wq, bq = lin(ks[0], c, c)
    wk, bk = lin(ks[1], c, c)
    wv, bv = lin(ks[2], c, c)
    wo, bo = lin(ks[3], c, c)
    w1, b1 = lin(ks[4], dim_ff, c)
    w2, b2 = lin(ks[5], c, dim_ff)
    g1 = jnp.ones((c,), jnp.float32)
    be1 = jnp.zeros((c,), jnp.float32)
    g2 = jnp.ones((c,), jnp.float32)
    be2 = jnp.zeros((c,), jnp.float32)

    scale = 1.0 / float(hd) ** 0.5    # attention scale folded into Wq / bq

    return {
        # nn.Embedding(50, channels // 2) with nn.init.uniform_ -> U[0, 1)
        "row_embed": jax.random.uniform(ks[6], (50, c // 2), jnp.float32),
        "col_embed": jax.random.uniform(ks[7], (50, c // 2), jnp.float32),
        # One bf16 weight slab [Wq*s; Wk; Wv; Wo; W1] (4C+F, C), plus W2.
        "wbig": jnp.concatenate([wq * scale, wk, wv, wo, w1],
                                axis=0).astype(jnp.bfloat16),
        "w2": w2.astype(jnp.bfloat16),                               # (C, F)
        # All (C,)-sized f32 vectors packed as columns of one (C, 9) array.
        "vecs": jnp.stack([bq * scale, bk, bv, bo, b2, g1, be1, g2, be2],
                          axis=1),                                   # (C, 9)
        "b1": b1.reshape(dim_ff, 1),                                 # (F, 1)
    }


def _num_tensorcores():
    """v7x has 2 TensorCores per chip; v5e / v6e have 1."""
    try:
        kind = str(jax.devices()[0].device_kind).lower()
    except Exception:
        return 1
    return 2 if any(t in kind for t in ("v7", "tpu7")) else 1


def adjust_condition_forward(x_f, condition, params, nhead=8, block_batch=None):
    b, c, h, w = x_f.shape
    s = h * w

    # Positional embedding built directly in channel-major (C, S) layout:
    # pos[ch, i*W+j] = col_embed[j, ch] for ch < C/2 else row_embed[i, ch-C/2].
    col = params["col_embed"][:w]                    # (w, c/2)
    row = params["row_embed"][:h]                    # (h, c/2)
    pos_x = jnp.broadcast_to(col.T[:, None, :], (c // 2, h, w)).reshape(c // 2, s)
    pos_y = jnp.broadcast_to(row.T[:, :, None], (c // 2, h, w)).reshape(c // 2, s)
    pos = jnp.concatenate([pos_x, pos_y], axis=0).astype(jnp.float32)   # (C, S)

    # NCHW -> (B, C, S) is a free, contiguous reshape; no transpose / cast ops
    # around the kernel (the bf16 cast and pos add happen inside the kernel).
    xq = x_f.reshape(b, c, s)
    kv = condition.reshape(b, c, s)

    # Gridding: single grid step by default; only split the batch over the two
    # v7x TensorCores when each core still gets >= 256 matmul rows.
    if block_batch is None:
        block_batch = b
        n_tc = _num_tensorcores()
        if n_tc > 1 and b % n_tc == 0 and (b // n_tc) * s >= 256:
            block_batch = b // n_tc
    bb = block_batch
    assert b % bb == 0, (b, bb)

    seq_spec = pl.BlockSpec((bb, c, s), lambda i: (i, 0, 0))

    def _full(arr):
        nd = arr.ndim
        return pl.BlockSpec(arr.shape, lambda i, _nd=nd: (0,) * _nd)

    weights = (params["wbig"], params["w2"], params["vecs"], params["b1"])
    kernel = functools.partial(_adjust_condition_kernel, nhead, 1e-5)

    y = pl.pallas_call(
        kernel,
        out_shape=jax.ShapeDtypeStruct((b, c, s), jnp.float32),
        grid=(b // bb,),
        in_specs=[seq_spec, seq_spec, _full(pos)] + [_full(wt) for wt in weights],
        out_specs=seq_spec,
        compiler_params=pltpu.CompilerParams(dimension_semantics=("parallel",)),
    )(xq, kv, pos, *weights)

    # (B, C, S) -> NCHW: PyTorch's final `.view(b, c, w, h)` unpacks w := H,
    # h := W, so reshape(b, c, h, w) reproduces it exactly (free reshape).
    return y.reshape(b, c, h, w)


if __name__ == "__main__":
    key = jax.random.PRNGKey(0)
    k_x, k_cond, k_par = jax.random.split(key, 3)

    B, C, H, W = 2, 32, 8, 8        # channels=32 -> head_dim=4 with nhead=8
    NHEAD, DIM_FF = 8, 64

    x_f = jax.random.normal(k_x, (B, C, H, W), jnp.float32)
    condition = jax.random.normal(k_cond, (B, C, H, W), jnp.float32)
    params = init_params(k_par, C, NHEAD, DIM_FF)

    out = jax.block_until_ready(
        adjust_condition_forward(x_f, condition, params, nhead=NHEAD))
    assert out.shape == (B, C, H, W), out.shape
    assert bool(jnp.all(jnp.isfinite(out)))
    print("KERNEL_OK")
</pallas_src>

<mosaic_0001>
module attributes {stable_mosaic.version = 11 : i64} {
  func.func @_adjust_condition_kernel(%arg0: i32, %arg1: memref<2x32x64xf32, #tpu.memory_space<vmem>>, %arg2: memref<2x32x64xf32, #tpu.memory_space<vmem>>, %arg3: memref<32x64xf32, #tpu.memory_space<vmem>>, %arg4: memref<192x32xbf16, #tpu.memory_space<vmem>>, %arg5: memref<32x64xbf16, #tpu.memory_space<vmem>>, %arg6: memref<32x9xf32, #tpu.memory_space<vmem>>, %arg7: memref<64x1xf32, #tpu.memory_space<vmem>>, %arg8: memref<2x32x64xf32, #tpu.memory_space<vmem>>) attributes {dimension_semantics = [#tpu.dimension_semantics<parallel>], iteration_bounds = array<i64: 1>, scalar_prefetch = 0 : i64, scratch_operands = 0 : i64, tpu.core_type = #tpu.core_type<tc>, window_params = [{transform_indices = @transform_0, window_bounds = array<i64: 2, 32, 64>}, {transform_indices = @transform_1, window_bounds = array<i64: 2, 32, 64>}, {pipeline_mode = #tpu.pipeline_mode<synchronous>, transform_indices = @transform_2, window_bounds = array<i64: 32, 64>}, {pipeline_mode = #tpu.pipeline_mode<synchronous>, transform_indices = @transform_3, window_bounds = array<i64: 192, 32>}, {pipeline_mode = #tpu.pipeline_mode<synchronous>, transform_indices = @transform_4, window_bounds = array<i64: 32, 64>}, {pipeline_mode = #tpu.pipeline_mode<synchronous>, transform_indices = @transform_5, window_bounds = array<i64: 32, 9>}, {pipeline_mode = #tpu.pipeline_mode<synchronous>, transform_indices = @transform_6, window_bounds = array<i64: 64, 1>}, {transform_indices = @transform_7, window_bounds = array<i64: 2, 32, 64>}]} {
    %c0 = arith.constant 0 : index
    %c0_0 = arith.constant 0 : index
    %0 = vector.load %arg3[%c0, %c0_0] : memref<32x64xf32, #tpu.memory_space<vmem>>, vector<32x64xf32>
    %c0_1 = arith.constant 0 : index
    %c0_2 = arith.constant 0 : index
    %c0_3 = arith.constant 0 : index
    %1 = vector.load %arg1[%c0_1, %c0_2, %c0_3] : memref<2x32x64xf32, #tpu.memory_space<vmem>>, vector<2x32x64xf32>
    %2 = vector.shape_cast %0 : vector<32x64xf32> to vector<1x32x64xf32>
    %3 = vector.broadcast %2 : vector<1x32x64xf32> to vector<2x32x64xf32>
    %4 = arith.addf %1, %3 : vector<2x32x64xf32>
    %c0_4 = arith.constant 0 : index
    %c0_5 = arith.constant 0 : index
    %c0_6 = arith.constant 0 : index
    %5 = vector.load %arg2[%c0_4, %c0_5, %c0_6] : memref<2x32x64xf32, #tpu.memory_space<vmem>>, vector<2x32x64xf32>
    %6 = vector.shape_cast %0 : vector<32x64xf32> to vector<1x32x64xf32>
    %7 = vector.broadcast %6 : vector<1x32x64xf32> to vector<2x32x64xf32>
    %8 = arith.addf %5, %7 : vector<2x32x64xf32>
    %9 = arith.truncf %4 : vector<2x32x64xf32> to vector<2x32x64xbf16>
    %10 = arith.truncf %8 : vector<2x32x64xf32> to vector<2x32x64xbf16>
    %c0_7 = arith.constant 0 : index
    %c0_8 = arith.constant 0 : index
    %11 = vector.load %arg4[%c0_7, %c0_8] : memref<192x32xbf16, #tpu.memory_space<vmem>>, vector<32x32xbf16>
    %c32 = arith.constant 32 : index
    %c0_9 = arith.constant 0 : index
    %12 = vector.load %arg4[%c32, %c0_9] : memref<192x32xbf16, #tpu.memory_space<vmem>>, vector<64x32xbf16>
    %c96 = arith.constant 96 : index
    %c0_10 = arith.constant 0 : index
    %13 = vector.load %arg4[%c96, %c0_10] : memref<192x32xbf16, #tpu.memory_space<vmem>>, vector<32x32xbf16>
    %c128 = arith.constant 128 : index
    %c0_11 = arith.constant 0 : index
    %14 = vector.load %arg4[%c128, %c0_11] : memref<192x32xbf16, #tpu.memory_space<vmem>>, vector<64x32xbf16>
    %c0_12 = arith.constant 0 : index
    %c0_13 = arith.constant 0 : index
    %15 = vector.load %arg5[%c0_12, %c0_13] : memref<32x64xbf16, #tpu.memory_space<vmem>>, vector<32x64xbf16>
    %c0_14 = arith.constant 0 : index
    %c0_15 = arith.constant 0 : index
    %16 = vector.load %arg6[%c0_14, %c0_15] : memref<32x9xf32, #tpu.memory_space<vmem>>, vector<32x9xf32>
    %17 = vector.extract_strided_slice %16 {offsets = [0, 0], sizes = [32, 1], strides = [1, 1]} : vector<32x9xf32> to vector<32x1xf32>
    %18 = vector.extract_strided_slice %16 {offsets = [0, 1], sizes = [32, 1], strides = [1, 1]} : vector<32x9xf32> to vector<32x1xf32>
    %19 = vector.extract_strided_slice %16 {offsets = [0, 2], sizes = [32, 1], strides = [1, 1]} : vector<32x9xf32> to vector<32x1xf32>
    %20 = vector.extract_strided_slice %16 {offsets = [0, 3], sizes = [32, 1], strides = [1, 1]} : vector<32x9xf32> to vector<32x1xf32>
    %21 = vector.extract_strided_slice %16 {offsets = [0, 4], sizes = [32, 1], strides = [1, 1]} : vector<32x9xf32> to vector<32x1xf32>
    %22 = vector.extract_strided_slice %16 {offsets = [0, 5], sizes = [32, 1], strides = [1, 1]} : vector<32x9xf32> to vector<32x1xf32>
    %23 = vector.extract_strided_slice %16 {offsets = [0, 6], sizes = [32, 1], strides = [1, 1]} : vector<32x9xf32> to vector<32x1xf32>
    %24 = vector.extract_strided_slice %16 {offsets = [0, 7], sizes = [32, 1], strides = [1, 1]} : vector<32x9xf32> to vector<32x1xf32>
    %25 = vector.extract_strided_slice %16 {offsets = [0, 8], sizes = [32, 1], strides = [1, 1]} : vector<32x9xf32> to vector<32x1xf32>
    %c0_16 = arith.constant 0 : index
    %c0_17 = arith.constant 0 : index
    %26 = vector.load %arg7[%c0_16, %c0_17] : memref<64x1xf32, #tpu.memory_space<vmem>>, vector<64x1xf32>
    %27 = vector.shape_cast %11 : vector<32x32xbf16> to vector<1x32x32xbf16>
    %28 = vector.shape_cast %27 : vector<1x32x32xbf16> to vector<1x32x32xbf16>
    %29 = vector.broadcast %28 : vector<1x32x32xbf16> to vector<2x32x32xbf16>
    "tpu.trace_start"() <{level = 10 : i32, message = "boi,bis->bos"}> : () -> ()
    %cst = arith.constant dense<0.000000e+00> : vector<2x32x64xf32>
    %30 = tpu.matmul %29, %9, %cst {dimension_numbers = #tpu.dot_dimension_numbers<[2], [1], [1], [2], [0, 0, 0, 1, 1, 2], [0], [0]>} : vector<2x32x32xbf16>, vector<2x32x64xbf16>, vector<2x32x64xf32> -> vector<2x32x64xf32>
    "tpu.trace_stop"() : () -> ()
    %31 = vector.shape_cast %17 : vector<32x1xf32> to vector<1x32x1xf32>
    %32 = vector.broadcast %31 : vector<1x32x1xf32> to vector<2x32x64xf32>
    %33 = arith.addf %30, %32 : vector<2x32x64xf32>
    %34 = vector.shape_cast %12 : vector<64x32xbf16> to vector<1x64x32xbf16>
    %35 = vector.shape_cast %34 : vector<1x64x32xbf16> to vector<1x64x32xbf16>
    %36 = vector.broadcast %35 : vector<1x64x32xbf16> to vector<2x64x32xbf16>
    "tpu.trace_start"() <{level = 10 : i32, message = "boi,bis->bos"}> : () -> ()
    %cst_18 = arith.constant dense<0.000000e+00> : vector<2x64x64xf32>
    %37 = tpu.matmul %36, %10, %cst_18 {dimension_numbers = #tpu.dot_dimension_numbers<[2], [1], [1], [2], [0, 0, 0, 1, 1, 2], [0], [0]>} : vector<2x64x32xbf16>, vector<2x32x64xbf16>, vector<2x64x64xf32> -> vector<2x64x64xf32>
    "tpu.trace_stop"() : () -> ()
    %38 = vector.extract_strided_slice %37 {offsets = [0, 0, 0], sizes = [2, 32, 64], strides = [1, 1, 1]} : vector<2x64x64xf32> to vector<2x32x64xf32>
    %39 = vector.shape_cast %18 : vector<32x1xf32> to vector<1x32x1xf32>
    %40 = vector.broadcast %39 : vector<1x32x1xf32> to vector<2x32x64xf32>
    %41 = arith.addf %38, %40 : vector<2x32x64xf32>
    %42 = vector.extract_strided_slice %37 {offsets = [0, 32, 0], sizes = [2, 32, 64], strides = [1, 1, 1]} : vector<2x64x64xf32> to vector<2x32x64xf32>
    %43 = vector.shape_cast %19 : vector<32x1xf32> to vector<1x32x1xf32>
    %44 = vector.broadcast %43 : vector<1x32x1xf32> to vector<2x32x64xf32>
    %45 = arith.addf %42, %44 : vector<2x32x64xf32>
    %46 = vector.shape_cast %33 : vector<2x32x64xf32> to vector<16x4x64xf32>
    %47 = tpu.transpose %46, [0, 2, 1] : vector<16x4x64xf32> -> vector<16x64x4xf32>
    %48 = arith.truncf %47 : vector<16x64x4xf32> to vector<16x64x4xbf16>
    %49 = vector.shape_cast %41 : vector<2x32x64xf32> to vector<16x4x64xf32>
    %50 = arith.truncf %49 : vector<16x4x64xf32> to vector<16x4x64xbf16>
    %51 = vector.shape_cast %45 : vector<2x32x64xf32> to vector<16x4x64xf32>
    %52 = arith.truncf %51 : vector<16x4x64xf32> to vector<16x4x64xbf16>
    "tpu.trace_start"() <{level = 10 : i32, message = "nqd,ndk->nqk"}> : () -> ()
    %cst_19 = arith.constant dense<0.000000e+00> : vector<16x64x64xf32>
    %53 = tpu.matmul %48, %50, %cst_19 {dimension_numbers = #tpu.dot_dimension_numbers<[2], [1], [1], [2], [0, 0, 0, 1, 1, 2], [0], [0]>} : vector<16x64x4xbf16>, vector<16x4x64xbf16>, vector<16x64x64xf32> -> vector<16x64x64xf32>
    "tpu.trace_stop"() : () -> ()
    %cst_20 = arith.constant dense<0xFF800000> : vector<16x64xf32>
    %54 = vector.multi_reduction <maximumf>, %53, %cst_20 [2] : vector<16x64x64xf32> to vector<16x64xf32>
    %55 = vector.shape_cast %54 : vector<16x64xf32> to vector<16x64x1xf32>
    %56 = vector.broadcast %55 : vector<16x64x1xf32> to vector<16x64x64xf32>
    %57 = arith.subf %53, %56 : vector<16x64x64xf32>
    %58 = math.exp %57 : vector<16x64x64xf32>
    %cst_21 = arith.constant dense<0.000000e+00> : vector<16x64xf32>
    %59 = vector.multi_reduction <add>, %58, %cst_21 [2] : vector<16x64x64xf32> to vector<16x64xf32>
    %60 = vector.shape_cast %59 : vector<16x64xf32> to vector<16x64x1xf32>
    %61 = tpu.reciprocal %60 {approx = true} : vector<16x64x1xf32> -> vector<16x64x1xf32>
    %62 = vector.broadcast %61 : vector<16x64x1xf32> to vector<16x64x64xf32>
    %63 = arith.mulf %58, %62 : vector<16x64x64xf32>
    %64 = arith.truncf %63 : vector<16x64x64xf32> to vector<16x64x64xbf16>
    "tpu.trace_start"() <{level = 10 : i32, message = "ndk,nqk->ndq"}> : () -> ()
    %cst_22 = arith.constant dense<0.000000e+00> : vector<16x4x64xf32>
    %65 = tpu.matmul %52, %64, %cst_22 {dimension_numbers = #tpu.dot_dimension_numbers<[2], [2], [1], [1], [0, 0, 0, 1, 1, 1], [0], [0]>} : vector<16x4x64xbf16>, vector<16x64x64xbf16>, vector<16x4x64xf32> -> vector<16x4x64xf32>
    "tpu.trace_stop"() : () -> ()
    %66 = vector.shape_cast %65 : vector<16x4x64xf32> to vector<2x32x64xf32>
    %67 = arith.truncf %66 : vector<2x32x64xf32> to vector<2x32x64xbf16>
    %68 = vector.shape_cast %13 : vector<32x32xbf16> to vector<1x32x32xbf16>
    %69 = vector.shape_cast %68 : vector<1x32x32xbf16> to vector<1x32x32xbf16>
    %70 = vector.broadcast %69 : vector<1x32x32xbf16> to vector<2x32x32xbf16>
    "tpu.trace_start"() <{level = 10 : i32, message = "boi,bis->bos"}> : () -> ()
    %cst_23 = arith.constant dense<0.000000e+00> : vector<2x32x64xf32>
    %71 = tpu.matmul %70, %67, %cst_23 {dimension_numbers = #tpu.dot_dimension_numbers<[2], [1], [1], [2], [0, 0, 0, 1, 1, 2], [0], [0]>} : vector<2x32x32xbf16>, vector<2x32x64xbf16>, vector<2x32x64xf32> -> vector<2x32x64xf32>
    "tpu.trace_stop"() : () -> ()
    %72 = vector.shape_cast %20 : vector<32x1xf32> to vector<1x32x1xf32>
    %73 = vector.broadcast %72 : vector<1x32x1xf32> to vector<2x32x64xf32>
    %74 = arith.addf %71, %73 : vector<2x32x64xf32>
    %75 = arith.addf %4, %74 : vector<2x32x64xf32>
    %cst_24 = arith.constant dense<0.000000e+00> : vector<2x64xf32>
    %76 = vector.multi_reduction <add>, %75, %cst_24 [1] : vector<2x32x64xf32> to vector<2x64xf32>
    %77 = vector.shape_cast %76 : vector<2x64xf32> to vector<2x1x64xf32>
    %cst_25 = arith.constant 3.200000e+01 : f32
    %78 = vector.broadcast %cst_25 : f32 to vector<2x1x64xf32>
    %79 = arith.divf %77, %78 : vector<2x1x64xf32>
    %80 = arith.mulf %75, %75 : vector<2x32x64xf32>
    %cst_26 = arith.constant dense<0.000000e+00> : vector<2x64xf32>
    %81 = vector.multi_reduction <add>, %80, %cst_26 [1] : vector<2x32x64xf32> to vector<2x64xf32>
    %82 = vector.shape_cast %81 : vector<2x64xf32> to vector<2x1x64xf32>
    %cst_27 = arith.constant 3.200000e+01 : f32
    %83 = vector.broadcast %cst_27 : f32 to vector<2x1x64xf32>
    %84 = arith.divf %82, %83 : vector<2x1x64xf32>
    %85 = arith.mulf %79, %79 : vector<2x1x64xf32>
    %86 = arith.subf %84, %85 : vector<2x1x64xf32>
    %cst_28 = arith.constant 9.99999974E-6 : f32
    %87 = vector.broadcast %cst_28 : f32 to vector<2x1x64xf32>
    %88 = arith.addf %86, %87 : vector<2x1x64xf32>
    %89 = math.rsqrt %88 : vector<2x1x64xf32>
    %90 = vector.broadcast %79 : vector<2x1x64xf32> to vector<2x32x64xf32>
    %91 = arith.subf %75, %90 : vector<2x32x64xf32>
    %92 = vector.broadcast %89 : vector<2x1x64xf32> to vector<2x32x64xf32>
    %93 = arith.mulf %91, %92 : vector<2x32x64xf32>
    %94 = vector.shape_cast %22 : vector<32x1xf32> to vector<1x32x1xf32>
    %95 = vector.broadcast %94 : vector<1x32x1xf32> to vector<2x32x64xf32>
    %96 = arith.mulf %93, %95 : vector<2x32x64xf32>
    %97 = vector.shape_cast %23 : vector<32x1xf32> to vector<1x32x1xf32>
    %98 = vector.broadcast %97 : vector<1x32x1xf32> to vector<2x32x64xf32>
    %99 = arith.addf %96, %98 : vector<2x32x64xf32>
    %100 = arith.truncf %99 : vector<2x32x64xf32> to vector<2x32x64xbf16>
    %101 = vector.shape_cast %14 : vector<64x32xbf16> to vector<1x64x32xbf16>
    %102 = vector.shape_cast %101 : vector<1x64x32xbf16> to vector<1x64x32xbf16>
    %103 = vector.broadcast %102 : vector<1x64x32xbf16> to vector<2x64x32xbf16>
    "tpu.trace_start"() <{level = 10 : i32, message = "boi,bis->bos"}> : () -> ()
    %cst_29 = arith.constant dense<0.000000e+00> : vector<2x64x64xf32>
    %104 = tpu.matmul %103, %100, %cst_29 {dimension_numbers = #tpu.dot_dimension_numbers<[2], [1], [1], [2], [0, 0, 0, 1, 1, 2], [0], [0]>} : vector<2x64x32xbf16>, vector<2x32x64xbf16>, vector<2x64x64xf32> -> vector<2x64x64xf32>
    "tpu.trace_stop"() : () -> ()
    %105 = vector.shape_cast %26 : vector<64x1xf32> to vector<1x64x1xf32>
    %106 = vector.broadcast %105 : vector<1x64x1xf32> to vector<2x64x64xf32>
    %107 = arith.addf %104, %106 : vector<2x64x64xf32>
    %cst_30 = arith.constant 0.000000e+00 : f32
    %108 = vector.broadcast %cst_30 : f32 to vector<2x64x64xf32>
    %109 = arith.maximumf %107, %108 : vector<2x64x64xf32>
    %110 = arith.truncf %109 : vector<2x64x64xf32> to vector<2x64x64xbf16>
    %111 = vector.shape_cast %15 : vector<32x64xbf16> to vector<1x32x64xbf16>
    %112 = vector.shape_cast %111 : vector<1x32x64xbf16> to vector<1x32x64xbf16>
    %113 = vector.broadcast %112 : vector<1x32x64xbf16> to vector<2x32x64xbf16>
    "tpu.trace_start"() <{level = 10 : i32, message = "boi,bis->bos"}> : () -> ()
    %cst_31 = arith.constant dense<0.000000e+00> : vector<2x32x64xf32>
    %114 = tpu.matmul %113, %110, %cst_31 {dimension_numbers = #tpu.dot_dimension_numbers<[2], [1], [1], [2], [0, 0, 0, 1, 1, 2], [0], [0]>} : vector<2x32x64xbf16>, vector<2x64x64xbf16>, vector<2x32x64xf32> -> vector<2x32x64xf32>
    "tpu.trace_stop"() : () -> ()
    %115 = vector.shape_cast %21 : vector<32x1xf32> to vector<1x32x1xf32>
    %116 = vector.broadcast %115 : vector<1x32x1xf32> to vector<2x32x64xf32>
    %117 = arith.addf %114, %116 : vector<2x32x64xf32>
    %118 = arith.addf %99, %117 : vector<2x32x64xf32>
    %cst_32 = arith.constant dense<0.000000e+00> : vector<2x64xf32>
    %119 = vector.multi_reduction <add>, %118, %cst_32 [1] : vector<2x32x64xf32> to vector<2x64xf32>
    %120 = vector.shape_cast %119 : vector<2x64xf32> to vector<2x1x64xf32>
    %cst_33 = arith.constant 3.200000e+01 : f32
    %121 = vector.broadcast %cst_33 : f32 to vector<2x1x64xf32>
    %122 = arith.divf %120, %121 : vector<2x1x64xf32>
    %123 = arith.mulf %118, %118 : vector<2x32x64xf32>
    %cst_34 = arith.constant dense<0.000000e+00> : vector<2x64xf32>
    %124 = vector.multi_reduction <add>, %123, %cst_34 [1] : vector<2x32x64xf32> to vector<2x64xf32>
    %125 = vector.shape_cast %124 : vector<2x64xf32> to vector<2x1x64xf32>
    %cst_35 = arith.constant 3.200000e+01 : f32
    %126 = vector.broadcast %cst_35 : f32 to vector<2x1x64xf32>
    %127 = arith.divf %125, %126 : vector<2x1x64xf32>
    %128 = arith.mulf %122, %122 : vector<2x1x64xf32>
    %129 = arith.subf %127, %128 : vector<2x1x64xf32>
    %cst_36 = arith.constant 9.99999974E-6 : f32
    %130 = vector.broadcast %cst_36 : f32 to vector<2x1x64xf32>
    %131 = arith.addf %129, %130 : vector<2x1x64xf32>
    %132 = math.rsqrt %131 : vector<2x1x64xf32>
    %133 = vector.broadcast %122 : vector<2x1x64xf32> to vector<2x32x64xf32>
    %134 = arith.subf %118, %133 : vector<2x32x64xf32>
    %135 = vector.broadcast %132 : vector<2x1x64xf32> to vector<2x32x64xf32>
    %136 = arith.mulf %134, %135 : vector<2x32x64xf32>
    %137 = vector.shape_cast %24 : vector<32x1xf32> to vector<1x32x1xf32>
    %138 = vector.broadcast %137 : vector<1x32x1xf32> to vector<2x32x64xf32>
    %139 = arith.mulf %136, %138 : vector<2x32x64xf32>
    %140 = vector.shape_cast %25 : vector<32x1xf32> to vector<1x32x1xf32>
    %141 = vector.broadcast %140 : vector<1x32x1xf32> to vector<2x32x64xf32>
    %142 = arith.addf %139, %141 : vector<2x32x64xf32>
    %c0_37 = arith.constant 0 : index
    %c0_38 = arith.constant 0 : index
    %c0_39 = arith.constant 0 : index
    %143 = vector.load %arg8[%c0_37, %c0_38, %c0_39] : memref<2x32x64xf32, #tpu.memory_space<vmem>>, vector<2x32x64xf32>
    tpu.vector_store %arg8[%c0_37, %c0_38, %c0_39], %142 {strides = array<i32>} : memref<2x32x64xf32, #tpu.memory_space<vmem>>, vector<2x32x64xf32>,
    return
  }
  func.func @transform_0(%arg0: i32) -> (i32, i32, i32) {
    %c0_i32 = arith.constant 0 : i32
    %c0_i32_0 = arith.constant 0 : i32
    %c0_i32_1 = arith.constant 0 : i32
    return %arg0, %c0_i32, %c0_i32_0 : i32, i32, i32
  }
  func.func @transform_1(%arg0: i32) -> (i32, i32, i32) {
    %c0_i32 = arith.constant 0 : i32
    %c0_i32_0 = arith.constant 0 : i32
    %c0_i32_1 = arith.constant 0 : i32
    return %arg0, %c0_i32, %c0_i32_0 : i32, i32, i32
  }
  func.func @transform_2(%arg0: i32) -> (i32, i32) {
    %c0_i32 = arith.constant 0 : i32
    %c0_i32_0 = arith.constant 0 : i32
    %c0_i32_1 = arith.constant 0 : i32
    return %c0_i32, %c0_i32_0 : i32, i32
  }
  func.func @transform_3(%arg0: i32) -> (i32, i32) {
    %c0_i32 = arith.constant 0 : i32
    %c0_i32_0 = arith.constant 0 : i32
    %c0_i32_1 = arith.constant 0 : i32
    return %c0_i32, %c0_i32_0 : i32, i32
  }
  func.func @transform_4(%arg0: i32) -> (i32, i32) {
    %c0_i32 = arith.constant 0 : i32
    %c0_i32_0 = arith.constant 0 : i32
    %c0_i32_1 = arith.constant 0 : i32
    return %c0_i32, %c0_i32_0 : i32, i32
  }
  func.func @transform_5(%arg0: i32) -> (i32, i32) {
    %c0_i32 = arith.constant 0 : i32
    %c0_i32_0 = arith.constant 0 : i32
    %c0_i32_1 = arith.constant 0 : i32
    return %c0_i32, %c0_i32_0 : i32, i32
  }
  func.func @transform_6(%arg0: i32) -> (i32, i32) {
    %c0_i32 = arith.constant 0 : i32
    %c0_i32_0 = arith.constant 0 : i32
    %c0_i32_1 = arith.constant 0 : i32
    return %c0_i32, %c0_i32_0 : i32, i32
  }
  func.func @transform_7(%arg0: i32) -> (i32, i32, i32) {
    %c0_i32 = arith.constant 0 : i32
    %c0_i32_0 = arith.constant 0 : i32
    %c0_i32_1 = arith.constant 0 : i32
    return %arg0, %c0_i32, %c0_i32_0 : i32, i32, i32
  }
}

</mosaic_0001>

<bundles_post_ra>
// kernel: tpu_custom_call.1
= control target key start
LH: loop header
LB: loop body
LE: loop exit
PB: predicated region body
PF: predicated region fallthrough
CT: control target
= control target key end

     0   :  { %v10331_v7 = vmov 0   ;;  %v7352_v8 = vmov 1   ;;  %vm142_vm0 = vcmask 261120   ;;  %s10323_s0 = inlined_call_operand.vmem [shape: f32[2,32,64], index: 0, kind: input, shape index: {}]   ;;  %s10324_s1 = inlined_call_operand.vmem [shape: f32[2,32,64], index: 1, kind: input, shape index: {}]   ;;  %s10325_s2 = inlined_call_operand.vmem [shape: f32[32,64], index: 2, kind: input, shape index: {}]   ;;  %s10326_s3 = inlined_call_operand.vmem [shape: bf16[192,32], index: 3, kind: input, shape index: {}]   ;;  %s10327_s4 = inlined_call_operand.vmem [shape: bf16[32,64], index: 4, kind: input, shape index: {}]   ;;  %s10328_s5 = inlined_call_operand.vmem [shape: f32[32,9], index: 5, kind: input, shape index: {}]   ;;  %s10329_s6 = inlined_call_operand.vmem [shape: f32[64,1], index: 6, kind: input, shape index: {}]   ;;  %s10330_s7 = inlined_call_operand.hbm [shape: f32[2,32,64], index: 7, kind: output, shape index: {}]  }
   0x1   :  { %v28_v0 = vld [vmem:[%s10325_s2] sm:$0xff]  ;;  %v29_v1 = vld [vmem:[%s10325_s2 + $0x8] sm:$0xff]  ;;  %6431 = vset.pattern.permute.xlu0 %v10331_v7  ;;  %6432 = vset.pattern.permute.xlu1 %v7352_v8  ;;  %v30_v12 = vld [vmem:[%s10325_s2 + $0x10] sm:$0xff] }
   0x2   :  { %v32_v2 = vld [vmem:[%s10323_s0] sm:$0xff]  ;;  %v33_v3 = vld [vmem:[%s10323_s0 + $0x8] sm:$0xff]  ;;  %v31_v13 = vld [vmem:[%s10325_s2 + $0x18] sm:$0xff] }
   0x3   :  { %v7417_v4 = vadd.f32 %v32_v2, %v28_v0  ;;  %v36_v5 = vld [vmem:[%s10323_s0 + $0x20] sm:$0xff]  ;;  %v37_v6 = vld [vmem:[%s10323_s0 + $0x28] sm:$0xff]  ;;  %v7427_v9 = vadd.f32 %v33_v3, %v29_v1  ;;  %v34_v14 = vld [vmem:[%s10323_s0 + $0x10] sm:$0xff] }
   0x4   :  { %v7429_v10 = vadd.f32 %v36_v5, %v28_v0  ;;  %v7431_v11 = vadd.f32 %v37_v6, %v29_v1  ;;  %v35_v15 = vld [vmem:[%s10323_s0 + $0x18] sm:$0xff]  ;;  %v7445_v16 = vadd.f32 %v34_v14, %v30_v12  ;;  %v38_v17 = vld [vmem:[%s10323_s0 + $0x30] sm:$0xff]  ;;  %v6788_v23 = vld [vmem:[%s10326_s3] sm:$0xff]  }
   0x5   :  { %10587 = vst [vmem:[#allocation5_spill] sm:$0xff] %v7417_v4  ;;  %10588 = vst [vmem:[#allocation6_spill] sm:$0xff] %v7427_v9  ;;  %v39_v18 = vld [vmem:[%s10323_s0 + $0x38] sm:$0xff]  ;;  %v64_v19 = vpack.c.bf16 %v7427_v9, %v7417_v4  ;;  %v7457_v21 = vadd.f32 %v35_v15, %v31_v13  ;;  %v7459_v22 = vadd.f32 %v38_v17, %v30_v12  ;;  %v48_v26 = vld [vmem:[%s10324_s1] sm:$0xff]  ;;  %5949 = vmatprep.mubr.msk.bf16.mxu0 %vm142_vm0, %v6788_v23 }
   0x6   :  { %10589 = vst [vmem:[#allocation7_spill] sm:$0xff] %v7429_v10  ;;  %10590 = vst [vmem:[#allocation8_spill] sm:$0xff] %v7431_v11  ;;  %v66_v20 = vpack.c.bf16 %v7431_v11, %v7429_v10  ;;  %v7464_v24 = vadd.f32 %v39_v18, %v31_v13  ;;  %v49_v27 = vld [vmem:[%s10324_s1 + $0x8] sm:$0xff]  ;;  %v52_v28 = vld [vmem:[%s10324_s1 + $0x20] sm:$0xff]  ;;  %v56_v30 = vadd.f32 %v48_v26, %v28_v0  ;;  %5957 = vmatprep.mubr.msk.bf16.mxu1 %vm142_vm0, %v6788_v23 }
   0x7   :  { %10591 = vst [vmem:[#allocation9_spill] sm:$0xff] %v7445_v16  ;;  %10592 = vst [vmem:[#allocation10_spill] sm:$0xff] %v7457_v21  ;;  %5945 = vmatprep.subr.bf16.mxu0 %v64_v19  ;;  %v65_v25 = vpack.c.bf16 %v7457_v21, %v7445_v16  ;;  %v57_v31 = vadd.f32 %v49_v27, %v29_v1  ;;  %v53_v32 = vld [vmem:[%s10324_s1 + $0x28] sm:$0xff]  ;;  %v50_v33 = vld [vmem:[%s10324_s1 + $0x10] sm:$0xff]  ;;  %v60_v35 = vadd.f32 %v52_v28, %v28_v0 }
   0x8   :  { %10593 = vst [vmem:[#allocation11_spill] sm:$0xff] %v7459_v22  ;;  %10594 = vst [vmem:[#allocation12_spill] sm:$0xff] %v7464_v24  ;;  %5953 = vmatprep.subr.bf16.mxu1 %v66_v20  ;;  %5946 = vmatpush3.bf16.msra.mxu0 %v64_v19  ;;  %v67_v29 = vpack.c.bf16 %v7464_v24, %v7459_v22  ;;  %v51_v34 = vld [vmem:[%s10324_s1 + $0x18] sm:$0xff]  ;;  %v61_v36 = vadd.f32 %v53_v32, %v29_v1  ;;  %v54_v38 = vld [vmem:[%s10324_s1 + $0x30] sm:$0xff] }
   0x9   :  { %5954 = vmatpush3.bf16.msra.mxu1 %v66_v20  ;;  %5947 = vmatprep.subr.bf16.mxu0 %v65_v25  ;;  %v58_v37 = vadd.f32 %v50_v33, %v30_v12  ;;  %v55_v39 = vld [vmem:[%s10324_s1 + $0x38] sm:$0xff]  ;;  %v68_v40 = vpack.c.bf16 %v57_v31, %v56_v30  ;;  %v59_v41 = vadd.f32 %v51_v34, %v31_v13  ;;  %v6789_v43 = vld [vmem:[%s10326_s3 + $0x8] sm:$0xff]   ;;  %v100_v46 = vld [vmem:[%s10328_s5] sm:$0xff] }
   0xa   :  { %5955 = vmatprep.subr.bf16.mxu1 %v67_v29  ;;  %v62_v42 = vadd.f32 %v54_v38, %v30_v12  ;;  %v70_v44 = vpack.c.bf16 %v61_v36, %v60_v35  ;;  %v63_v45 = vadd.f32 %v55_v39, %v31_v13  ;;  %v6790_v49 = vld [vmem:[%s10326_s3 + $0x10] sm:$0xff]   ;;  %114 = vperm.xlu0 %6431, %v100_v46   ;;  %v7508_v50 = vld [vmem:[%s10328_s5 + $0x8] sm:$0xff]  ;;  %v6791_v52 = vld [vmem:[%s10326_s3 + $0x18] sm:$0xff]  }
   0xb   :  { %v69_v47 = vpack.c.bf16 %v59_v41, %v58_v37  ;;  %410 = vperm.xlu1 %6432, %v100_v46   ;;  %v7515_v51 = vld [vmem:[%s10328_s5 + $0x10] sm:$0xff]  ;;  %v6792_v53 = vld [vmem:[%s10326_s3 + $0x20] sm:$0xff]  }
   0xc   :  { %5948 = vmatpush3.bf16.msra.mxu0 %v65_v25  ;;  %v71_v48 = vpack.c.bf16 %v63_v45, %v62_v42 }
   0xd   :  { %5956 = vmatpush3.bf16.msra.mxu1 %v67_v29  ;;  %5961 = vmatprep.subr.bf16.mxu0 %v68_v40 }
   0xe   :  { %5973 = vmatprep.subr.bf16.mxu1 %v70_v44  ;;  %119 = vperm.xlu0 %6431, %v7508_v50  }
   0xf   :  { %5950 = vmatmul.mubr.msk.bf16.vlgmr.msra.gmra.mrb[0].mxu0 %vm142_vm0, %v6789_v43  ;;  %6433 = vset.pattern.permute.xlu1 %v10331_v7 }
  0x10   :  { %5958 = vmatmul.mubr.msk.bf16.vlgmr.msra.gmra.mrb[0].mxu1 %vm142_vm0, %v6789_v43  ;;  %5962 = vmatpush3.bf16.msra.mxu0 %v68_v40 }
  0x11   :  { %5974 = vmatpush3.bf16.msra.mxu1 %v70_v44  ;;  %5963 = vmatprep.subr.bf16.mxu0 %v69_v47 }
  0x12   :  { %5975 = vmatprep.subr.bf16.mxu1 %v71_v48  ;;  %5965 = vmatprep.mubr.msk.bf16.mxu0 %vm142_vm0, %v6790_v49 }
  0x13   :  { %5977 = vmatprep.mubr.msk.bf16.mxu1 %vm142_vm0, %v6790_v49 }
  0x14   :  { %5964 = vmatpush3.bf16.msra.mxu0 %v69_v47 }
  0x15   :  { %5976 = vmatpush3.bf16.msra.mxu1 %v71_v48 }
  0x16   :  { %12 = vsyncpa [#allocation3], 0  ;;  %124 = vperm.xlu1 %6433, %v7515_v51   ;;  %v103_v54 = vld [vmem:[%s10328_s5 + $0x18] sm:$0xff]  ;;  %v6793_v55 = vld [vmem:[%s10326_s3 + $0x28] sm:$0xff]   ;;  %v7353_v56 = vmov 2   ;;  %vm1150_vm1 = vcmask 1041408  }
  0x17   :  { %5966 = vmatmul.mubr.msk.bf16.vlgmr.msra.gmra.mrb[4].mxu0 %vm142_vm0, %v6791_v52  ;;  %129 = vperm.xlu0 %6431, %v103_v54   ;;  %vm1137_vm2 = vcmask 31744   ;;  %vm2419_vm3 = vcmask 523264   ;;  %vm7355_vm4 = vmmov 0  }
  0x18   :  { %5978 = vmatmul.mubr.msk.bf16.vlgmr.msra.gmra.mrb[4].mxu1 %vm142_vm0, %v6791_v52  ;;  %5969 = vmatprep.mubr.msk.bf16.mxu0 %vm142_vm0, %v6792_v53 }
  0x19   :  { %5981 = vmatprep.mubr.msk.bf16.mxu1 %vm142_vm0, %v6792_v53 }
  0x1a   :  { %6435 = vset.pattern.permute.xlu1 %v7352_v8 }
  0x1b   :  { %422 = vperm.xlu1 %6435, %v103_v54   ;;  %6434 = vset.pattern.permute.xlu0 %v7352_v8 }
  0x1c   :  { %414 = vperm.xlu0 %6434, %v7508_v50  }
  0x1f   :  { %5970 = vmatmul.mubr.msk.bf16.gmra.mrb[8].mxu0 %vm142_vm0, %v6793_v55 }
  0x20   :  { %5982 = vmatmul.mubr.msk.bf16.gmra.mrb[8].mxu1 %vm142_vm0, %v6793_v55  ;;  %418 = vperm.xlu0 %6434, %v7515_v51  }
  0x24   :  { %6436 = vset.pattern.permute.xlu0 %v7353_v56 }
  0x25   :  { %434 = vperm.xlu0 %6436, %v100_v46  }
  0x89   :  { %v115_v58 = vpop.permute.xlu0 %114 }
  0x8a   :  { %v7544_v57 = vpop.permute.xlu1 %410 }
  0x8d   :  { %v7546_v60 = vpop.permute.xlu0 %119 }
  0x95   :  { %v125_v59 = vpop.permute.xlu1 %124 }
  0x96   :  { %v130_v17 = vpop.permute.xlu0 %129 }
  0x9b   :  { %v7561_v32 = vpop.permute.xlu0 %414 }
  0xe2   :  { %v5951_v61 = vpop.f32.mrb[0].mxu0 }
  0xe3   :  { %v5959_v62 = vpop.f32.mrb[0].mxu1  ;;  %v192_v63 = vadd.f32 %v5951_v61, %v125_v59  ;;  %v183_v1 = vpop.f32.mrb[1].mxu0 }
  0xe4   :  { %v241_v0 = vadd.f32 %v5959_v62, %v125_v59  ;;  %v232_v2 = vpop.f32.mrb[1].mxu1  ;;  %v5952_v3 = vpop.f32.mrb[2].mxu0  ;;  %v184_v44 = vadd.f32 %v183_v1, %v115_v58 }
  0xe5   :  { %v5960_v5 = vpop.f32.mrb[2].mxu1  ;;  %v467_v6 = vcombine.high %v192_v63, %v192_v63  ;;  %v186_v12 = vpop.f32.mrb[3].mxu0  ;;  %v195_v45 = vadd.f32 %v5952_v3, %v130_v17  ;;  %v233_v52 = vadd.f32 %v232_v2, %v115_v58 }
  0xe6   :  { %v471_v8 = vcombine.high %v241_v0, %v241_v0  ;;  %v235_v13 = vpop.f32.mrb[3].mxu1  ;;  %v465_v46 = vcombine.high %v184_v44, %v184_v44  ;;  %v244_v53 = vadd.f32 %v5960_v5, %v130_v17  ;;  %v187_v61 = vadd.f32 %v186_v12, %v7546_v60  ;;  %v7590_v2 = vpop.permute.xlu1 %422 }
  0xe7   :  { %v6437_v14 = vpack.i.bf16 %v467_v6, %v192_v63  ;;  %v468_v47 = vcombine.high %v195_v45, %v195_v45  ;;  %v469_v54 = vcombine.high %v233_v52, %v233_v52  ;;  %v7586_v6 = vpop.permute.xlu0 %418 }
  0xe8   :  { %v6479_v15 = vpack.i.bf16 %v471_v8, %v241_v0  ;;  %v6521_v48 = vpack.i.bf16 %v465_v46, %v184_v44  ;;  %v472_v55 = vcombine.high %v244_v53, %v244_v53  ;;  %v466_v62 = vcombine.high %v187_v61, %v187_v61 }
  0xe9   :  { %6438 = vxpose.xlu0.b32.start.end [1/1] (short) (narrow) %v6437_v14, 64  ;;  %v6605_v49 = vpack.i.bf16 %v468_v47, %v195_v45  ;;  %v6563_v56 = vpack.i.bf16 %v469_v54, %v233_v52  ;;  %v236_v0 = vadd.f32 %v235_v13, %v7546_v60 }
  0xea   :  { %6480 = vxpose.xlu1.b32.start.end [1/1] (short) (narrow) %v6479_v15, 64  ;;  %v7548_v18 = vpop.f32.mrb[4].mxu0  ;;  %v6647_v59 = vpack.i.bf16 %v472_v55, %v244_v53  ;;  %v6689_v63 = vpack.i.bf16 %v466_v62, %v187_v61 }
  0xeb   :  { %v7550_v19 = vpop.f32.mrb[4].mxu1  ;;  %v313_v20 = vpop.f32.mrb[5].mxu0  ;;  %v470_v1 = vcombine.high %v236_v0, %v236_v0 }
  0xec   :  { %v7552_v23 = vpop.f32.mrb[5].mxu1  ;;  %v425_v25 = vadd.f32 %v7544_v57, %v313_v20  ;;  %v7555_v26 = vpop.f32.mrb[6].mxu0 }
  0xed   :  { %v7557_v27 = vpop.f32.mrb[6].mxu1  ;;  %v316_v28 = vpop.f32.mrb[7].mxu0  ;;  %v6731_v3 = vpack.i.bf16 %v470_v1, %v236_v0 }
  0xee   :  { %v7559_v29 = vpop.f32.mrb[7].mxu1  ;;  %v1065_v30 = vcombine.high %v425_v25, %v425_v25  ;;  %v1081_v31 = vpack.c.bf16 %v425_v25, %v425_v25  ;;  %v426_v33 = vadd.f32 %v7561_v32, %v316_v28  ;;  %v7588_v58 = vpop.permute.xlu0 %434 }
  0xef   :  { %10599 = vst [vmem:[#allocation17_spill] sm:$0xff] %v7588_v58 }
  0xf0   :  { %v1082_v34 = vpack.c.bf16 %v1065_v30, %v1065_v30  ;;  %6401 = vmatprep.subr.msk.bf16.mxu0 %vm1150_vm1, %v1081_v31  ;;  %v1152_v35 = vsel %vm1150_vm1, %v1081_v31, 0  ;;  %v1066_v36 = vcombine.high %v426_v33, %v426_v33  ;;  %v7566_v37 = vpack.c.bf16 %v426_v33, %v426_v33 }
  0xf1   :  { %5986 = vmatpush3.bf16.msra.mxu0 %v1152_v35 }
  0xf2   :  { %6402 = vmatprep.subr.msk.bf16.mxu1 %vm1150_vm1, %v1082_v34  ;;  %v1232_v38 = vsel %vm1150_vm1, %v1082_v34, 0  ;;  %v7570_v39 = vpop.f32.mrb[8].mxu0  ;;  %v7574_v41 = vpack.c.bf16 %v1066_v36, %v1066_v36  ;;  %6403 = vmatprep.subr.msk.bf16.mxu0 %vm1150_vm1, %v7566_v37 }
  0xf3   :  { %10595 = vst [vmem:[#allocation13_spill] sm:$0xff] %v7570_v39  ;;  %v7572_v40 = vpop.f32.mrb[8].mxu1  ;;  %5996 = vmatpush3.bf16.msra.mxu1 %v1232_v38  ;;  %v7578_v42 = vpop.f32.mrb[9].mxu0  ;;  %v428_v39 = vadd.f32 %v7555_v26, %v7590_v2 }
  0xf4   :  { %10596 = vst [vmem:[#allocation14_spill] sm:$0xff] %v7572_v40  ;;  %10597 = vst [vmem:[#allocation15_spill] sm:$0xff] %v7578_v42  ;;  %v7580_v43 = vpop.f32.mrb[9].mxu1  ;;  %6404 = vmatprep.subr.msk.bf16.mxu1 %vm1150_vm1, %v7574_v41 }
  0xf5   :  { %10598 = vst [vmem:[#allocation16_spill] sm:$0xff] %v7580_v43  ;;  %v1068_v58 = vcombine.high %v428_v39, %v428_v39 }
 0x106   :  { %6606 = vxpose.xlu0.b32.start.end [1/1] (short) (narrow) %v6605_v49, 64 }
 0x107   :  { %6522 = vxpose.xlu1.b32.start.end [1/1] (short) (narrow) %v6521_v48, 64 }
 0x123   :  { %6648 = vxpose.xlu0.b32.start.end [1/1] (short) (narrow) %v6647_v59, 64 }
 0x124   :  { %6564 = vxpose.xlu1.b32.start.end [1/1] (short) (narrow) %v6563_v56, 64  ;;  %v427_v56 = vadd.f32 %v7548_v18, %v7586_v6 }
 0x126   :  { %v1067_v0 = vcombine.high %v427_v56, %v427_v56 }
 0x128   :  { %v7640_v18 = vpack.c.bf16 %v1067_v0, %v1067_v0 }
 0x12a   :  { %v1552_v26 = vsel %vm1150_vm1, %v7640_v18, 0 }
 0x140   :  { %6690 = vxpose.xlu0.b32.start.end [1/1] (short) (narrow) %v6689_v63, 64 }
 0x15d   :  { %6732 = vxpose.xlu0.b32.start.end [1/1] (short) (narrow) %v6731_v3, 64 }
 0x169   :  { %v7594_v8 = vpop.trf.xlu0 }
 0x16a   :  { %v7592_v5 = vpop.trf.xlu1 }
 0x16d   :  { %v7598_v12 = vpop.trf.xlu0 }
 0x16e   :  { %v7596_v14 = vpop.trf.xlu1 }
 0x171   :  { %v7602_v60 = vpop.trf.xlu0 }
 0x172   :  { %v7600_v15 = vpop.trf.xlu1 }
 0x175   :  { %v7606_v17 = vpop.trf.xlu0 }
 0x176   :  { %v7604_v13 = vpop.trf.xlu1 }
 0x179   :  { %v7610_v25 = vpop.trf.xlu0 }
 0x17a   :  { %v7608_v20 = vpop.trf.xlu1 }
 0x17d   :  { %v7614_v30 = vpop.trf.xlu0 }
 0x17e   :  { %v7612_v28 = vpop.trf.xlu1 }
 0x181   :  { %v7618_v33 = vpop.trf.xlu0 }
 0x182   :  { %v7616_v31 = vpop.trf.xlu1 }
 0x185   :  { %v7622_v35 = vpop.trf.xlu0 }
 0x186   :  { %v7620_v34 = vpop.trf.xlu1 }
 0x189   :  { %v7624_v36 = vpop.trf.xlu0 }
 0x18a   :  { %v6523_v38 = vpop.trf.xlu1 }
 0x18b   :  { %v6527_v44 = vunpack.i.h.bf16 %v6523_v38  ;;  %v6524_v45 = vunpack.i.l.bf16 %v6523_v38 }
 0x18d   :  { %v7626_v46 = vpop.trf.xlu0 }
 0x18e   :  { %v6528_v47 = vpop.trf.xlu1 }
 0x18f   :  { %v6532_v48 = vunpack.i.h.bf16 %v6528_v47  ;;  %v6529_v49 = vunpack.i.l.bf16 %v6528_v47 }
 0x191   :  { %v7628_v52 = vpop.trf.xlu0  ;;  %v993_v54 = vpack.c.bf16 %v6529_v49, %v6524_v45  ;;  %v997_v55 = vpack.c.bf16 %v6532_v48, %v6527_v44  ;;  %v7638_v45 = vpack.c.bf16 %v427_v56, %v427_v56  ;;  %v7642_v48 = vpop.f32.mrb[10].mxu0 }
 0x192   :  { %v6533_v53 = vpop.trf.xlu1  ;;  %10600 = vst [vmem:[#allocation18_spill] sm:$0xff] %v7642_v48  ;;  %v7644_v49 = vpop.f32.mrb[10].mxu1 }
 0x193   :  { %5987 = vmatprep.mubr.msk.bf16.mxu0 %vm1137_vm2, %v993_v54  ;;  %5997 = vmatprep.mubr.msk.bf16.mxu1 %vm1137_vm2, %v997_v55  ;;  %v6537_v59 = vunpack.i.h.bf16 %v6533_v53  ;;  %v6534_v61 = vunpack.i.l.bf16 %v6533_v53  ;;  %10601 = vst [vmem:[#allocation19_spill] sm:$0xff] %v7644_v49  ;;  %v1312_v53 = vsel %vm1150_vm1, %v7566_v37, 0  ;;  %v1392_v54 = vsel %vm1150_vm1, %v7574_v41, 0  ;;  %v7652_v55 = vpop.f32.mrb[11].mxu0  ;;  %v7654_v56 = vpop.f32.mrb[11].mxu1 }
 0x194   :  { %10602 = vst [vmem:[#allocation20_spill] sm:$0xff] %v7652_v55  ;;  %10603 = vst [vmem:[#allocation21_spill] sm:$0xff] %v7654_v56 }
 0x195   :  { %v7634_v62 = vpop.trf.xlu0 }
 0x196   :  { %v6538_v63 = vpop.trf.xlu1 }
 0x197   :  { %v6542_v1 = vunpack.i.h.bf16 %v6538_v63  ;;  %v6539_v3 = vunpack.i.l.bf16 %v6538_v63 }
 0x199   :  { %v994_v38 = vpack.c.bf16 %v6539_v3, %v6534_v61  ;;  %v998_v47 = vpack.c.bf16 %v6542_v1, %v6537_v59  ;;  %v7636_v7 = vpop.trf.xlu0 }
 0x19a   :  { %v6543_v44 = vpop.trf.xlu1 }
 0x19b   :  { %5988 = vmatmul.mubr.msk.bf16.vlgmr.msra.gmra.mrb[12].mxu0 %vm1137_vm2, %v994_v38  ;;  %5998 = vmatmul.mubr.msk.bf16.vlgmr.msra.gmra.mrb[12].mxu1 %vm1137_vm2, %v998_v47  ;;  %v6547_v59 = vunpack.i.h.bf16 %v6543_v44  ;;  %v6544_v61 = vunpack.i.l.bf16 %v6543_v44 }
 0x19c   :  { %6006 = vmatpush3.bf16.msra.mxu0 %v1312_v53  ;;  %6016 = vmatpush3.bf16.msra.mxu1 %v1392_v54 }
 0x19d   :  { %6405 = vmatprep.subr.msk.bf16.mxu0 %vm1150_vm1, %v7638_v45  ;;  %6406 = vmatprep.subr.msk.bf16.mxu1 %vm1150_vm1, %v7640_v18  ;;  %v7660_v63 = vpop.trf.xlu0  ;;  %v6448_v18 = vunpack.i.h.bf16 %v7598_v12 }
 0x19e   :  { %v6548_v37 = vpop.trf.xlu1 }
 0x19f   :  { %v6552_v0 = vunpack.i.h.bf16 %v6548_v37  ;;  %v6549_v1 = vunpack.i.l.bf16 %v6548_v37 }
 0x1a1   :  { %v7662_v41 = vpop.trf.xlu0  ;;  %v995_v38 = vpack.c.bf16 %v6549_v1, %v6544_v61  ;;  %v999_v47 = vpack.c.bf16 %v6552_v0, %v6547_v59 }
 0x1a2   :  { %v6553_v3 = vpop.trf.xlu1  ;;  %438 = vperm.xlu0 %6436, %v7508_v50  }
 0x1a3   :  { %5991 = vmatprep.mubr.msk.bf16.mxu0 %vm1137_vm2, %v995_v38  ;;  %6001 = vmatprep.mubr.msk.bf16.mxu1 %vm1137_vm2, %v999_v47  ;;  %v6557_v44 = vunpack.i.h.bf16 %v6553_v3  ;;  %v6554_v53 = vunpack.i.l.bf16 %v6553_v3 }
 0x1a5   :  { %v7667_v54 = vpop.trf.xlu0 }
 0x1a6   :  { %v6558_v11 = vpop.trf.xlu1  ;;  %442 = vperm.xlu0 %6436, %v7515_v51  }
 0x1a7   :  { %v6562_v24 = vunpack.i.h.bf16 %v6558_v11  ;;  %v6559_v37 = vunpack.i.l.bf16 %v6558_v11 }
 0x1a9   :  { %v7670_v10 = vpop.trf.xlu0  ;;  %v996_v22 = vpack.c.bf16 %v6559_v37, %v6554_v53  ;;  %v1000_v61 = vpack.c.bf16 %v6562_v24, %v6557_v44 }
 0x1aa   :  { %v7672_v59 = vpop.trf.xlu1 }
 0x1ab   :  { %5992 = vmatmul.mubr.msk.bf16.gmra.mrb[16].mxu0 %vm1137_vm2, %v996_v22  ;;  %6002 = vmatmul.mubr.msk.bf16.gmra.mrb[16].mxu1 %vm1137_vm2, %v1000_v61 }
 0x1ad   :  { %v7676_v50 = vpop.trf.xlu0 }
 0x1ae   :  { %v7678_v0 = vpop.trf.xlu1 }
 0x1b1   :  { %v7680_v1 = vpop.trf.xlu0 }
 0x1b2   :  { %10604 = vst [vmem:[#allocation22_spill] sm:$0xff] %v7680_v1  ;;  %v7682_v3 = vpop.trf.xlu1 }
 0x1b5   :  { %v7684_v51 = vpop.trf.xlu0 }
 0x1b6   :  { %v7686_v11 = vpop.trf.xlu1 }
 0x1b9   :  { %v7688_v38 = vpop.trf.xlu0 }
 0x1ba   :  { %10605 = vst [vmem:[#allocation23_spill] sm:$0xff] %v7688_v38  ;;  %v7690_v24 = vpop.trf.xlu1 }
 0x1bd   :  { %v7692_v47 = vpop.trf.xlu0 }
 0x1be   :  { %10606 = vst [vmem:[#allocation24_spill] sm:$0xff] %v7692_v47  ;;  %v7694_v22 = vpop.trf.xlu1  ;;  %v1087_v47 = vpack.c.bf16 %v428_v39, %v428_v39 }
 0x1c1   :  { %v7696_v44 = vpop.trf.xlu0 }
 0x1c2   :  { %10607 = vst [vmem:[#allocation25_spill] sm:$0xff] %v7696_v44  ;;  %v7698_v53 = vpop.trf.xlu1 }
 0x1c5   :  { %v7700_v37 = vpop.trf.xlu0 }
 0x1c6   :  { %10608 = vst [vmem:[#allocation26_spill] sm:$0xff] %v7700_v37  ;;  %v7702_v61 = vpop.trf.xlu1 }
 0x1c9   :  { %v6691_v9 = vpop.trf.xlu0 }
 0x1ca   :  { %v6695_v21 = vunpack.i.h.bf16 %v6691_v9  ;;  %v6692_v4 = vunpack.i.l.bf16 %v6691_v9 }
 0x1cd   :  { %v6696_v16 = vpop.trf.xlu0 }
 0x1ce   :  { %v6700_v40 = vunpack.i.h.bf16 %v6696_v16  ;;  %v6697_v56 = vunpack.i.l.bf16 %v6696_v16 }
 0x1d0   :  { %v1001_v43 = vpack.c.bf16 %v6697_v56, %v6692_v4  ;;  %v1005_v48 = vpack.c.bf16 %v6700_v40, %v6695_v21  ;;  %v1472_v4 = vsel %vm1150_vm1, %v7638_v45, 0  ;;  %v1088_v21 = vpack.c.bf16 %v1068_v58, %v1068_v58 }
 0x1d1   :  { %v6701_v55 = vpop.trf.xlu0 }
 0x1d2   :  { %6007 = vmatprep.mubr.msk.bf16.mxu0 %vm1137_vm2, %v1001_v43  ;;  %6017 = vmatprep.mubr.msk.bf16.mxu1 %vm1137_vm2, %v1005_v48  ;;  %v6705_v42 = vunpack.i.h.bf16 %v6701_v55  ;;  %v6702_v49 = vunpack.i.l.bf16 %v6701_v55  ;;  %v6445_v55 = vunpack.i.l.bf16 %v7598_v12  ;;  %v429_v12 = vadd.f32 %v7544_v57, %v7552_v23 }
 0x1d5   :  { %v6706_v44 = vpop.trf.xlu0 }
 0x1d6   :  { %v6710_v37 = vunpack.i.h.bf16 %v6706_v44  ;;  %v6707_v38 = vunpack.i.l.bf16 %v6706_v44 }
 0x1d8   :  { %v1002_v9 = vpack.c.bf16 %v6707_v38, %v6702_v49  ;;  %v1006_v1 = vpack.c.bf16 %v6710_v37, %v6705_v42 }
 0x1d9   :  { %v6711_v16 = vpop.trf.xlu0 }
 0x1da   :  { %6008 = vmatmul.mubr.msk.bf16.vlgmr.msra.gmra.mrb[20].mxu0 %vm1137_vm2, %v1002_v9  ;;  %6018 = vmatmul.mubr.msk.bf16.vlgmr.msra.gmra.mrb[20].mxu1 %vm1137_vm2, %v1006_v1  ;;  %v6715_v40 = vunpack.i.h.bf16 %v6711_v16  ;;  %v6712_v39 = vunpack.i.l.bf16 %v6711_v16  ;;  %v6443_v9 = vunpack.i.h.bf16 %v7594_v8  ;;  %v6440_v16 = vunpack.i.l.bf16 %v7594_v8 }
 0x1db   :  { %6026 = vmatpush3.bf16.msra.mxu0 %v1472_v4  ;;  %6036 = vmatpush3.bf16.msra.mxu1 %v1552_v26  ;;  %v6455_v8 = vunpack.i.l.bf16 %v7606_v17 }
 0x1dc   :  { %6407 = vmatprep.subr.msk.bf16.mxu0 %vm1150_vm1, %v1087_v47  ;;  %6408 = vmatprep.subr.msk.bf16.mxu1 %vm1150_vm1, %v1088_v21 }
 0x1dd   :  { %v6716_v42 = vpop.trf.xlu0 }
 0x1de   :  { %v6720_v43 = vunpack.i.h.bf16 %v6716_v42  ;;  %v6717_v48 = vunpack.i.l.bf16 %v6716_v42 }
 0x1e0   :  { %v1003_v45 = vpack.c.bf16 %v6717_v48, %v6712_v39  ;;  %v1007_v58 = vpack.c.bf16 %v6720_v43, %v6715_v40  ;;  %v1009_v40 = vpack.c.bf16 %v6445_v55, %v6440_v16  ;;  %v1013_v39 = vpack.c.bf16 %v6448_v18, %v6443_v9 }
 0x1e1   :  { %v6721_v49 = vpop.trf.xlu0  ;;  %v6458_v43 = vunpack.i.h.bf16 %v7606_v17  ;;  %v6453_v48 = vunpack.i.h.bf16 %v7602_v60  ;;  %v6465_v18 = vunpack.i.l.bf16 %v7614_v30  ;;  %v1069_v55 = vcombine.high %v429_v12, %v429_v12 }
 0x1e2   :  { %6011 = vmatprep.mubr.msk.bf16.mxu0 %vm1137_vm2, %v1003_v45  ;;  %6021 = vmatprep.mubr.msk.bf16.mxu1 %vm1137_vm2, %v1007_v58  ;;  %v6725_v56 = vunpack.i.h.bf16 %v6721_v49  ;;  %v6722_v1 = vunpack.i.l.bf16 %v6721_v49  ;;  %v6450_v45 = vunpack.i.l.bf16 %v7602_v60  ;;  %v6468_v49 = vunpack.i.h.bf16 %v7614_v30 }
 0x1e3   :  { %v1014_v23 = vpack.c.bf16 %v6458_v43, %v6453_v48  ;;  %v1712_v17 = vsel %vm1150_vm1, %v1088_v21, 0  ;;  %v1089_v30 = vpack.c.bf16 %v429_v12, %v429_v12  ;;  %v1090_v9 = vpack.c.bf16 %v1069_v55, %v1069_v55 }
 0x1e4   :  { %v1010_v57 = vpack.c.bf16 %v6455_v8, %v6450_v45  ;;  %v6478_v16 = vunpack.i.h.bf16 %v7622_v35  ;;  %v6613_v21 = vunpack.i.l.bf16 %v7626_v46  ;;  %v430_v8 = vadd.f32 %v7561_v32, %v7559_v29 }
 0x1e5   :  { %v6726_v38 = vpop.trf.xlu0  ;;  %v6618_v29 = vunpack.i.l.bf16 %v7628_v52  ;;  %v6636_v55 = vunpack.i.h.bf16 %v7660_v63 }
 0x1e6   :  { %v6730_v44 = vunpack.i.h.bf16 %v6726_v38  ;;  %v6727_v37 = vunpack.i.l.bf16 %v6726_v38  ;;  %v1632_v38 = vsel %vm1150_vm1, %v1087_v47, 0  ;;  %v6616_v47 = vunpack.i.h.bf16 %v7626_v46 }
 0x1e8   :  { %v1004_v4 = vpack.c.bf16 %v6727_v37, %v6722_v1  ;;  %v1008_v26 = vpack.c.bf16 %v6730_v44, %v6725_v56  ;;  %v6463_v56 = vunpack.i.h.bf16 %v7610_v25  ;;  %v6460_v1 = vunpack.i.l.bf16 %v7610_v25 }
 0x1e9   :  { %v7722_v42 = vpop.trf.xlu0  ;;  %v6475_v25 = vunpack.i.l.bf16 %v7622_v35  ;;  %v6611_v35 = vunpack.i.h.bf16 %v7624_v36 }
 0x1ea   :  { %6012 = vmatmul.mubr.msk.bf16.gmra.mrb[24].mxu0 %vm1137_vm2, %v1004_v4  ;;  %6022 = vmatmul.mubr.msk.bf16.gmra.mrb[24].mxu1 %vm1137_vm2, %v1008_v26  ;;  %v1011_v60 = vpack.c.bf16 %v6465_v18, %v6460_v1  ;;  %v1015_v37 = vpack.c.bf16 %v6468_v49, %v6463_v56  ;;  %v6473_v26 = vunpack.i.h.bf16 %v7618_v33  ;;  %v1070_v49 = vcombine.high %v430_v8, %v430_v8 }
 0x1eb   :  { %6027 = vmatprep.mubr.msk.bf16.mxu0 %vm1137_vm2, %v1009_v40  ;;  %6037 = vmatprep.mubr.msk.bf16.mxu1 %vm1137_vm2, %v1013_v39  ;;  %v6470_v40 = vunpack.i.l.bf16 %v7618_v33  ;;  %v6608_v39 = vunpack.i.l.bf16 %v7624_v36  ;;  %v1021_v48 = vpack.c.bf16 %v6616_v47, %v6611_v35  ;;  %v6626_v33 = vunpack.i.h.bf16 %v7634_v62 }
 0x1ec   :  { %v1016_v43 = vpack.c.bf16 %v6478_v16, %v6473_v26  ;;  %v6623_v36 = vunpack.i.l.bf16 %v7634_v62  ;;  %v6621_v18 = vunpack.i.h.bf16 %v7628_v52  ;;  %v6631_v1 = vunpack.i.h.bf16 %v7636_v7 }
 0x1ed   :  { %v7734_v58 = vpop.trf.xlu0  ;;  %v1012_v12 = vpack.c.bf16 %v6475_v25, %v6470_v40  ;;  %v1017_v46 = vpack.c.bf16 %v6613_v21, %v6608_v39  ;;  %v1792_v62 = vsel %vm1150_vm1, %v1089_v30, 0  ;;  %v6569_v25 = vunpack.i.h.bf16 %v7672_v59 }
 0x1ee   :  { %v1022_v56 = vpack.c.bf16 %v6626_v33, %v6621_v18  ;;  %v6566_v47 = vunpack.i.l.bf16 %v7672_v59  ;;  %v6571_v21 = vunpack.i.l.bf16 %v7678_v0  ;;  %v6641_v59 = vunpack.i.h.bf16 %v7662_v41 }
 0x1ef   :  { %v431_v39 = vadd.f32 %v7550_v19, %v7586_v6  ;;  %v6589_v19 = vunpack.i.h.bf16 %v7690_v24  ;;  %v6586_v6 = vunpack.i.l.bf16 %v7690_v24  ;;  %v6594_v33 = vunpack.i.h.bf16 %v7694_v22 }
 0x1f0   :  { %v1025_v40 = vpack.c.bf16 %v6571_v21, %v6566_v47  ;;  %v6604_v24 = vunpack.i.h.bf16 %v7702_v61  ;;  %v432_v47 = vadd.f32 %v7557_v27, %v7590_v2 }
 0x1f1   :  { %v7742_v44 = vpop.trf.xlu0 }
 0x1f2   :  { %6028 = vmatmul.mubr.msk.bf16.vlgmr.msra.gmra.mrb[28].mxu0 %vm1137_vm2, %v1010_v57  ;;  %6038 = vmatmul.mubr.msk.bf16.vlgmr.msra.gmra.mrb[28].mxu1 %vm1137_vm2, %v1014_v23  ;;  %v6633_v57 = vunpack.i.l.bf16 %v7660_v63  ;;  %v1018_v23 = vpack.c.bf16 %v6623_v36, %v6618_v29  ;;  %v1023_v63 = vpack.c.bf16 %v6636_v55, %v6631_v1  ;;  %v6596_v1 = vunpack.i.l.bf16 %v7698_v53 }
 0x1f3   :  { %6046 = vmatpush3.bf16.msra.mxu0 %v1632_v38  ;;  %6056 = vmatpush3.bf16.msra.mxu1 %v1712_v17  ;;  %v6628_v38 = vunpack.i.l.bf16 %v7636_v7  ;;  %v1091_v17 = vpack.c.bf16 %v430_v8, %v430_v8  ;;  %v6574_v7 = vunpack.i.h.bf16 %v7678_v0  ;;  %v6638_v0 = vunpack.i.l.bf16 %v7662_v41 }
 0x1f4   :  { %6031 = vmatprep.mubr.msk.bf16.mxu0 %vm1137_vm2, %v1011_v60  ;;  %6041 = vmatprep.mubr.msk.bf16.mxu1 %vm1137_vm2, %v1015_v37  ;;  %v1092_v60 = vpack.c.bf16 %v1070_v49, %v1070_v49  ;;  %v1872_v37 = vsel %vm1150_vm1, %v1090_v9, 0  ;;  %v6576_v8 = vunpack.i.l.bf16 %v7682_v3  ;;  %v1071_v41 = vcombine.high %v431_v39, %v431_v39 }
 0x1f5   :  { %6409 = vmatprep.subr.msk.bf16.mxu0 %vm1150_vm1, %v1089_v30  ;;  %6410 = vmatprep.subr.msk.bf16.mxu1 %vm1150_vm1, %v1090_v9  ;;  %v7754_v4 = vpop.trf.xlu0  ;;  %v1019_v52 = vpack.c.bf16 %v6633_v57, %v6628_v38  ;;  %v6646_v30 = vunpack.i.h.bf16 %v7667_v54  ;;  %v6643_v9 = vunpack.i.l.bf16 %v7667_v54  ;;  %v1029_v35 = vpack.c.bf16 %v6574_v7, %v6569_v25 }
 0x1f6   :  { %v1094_v18 = vpack.c.bf16 %v1071_v41, %v1071_v41  ;;  %v1952_v29 = vsel %vm1150_vm1, %v1091_v17, 0  ;;  %v2032_v55 = vsel %vm1150_vm1, %v1092_v60, 0  ;;  %v6737_v38 = vunpack.i.h.bf16 %v7722_v42 }
 0x1f7   :  { %v1020_v54 = vpack.c.bf16 %v6643_v9, %v6638_v0  ;;  %v6749_v25 = vunpack.i.l.bf16 %v7754_v4  ;;  %v1095_v0 = vpack.c.bf16 %v432_v47, %v432_v47 }
 0x1f8   :  { %v2192_v27 = vsel %vm1150_vm1, %v1094_v18, 0 }
 0x1f9   :  { %v7762_v45 = vpop.trf.xlu0 }
 0x1fa   :  { %6032 = vmatmul.mubr.msk.bf16.gmra.mrb[32].mxu0 %vm1137_vm2, %v1012_v12  ;;  %6042 = vmatmul.mubr.msk.bf16.gmra.mrb[32].mxu1 %vm1137_vm2, %v1016_v43  ;;  %v1024_v12 = vpack.c.bf16 %v6646_v30, %v6641_v59  ;;  %v6579_v43 = vunpack.i.h.bf16 %v7682_v3  ;;  %v6591_v3 = vunpack.i.l.bf16 %v7694_v22  ;;  %v6601_v22 = vunpack.i.l.bf16 %v7702_v61 }
 0x1fb   :  { %6047 = vmatprep.mubr.msk.bf16.mxu0 %vm1137_vm2, %v1017_v46  ;;  %6057 = vmatprep.mubr.msk.bf16.mxu1 %vm1137_vm2, %v1021_v48  ;;  %v6584_v46 = vunpack.i.h.bf16 %v7686_v11  ;;  %v6581_v48 = vunpack.i.l.bf16 %v7686_v11  ;;  %v1093_v11 = vpack.c.bf16 %v431_v39, %v431_v39  ;;  %v6757_v7 = vunpack.i.h.bf16 %v7762_v45 }
 0x1fc   :  { %v1027_v57 = vpack.c.bf16 %v6591_v3, %v6586_v6  ;;  %v6754_v21 = vunpack.i.l.bf16 %v7762_v45  ;;  %v1072_v59 = vcombine.high %v432_v47, %v432_v47  ;;  %v6500_v6 = vunpack.i.h.bf16 %v7604_v13 }
 0x1fd   :  { %v7772_v32 = vpop.trf.xlu0  ;;  %v1026_v36 = vpack.c.bf16 %v6581_v48, %v6576_v8  ;;  %v1030_v49 = vpack.c.bf16 %v6584_v46, %v6579_v43  ;;  %v6485_v43 = vunpack.i.h.bf16 %v7592_v5  ;;  %v6482_v8 = vunpack.i.l.bf16 %v7592_v5 }
 0x1fe   :  { %v6759_v30 = vunpack.i.l.bf16 %v7772_v32  ;;  %v6490_v46 = vunpack.i.h.bf16 %v7596_v14  ;;  %v6495_v5 = vunpack.i.h.bf16 %v7600_v15  ;;  %v6505_v3 = vunpack.i.h.bf16 %v7608_v20 }
 0x200   :  { %v1035_v2 = vpack.c.bf16 %v6759_v30, %v6754_v21 }
 0x201   :  { %v7780_v16 = vpop.trf.xlu0 }
 0x202   :  { %6048 = vmatmul.mubr.msk.bf16.vlgmr.msra.gmra.mrb[36].mxu0 %vm1137_vm2, %v1018_v23  ;;  %6058 = vmatmul.mubr.msk.bf16.vlgmr.msra.gmra.mrb[36].mxu1 %vm1137_vm2, %v1022_v56  ;;  %v1031_v23 = vpack.c.bf16 %v6594_v33, %v6589_v19  ;;  %v6599_v56 = vunpack.i.h.bf16 %v7698_v53  ;;  %v1028_v53 = vpack.c.bf16 %v6601_v22, %v6596_v1  ;;  %v6767_v39 = vunpack.i.h.bf16 %v7780_v16 }
 0x203   :  { %6066 = vmatpush3.bf16.msra.mxu0 %v1792_v62  ;;  %6076 = vmatpush3.bf16.msra.mxu1 %v1872_v37  ;;  %v6739_v62 = vunpack.i.l.bf16 %v7734_v58  ;;  %v1045_v19 = vpack.c.bf16 %v6490_v46, %v6485_v43  ;;  %v6497_v33 = vunpack.i.l.bf16 %v7604_v13  ;;  %v6658_v1 = vunpack.i.h.bf16 %v7676_v50 }
 0x204   :  { %6051 = vmatprep.mubr.msk.bf16.mxu0 %vm1137_vm2, %v1019_v52  ;;  %6061 = vmatprep.mubr.msk.bf16.mxu1 %vm1137_vm2, %v1023_v63  ;;  %v1032_v61 = vpack.c.bf16 %v6604_v24, %v6599_v56  ;;  %v6744_v63 = vunpack.i.l.bf16 %v7742_v44  ;;  %v6517_v56 = vunpack.i.l.bf16 %v7620_v34  ;;  %v6655_v24 = vunpack.i.l.bf16 %v7676_v50 }
 0x205   :  { %6411 = vmatprep.subr.msk.bf16.mxu0 %vm1150_vm1, %v1091_v17  ;;  %6412 = vmatprep.subr.msk.bf16.mxu1 %vm1150_vm1, %v1092_v60  ;;  %v7794_v26 = vpop.trf.xlu0  ;;  %v6734_v17 = vunpack.i.l.bf16 %v7722_v42  ;;  %v6742_v60 = vunpack.i.h.bf16 %v7734_v58  ;;  %v6747_v42 = vunpack.i.h.bf16 %v7742_v44  ;;  %v6752_v58 = vunpack.i.h.bf16 %v7754_v4 }
 0x206   :  { %v6762_v44 = vunpack.i.h.bf16 %v7772_v32  ;;  %v1034_v4 = vpack.c.bf16 %v6749_v25, %v6744_v63  ;;  %v6772_v45 = vunpack.i.h.bf16 %v7794_v26  ;;  %v1096_v32 = vpack.c.bf16 %v1072_v59, %v1072_v59  ;;  %v10611_v63 = vld [vmem:[#allocation23_spill] sm:$0xff] }
 0x207   :  { %v1033_v37 = vpack.c.bf16 %v6739_v62, %v6734_v17  ;;  %v1037_v52 = vpack.c.bf16 %v6742_v60, %v6737_v38  ;;  %v1038_v9 = vpack.c.bf16 %v6752_v58, %v6747_v42  ;;  %v6653_v22 = vunpack.i.h.bf16 %v7670_v10 }
 0x208   :  { %v1040_v48 = vpack.c.bf16 %v6772_v45, %v6767_v39  ;;  %v6650_v38 = vunpack.i.l.bf16 %v7670_v10  ;;  %v6665_v50 = vunpack.i.l.bf16 %v7684_v51  ;;  %v6673_v58 = vunpack.i.h.bf16 %v10611_v63 }
 0x209   :  { %v6670_v25 = vunpack.i.l.bf16 %v10611_v63 }
 0x20a   :  { %6052 = vmatmul.mubr.msk.bf16.gmra.mrb[40].mxu0 %vm1137_vm2, %v1020_v54  ;;  %6062 = vmatmul.mubr.msk.bf16.gmra.mrb[40].mxu1 %vm1137_vm2, %v1024_v12  ;;  %v6764_v54 = vunpack.i.l.bf16 %v7780_v16  ;;  %v6769_v12 = vunpack.i.l.bf16 %v7794_v26  ;;  %v6487_v16 = vunpack.i.l.bf16 %v7596_v14  ;;  %v6492_v14 = vunpack.i.l.bf16 %v7600_v15 }
 0x20b   :  { %6067 = vmatprep.mubr.msk.bf16.mxu0 %vm1137_vm2, %v1025_v40  ;;  %6077 = vmatprep.mubr.msk.bf16.mxu1 %vm1137_vm2, %v1029_v35  ;;  %v2112_v40 = vsel %vm1150_vm1, %v1093_v11, 0  ;;  %v1039_v35 = vpack.c.bf16 %v6762_v44, %v6757_v7  ;;  %v2272_v15 = vsel %vm1150_vm1, %v1095_v0, 0  ;;  %v1049_v62 = vpack.c.bf16 %v6655_v24, %v6650_v38 }
 0x20c   :  { %v1036_v26 = vpack.c.bf16 %v6769_v12, %v6764_v54  ;;  %v1041_v41 = vpack.c.bf16 %v6487_v16, %v6482_v8 }
 0x212   :  { %6068 = vmatmul.mubr.msk.bf16.vlgmr.msra.gmra.mrb[44].mxu0 %vm1137_vm2, %v1026_v36  ;;  %6078 = vmatmul.mubr.msk.bf16.vlgmr.msra.gmra.mrb[44].mxu1 %vm1137_vm2, %v1030_v49  ;;  %v6502_v36 = vunpack.i.l.bf16 %v7608_v20  ;;  %v6510_v49 = vunpack.i.h.bf16 %v7612_v28  ;;  %v6515_v20 = vunpack.i.h.bf16 %v7616_v31 }
 0x213   :  { %6086 = vmatpush3.bf16.msra.mxu0 %v1952_v29  ;;  %6096 = vmatpush3.bf16.msra.mxu1 %v2032_v55  ;;  %v1046_v29 = vpack.c.bf16 %v6500_v6, %v6495_v5  ;;  %v2352_v55 = vsel %vm1150_vm1, %v1096_v32, 0 }
 0x214   :  { %6413 = vmatprep.subr.msk.bf16.mxu0 %vm1150_vm1, %v1093_v11  ;;  %6414 = vmatprep.subr.msk.bf16.mxu1 %vm1150_vm1, %v1094_v18  ;;  %v6507_v11 = vunpack.i.l.bf16 %v7612_v28  ;;  %v1042_v18 = vpack.c.bf16 %v6497_v33, %v6492_v14  ;;  %v1047_v13 = vpack.c.bf16 %v6510_v49, %v6505_v3  ;;  %v6520_v28 = vunpack.i.h.bf16 %v7620_v34 }
 0x215   :  { %6071 = vmatprep.mubr.msk.bf16.mxu0 %vm1137_vm2, %v1027_v57  ;;  %6081 = vmatprep.mubr.msk.bf16.mxu1 %vm1137_vm2, %v1031_v23  ;;  %v6512_v23 = vunpack.i.l.bf16 %v7616_v31  ;;  %v1053_v31 = vpack.c.bf16 %v6658_v1, %v6653_v22  ;;  %v6668_v34 = vunpack.i.h.bf16 %v7684_v51  ;;  %v10612_v51 = vld [vmem:[#allocation26_spill] sm:$0xff] }
 0x216   :  { %v1043_v57 = vpack.c.bf16 %v6507_v11, %v6502_v36  ;;  %v1048_v60 = vpack.c.bf16 %v6520_v28, %v6515_v20  ;;  %v6688_v30 = vunpack.i.h.bf16 %v10612_v51 }
 0x217   :  { %v1044_v17 = vpack.c.bf16 %v6517_v56, %v6512_v23 }
 0x21a   :  { %6072 = vmatmul.mubr.msk.bf16.gmra.mrb[48].mxu0 %vm1137_vm2, %v1028_v53  ;;  %6082 = vmatmul.mubr.msk.bf16.gmra.mrb[48].mxu1 %vm1137_vm2, %v1032_v61  ;;  %v10609_v53 = vld [vmem:[#allocation24_spill] sm:$0xff] }
 0x21b   :  { %6087 = vmatprep.mubr.msk.bf16.mxu0 %vm1137_vm2, %v1033_v37  ;;  %6097 = vmatprep.mubr.msk.bf16.mxu1 %vm1137_vm2, %v1037_v52  ;;  %v6678_v61 = vunpack.i.h.bf16 %v10609_v53  ;;  %v6675_v10 = vunpack.i.l.bf16 %v10609_v53  ;;  %v10610_v37 = vld [vmem:[#allocation22_spill] sm:$0xff] }
 0x21c   :  { %v6663_v52 = vunpack.i.h.bf16 %v10610_v37  ;;  %v6660_v42 = vunpack.i.l.bf16 %v10610_v37 }
 0x21d   :  { %v1051_v21 = vpack.c.bf16 %v6675_v10, %v6670_v25  ;;  %v1055_v44 = vpack.c.bf16 %v6678_v61, %v6673_v58 }
 0x21e   :  { %v1050_v47 = vpack.c.bf16 %v6665_v50, %v6660_v42  ;;  %v1054_v7 = vpack.c.bf16 %v6668_v34, %v6663_v52 }
 0x222   :  { %6088 = vmatmul.mubr.msk.bf16.vlgmr.msra.gmra.mrb[52].mxu0 %vm1137_vm2, %v1034_v4  ;;  %6098 = vmatmul.mubr.msk.bf16.vlgmr.msra.gmra.mrb[52].mxu1 %vm1137_vm2, %v1038_v9  ;;  %v6685_v4 = vunpack.i.l.bf16 %v10612_v51  ;;  %v10613_v9 = vld [vmem:[#allocation25_spill] sm:$0xff] }
 0x223   :  { %6106 = vmatpush3.bf16.msra.mxu0 %v2112_v40  ;;  %6116 = vmatpush3.bf16.msra.mxu1 %v2192_v27  ;;  %v6683_v59 = vunpack.i.h.bf16 %v10613_v9 }
 0x224   :  { %6415 = vmatprep.subr.msk.bf16.mxu0 %vm1150_vm1, %v1095_v0  ;;  %6416 = vmatprep.subr.msk.bf16.mxu1 %vm1150_vm1, %v1096_v32  ;;  %v6680_v0 = vunpack.i.l.bf16 %v10613_v9 }
 0x225   :  { %6091 = vmatprep.mubr.msk.bf16.mxu0 %vm1137_vm2, %v1035_v2  ;;  %6101 = vmatprep.mubr.msk.bf16.mxu1 %vm1137_vm2, %v1039_v35  ;;  %v1056_v27 = vpack.c.bf16 %v6688_v30, %v6683_v59 }
 0x226   :  { %v1052_v40 = vpack.c.bf16 %v6685_v4, %v6680_v0 }
 0x22a   :  { %6092 = vmatmul.mubr.msk.bf16.gmra.mrb[56].mxu0 %vm1137_vm2, %v1036_v26  ;;  %6102 = vmatmul.mubr.msk.bf16.gmra.mrb[56].mxu1 %vm1137_vm2, %v1040_v48 }
 0x22b   :  { %6107 = vmatprep.mubr.msk.bf16.mxu0 %vm1137_vm2, %v1041_v41  ;;  %6117 = vmatprep.mubr.msk.bf16.mxu1 %vm1137_vm2, %v1045_v19 }
 0x232   :  { %6108 = vmatmul.mubr.msk.bf16.vlgmr.msra.gmra.mrb[60].mxu0 %vm1137_vm2, %v1042_v18  ;;  %6118 = vmatmul.mubr.msk.bf16.vlgmr.msra.gmra.mrb[60].mxu1 %vm1137_vm2, %v1046_v29 }
 0x233   :  { %6126 = vmatpush3.bf16.msra.mxu0 %v2272_v15  ;;  %6136 = vmatpush3.bf16.msra.mxu1 %v2352_v55 }
 0x234   :  { %6111 = vmatprep.mubr.msk.bf16.mxu0 %vm1137_vm2, %v1043_v57  ;;  %6121 = vmatprep.mubr.msk.bf16.mxu1 %vm1137_vm2, %v1047_v13 }
 0x23a   :  { %6112 = vmatmul.mubr.msk.bf16.gmra.mrb[64].mxu0 %vm1137_vm2, %v1044_v17  ;;  %6122 = vmatmul.mubr.msk.bf16.gmra.mrb[64].mxu1 %vm1137_vm2, %v1048_v60 }
 0x23b   :  { %6127 = vmatprep.mubr.msk.bf16.mxu0 %vm1137_vm2, %v1049_v62  ;;  %6137 = vmatprep.mubr.msk.bf16.mxu1 %vm1137_vm2, %v1053_v31 }
 0x242   :  { %6128 = vmatmul.mubr.msk.bf16.vlgmr.msra.gmra.mrb[68].mxu0 %vm1137_vm2, %v1050_v47  ;;  %6138 = vmatmul.mubr.msk.bf16.vlgmr.msra.gmra.mrb[68].mxu1 %vm1137_vm2, %v1054_v7 }
 0x243   :  { %6131 = vmatprep.mubr.msk.bf16.mxu0 %vm1137_vm2, %v1051_v21  ;;  %6141 = vmatprep.mubr.msk.bf16.mxu1 %vm1137_vm2, %v1055_v44 }
 0x24a   :  { %6132 = vmatmul.mubr.msk.bf16.gmra.mrb[72].mxu0 %vm1137_vm2, %v1052_v40  ;;  %6142 = vmatmul.mubr.msk.bf16.gmra.mrb[72].mxu1 %vm1137_vm2, %v1056_v27 }
 0x26e   :  { %v7906_v2 = vpop.f32.mrb[12].mxu0  ;;  %v7908_v35 = vpop.f32.mrb[12].mxu1 }
 0x26f   :  { %v7910_v39 = vpop.f32.mrb[13].mxu0  ;;  %v2426_v54 = vsel %vm2419_vm3, %v7906_v2, -inf  ;;  %v7914_v45 = vpop.f32.mrb[13].mxu1  ;;  %v2450_v8 = vsel %vm2419_vm3, %v7908_v35, -inf }
 0x270   :  { %2427 = vmax.xlane.f32.xlu0 %v2426_v54  ;;  %v2420_v12 = vsel %vm2419_vm3, %v7910_v39, -inf  ;;  %v7918_v32 = vpop.f32.mrb[14].mxu0  ;;  %v7920_v43 = vpop.f32.mrb[14].mxu1  ;;  %v2444_v41 = vsel %vm2419_vm3, %v7914_v45, -inf }
 0x271   :  { %10614 = vst [vmem:[#allocation24_spill] sm:$0xff] %v7918_v32  ;;  %10615 = vst [vmem:[#allocation22_spill] sm:$0xff] %v7920_v43  ;;  %2421 = vmax.xlane.f32.xlu1 %v2420_v12  ;;  %v7924_v46 = vpop.f32.mrb[15].mxu0  ;;  %v7926_v16 = vpop.f32.mrb[15].mxu1  ;;  %v2429_v26 = vsel %vm2419_vm3, %v7918_v32, -inf  ;;  %v2453_v19 = vsel %vm2419_vm3, %v7920_v43, -inf }
 0x272   :  { %10616 = vst [vmem:[#allocation23_spill] sm:$0xff] %v7924_v46  ;;  %10617 = vst [vmem:[#allocation26_spill] sm:$0xff] %v7926_v16  ;;  %v2423_v48 = vsel %vm2419_vm3, %v7924_v46, -inf  ;;  %v2447_v14 = vsel %vm2419_vm3, %v7926_v16, -inf }
 0x274   :  { %2451 = vmax.xlane.f32.xlu0 %v2450_v8 }
 0x275   :  { %2430 = vmax.xlane.f32.xlu1 %v2429_v26 }
 0x278   :  { %2424 = vmax.xlane.f32.xlu0 %v2423_v48 }
 0x279   :  { %2445 = vmax.xlane.f32.xlu1 %v2444_v41 }
 0x27d   :  { %2454 = vmax.xlane.f32.xlu1 %v2453_v19 }
 0x27e   :  { %v7936_v5 = vpop.f32.mrb[16].mxu0  ;;  %v7940_v6 = vpop.f32.mrb[16].mxu1 }
 0x27f   :  { %v2438_v33 = vsel %vm2419_vm3, %v7936_v5, -inf  ;;  %v7944_v3 = vpop.f32.mrb[17].mxu0  ;;  %v7946_v36 = vpop.f32.mrb[17].mxu1  ;;  %v2462_v57 = vsel %vm2419_vm3, %v7940_v6, -inf }
 0x280   :  { %2439 = vmax.xlane.f32.xlu0 %v2438_v33  ;;  %v7948_v49 = vpop.f32.mrb[18].mxu0  ;;  %v7950_v11 = vpop.f32.mrb[18].mxu1  ;;  %v2432_v18 = vsel %vm2419_vm3, %v7944_v3, -inf  ;;  %v2456_v20 = vsel %vm2419_vm3, %v7946_v36, -inf }
 0x281   :  { %10618 = vst [vmem:[#allocation25_spill] sm:$0xff] %v7948_v49  ;;  %10619 = vst [vmem:[#allocation27_spill] sm:$0xff] %v7950_v11  ;;  %2448 = vmax.xlane.f32.xlu1 %v2447_v14  ;;  %v7954_v29 = vpop.f32.mrb[19].mxu0  ;;  %v7956_v15 = vpop.f32.mrb[19].mxu1  ;;  %v2441_v55 = vsel %vm2419_vm3, %v7948_v49, -inf  ;;  %v2465_v23 = vsel %vm2419_vm3, %v7950_v11, -inf }
 0x282   :  { %10620 = vst [vmem:[#allocation28_spill] sm:$0xff] %v7954_v29  ;;  %10621 = vst [vmem:[#allocation29_spill] sm:$0xff] %v7956_v15  ;;  %v2435_v13 = vsel %vm2419_vm3, %v7954_v29, -inf  ;;  %v2459_v28 = vsel %vm2419_vm3, %v7956_v15, -inf }
 0x284   :  { %2433 = vmax.xlane.f32.xlu0 %v2432_v18 }
 0x285   :  { %2442 = vmax.xlane.f32.xlu1 %v2441_v55 }
 0x288   :  { %2463 = vmax.xlane.f32.xlu0 %v2462_v57 }
 0x289   :  { %2436 = vmax.xlane.f32.xlu1 %v2435_v13 }
 0x28c   :  { %2457 = vmax.xlane.f32.xlu0 %v2456_v20 }
 0x28d   :  { %2466 = vmax.xlane.f32.xlu1 %v2465_v23 }
 0x291   :  { %2460 = vmax.xlane.f32.xlu1 %v2459_v28 }
 0x2ad   :  { %v7970_v56 = vpop.f32.mrb[20].mxu0  ;;  %v7972_v1 = vpop.f32.mrb[20].mxu1 }
 0x2ae   :  { %v7974_v24 = vpop.f32.mrb[21].mxu0  ;;  %v7976_v22 = vpop.f32.mrb[21].mxu1  ;;  %v2474_v38 = vsel %vm2419_vm3, %v7970_v56, -inf  ;;  %v2498_v61 = vsel %vm2419_vm3, %v7972_v1, -inf }
 0x2af   :  { %10622 = vst [vmem:[#allocation30_spill] sm:$0xff] %v7976_v22  ;;  %v7980_v17 = vpop.f32.mrb[22].mxu1  ;;  %2475 = vmax.xlane.f32.xlu0 %v2474_v38  ;;  %v7982_v60 = vpop.f32.mrb[22].mxu0  ;;  %v2468_v50 = vsel %vm2419_vm3, %v7974_v24, -inf  ;;  %v2492_v37 = vsel %vm2419_vm3, %v7976_v22, -inf }
 0x2b0   :  { %v7984_v62 = vpop.f32.mrb[23].mxu0  ;;  %v7986_v31 = vpop.f32.mrb[23].mxu1  ;;  %v2477_v34 = vsel %vm2419_vm3, %v7982_v60, -inf  ;;  %v2501_v10 = vsel %vm2419_vm3, %v7980_v17, -inf }
 0x2b1   :  { %2478 = vmax.xlane.f32.xlu1 %v2477_v34  ;;  %v2471_v53 = vsel %vm2419_vm3, %v7984_v62, -inf  ;;  %v2495_v52 = vsel %vm2419_vm3, %v7986_v31, -inf }
 0x2b3   :  { %2469 = vmax.xlane.f32.xlu0 %v2468_v50 }
 0x2b5   :  { %2472 = vmax.xlane.f32.xlu1 %v2471_v53 }
 0x2b7   :  { %2499 = vmax.xlane.f32.xlu0 %v2498_v61 }
 0x2b9   :  { %2502 = vmax.xlane.f32.xlu1 %v2501_v10 }
 0x2bb   :  { %2493 = vmax.xlane.f32.xlu0 %v2492_v37 }
 0x2bd   :  { %v8002_v42 = vpop.f32.mrb[24].mxu1  ;;  %2496 = vmax.xlane.f32.xlu1 %v2495_v52  ;;  %v8004_v63 = vpop.f32.mrb[24].mxu0 }
 0x2be   :  { %v8006_v58 = vpop.f32.mrb[25].mxu0  ;;  %v8008_v25 = vpop.f32.mrb[25].mxu1  ;;  %v2486_v47 = vsel %vm2419_vm3, %v8004_v63, -inf  ;;  %v2510_v54 = vsel %vm2419_vm3, %v8002_v42, -inf }
 0x2bf   :  { %10623 = vst [vmem:[#allocation31_spill] sm:$0xff] %v8006_v58  ;;  %10624 = vst [vmem:[#allocation32_spill] sm:$0xff] %v8008_v25  ;;  %v8012_v7 = vpop.f32.mrb[26].mxu1  ;;  %2487 = vmax.xlane.f32.xlu0 %v2486_v47  ;;  %v8014_v21 = vpop.f32.mrb[26].mxu0  ;;  %v2480_v4 = vsel %vm2419_vm3, %v8006_v58, -inf  ;;  %v2504_v19 = vsel %vm2419_vm3, %v8008_v25, -inf }
 0x2c0   :  { %v8016_v44 = vpop.f32.mrb[27].mxu0  ;;  %v8018_v51 = vpop.f32.mrb[27].mxu1  ;;  %v2489_v30 = vsel %vm2419_vm3, %v8014_v21, -inf  ;;  %v2513_v41 = vsel %vm2419_vm3, %v8012_v7, -inf }
 0x2c1   :  { %2490 = vmax.xlane.f32.xlu1 %v2489_v30  ;;  %v2483_v9 = vsel %vm2419_vm3, %v8016_v44, -inf  ;;  %v2507_v14 = vsel %vm2419_vm3, %v8018_v51, -inf }
 0x2c3   :  { %2481 = vmax.xlane.f32.xlu0 %v2480_v4 }
 0x2c5   :  { %v8026_v59 = vpop.f32.mrb[28].mxu1  ;;  %2484 = vmax.xlane.f32.xlu1 %v2483_v9  ;;  %v8028_v0 = vpop.f32.mrb[28].mxu0 }
 0x2c6   :  { %10625 = vst [vmem:[#allocation33_spill] sm:$0xff] %v8026_v59  ;;  %10626 = vst [vmem:[#allocation34_spill] sm:$0xff] %v8028_v0  ;;  %v8030_v40 = vpop.f32.mrb[29].mxu0  ;;  %v8032_v27 = vpop.f32.mrb[29].mxu1  ;;  %v2522_v13 = vsel %vm2419_vm3, %v8028_v0, -inf  ;;  %v2546_v47 = vsel %vm2419_vm3, %v8026_v59, -inf }
 0x2c7   :  { %10627 = vst [vmem:[#allocation35_spill] sm:$0xff] %v8030_v40  ;;  %10628 = vst [vmem:[#allocation36_spill] sm:$0xff] %v8032_v27  ;;  %v8036_v12 = vpop.f32.mrb[30].mxu1  ;;  %2511 = vmax.xlane.f32.xlu0 %v2510_v54  ;;  %v8038_v8 = vpop.f32.mrb[30].mxu0  ;;  %v2516_v50 = vsel %vm2419_vm3, %v8030_v40, -inf }
 0x2c8   :  { %10629 = vst [vmem:[#allocation37_spill] sm:$0xff] %v8036_v12  ;;  %10630 = vst [vmem:[#allocation38_spill] sm:$0xff] %v8038_v8  ;;  %v8040_v26 = vpop.f32.mrb[31].mxu0  ;;  %v8042_v48 = vpop.f32.mrb[31].mxu1  ;;  %v2525_v34 = vsel %vm2419_vm3, %v8038_v8, -inf }
 0x2c9   :  { %10631 = vst [vmem:[#allocation39_spill] sm:$0xff] %v8040_v26  ;;  %10632 = vst [vmem:[#allocation40_spill] sm:$0xff] %v8042_v48  ;;  %2514 = vmax.xlane.f32.xlu1 %v2513_v41  ;;  %v2519_v53 = vsel %vm2419_vm3, %v8040_v26, -inf  ;;  %v2549_v41 = vsel %vm2419_vm3, %v8036_v12, -inf  ;;  %v8242_v8 = vpop.permute.xlu0 %438 }
 0x2ca   :  { %10690 = vst [vmem:[#allocation98_spill] sm:$0xff] %v8242_v8 }
 0x2cb   :  { %2505 = vmax.xlane.f32.xlu0 %v2504_v19  ;;  %v2540_v19 = vsel %vm2419_vm3, %v8032_v27, -inf }
 0x2cd   :  { %v8050_v33 = vpop.f32.mrb[32].mxu1  ;;  %2508 = vmax.xlane.f32.xlu1 %v2507_v14  ;;  %v8052_v18 = vpop.f32.mrb[32].mxu0  ;;  %v2543_v14 = vsel %vm2419_vm3, %v8042_v48, -inf }
 0x2ce   :  { %10633 = vst [vmem:[#allocation41_spill] sm:$0xff] %v8050_v33  ;;  %10634 = vst [vmem:[#allocation42_spill] sm:$0xff] %v8052_v18  ;;  %v8054_v55 = vpop.f32.mrb[33].mxu0  ;;  %v8056_v57 = vpop.f32.mrb[33].mxu1  ;;  %v2558_v43 = vsel %vm2419_vm3, %v8050_v33, -inf }
 0x2cf   :  { %10635 = vst [vmem:[#allocation43_spill] sm:$0xff] %v8054_v55  ;;  %10636 = vst [vmem:[#allocation44_spill] sm:$0xff] %v8056_v57  ;;  %v8060_v20 = vpop.f32.mrb[34].mxu1  ;;  %2523 = vmax.xlane.f32.xlu0 %v2522_v13  ;;  %v8062_v23 = vpop.f32.mrb[34].mxu0  ;;  %v2528_v29 = vsel %vm2419_vm3, %v8054_v55, -inf  ;;  %v2552_v33 = vsel %vm2419_vm3, %v8056_v57, -inf }
 0x2d0   :  { %10637 = vst [vmem:[#allocation45_spill] sm:$0xff] %v8060_v20  ;;  %10638 = vst [vmem:[#allocation46_spill] sm:$0xff] %v8062_v23  ;;  %v8064_v28 = vpop.f32.mrb[35].mxu0  ;;  %v8066_v38 = vpop.f32.mrb[35].mxu1 }
 0x2d1   :  { %10639 = vst [vmem:[#allocation47_spill] sm:$0xff] %v8064_v28  ;;  %10640 = vst [vmem:[#allocation48_spill] sm:$0xff] %v8066_v38  ;;  %2526 = vmax.xlane.f32.xlu1 %v2525_v34  ;;  %v2531_v49 = vsel %vm2419_vm3, %v8064_v28, -inf  ;;  %v2555_v28 = vsel %vm2419_vm3, %v8066_v38, -inf }
 0x2d3   :  { %2517 = vmax.xlane.f32.xlu0 %v2516_v50 }
 0x2d5   :  { %v8074_v61 = vpop.f32.mrb[36].mxu1  ;;  %2520 = vmax.xlane.f32.xlu1 %v2519_v53  ;;  %v8076_v10 = vpop.f32.mrb[36].mxu0 }
 0x2d6   :  { %10641 = vst [vmem:[#allocation49_spill] sm:$0xff] %v8074_v61  ;;  %10642 = vst [vmem:[#allocation50_spill] sm:$0xff] %v8076_v10  ;;  %v8078_v37 = vpop.f32.mrb[37].mxu0  ;;  %v8080_v52 = vpop.f32.mrb[37].mxu1 }
 0x2d7   :  { %10643 = vst [vmem:[#allocation51_spill] sm:$0xff] %v8078_v37  ;;  %10644 = vst [vmem:[#allocation52_spill] sm:$0xff] %v8080_v52  ;;  %v8084_v30 = vpop.f32.mrb[38].mxu1  ;;  %2547 = vmax.xlane.f32.xlu0 %v2546_v47  ;;  %v8086_v4 = vpop.f32.mrb[38].mxu0  ;;  %v2534_v47 = vsel %vm2419_vm3, %v8052_v18, -inf }
 0x2d8   :  { %10645 = vst [vmem:[#allocation53_spill] sm:$0xff] %v8084_v30  ;;  %10646 = vst [vmem:[#allocation54_spill] sm:$0xff] %v8086_v4  ;;  %v8088_v9 = vpop.f32.mrb[39].mxu0  ;;  %v8090_v54 = vpop.f32.mrb[39].mxu1 }
 0x2d9   :  { %10647 = vst [vmem:[#allocation55_spill] sm:$0xff] %v8088_v9  ;;  %10648 = vst [vmem:[#allocation56_spill] sm:$0xff] %v8090_v54  ;;  %2550 = vmax.xlane.f32.xlu1 %v2549_v41  ;;  %v2567_v48 = vsel %vm2419_vm3, %v8088_v9, -inf  ;;  %v2591_v58 = vsel %vm2419_vm3, %v8090_v54, -inf }
 0x2db   :  { %2541 = vmax.xlane.f32.xlu0 %v2540_v19 }
 0x2dd   :  { %v8098_v13 = vpop.f32.mrb[40].mxu1  ;;  %2544 = vmax.xlane.f32.xlu1 %v2543_v14  ;;  %v8100_v34 = vpop.f32.mrb[40].mxu0  ;;  %v2537_v14 = vsel %vm2419_vm3, %v8062_v23, -inf }
 0x2de   :  { %10649 = vst [vmem:[#allocation57_spill] sm:$0xff] %v8098_v13  ;;  %10650 = vst [vmem:[#allocation58_spill] sm:$0xff] %v8100_v34  ;;  %v8102_v50 = vpop.f32.mrb[41].mxu0  ;;  %v8104_v53 = vpop.f32.mrb[41].mxu1  ;;  %v2582_v26 = vsel %vm2419_vm3, %v8100_v34, -inf }
 0x2df   :  { %10651 = vst [vmem:[#allocation59_spill] sm:$0xff] %v8102_v50  ;;  %10652 = vst [vmem:[#allocation60_spill] sm:$0xff] %v8104_v53  ;;  %v8108_v41 = vpop.f32.mrb[42].mxu1  ;;  %2535 = vmax.xlane.f32.xlu0 %v2534_v47  ;;  %v8110_v15 = vpop.f32.mrb[42].mxu0  ;;  %v2576_v34 = vsel %vm2419_vm3, %v8102_v50, -inf }
 0x2e0   :  { %10653 = vst [vmem:[#allocation61_spill] sm:$0xff] %v8108_v41  ;;  %10654 = vst [vmem:[#allocation62_spill] sm:$0xff] %v8110_v15  ;;  %v8112_v19 = vpop.f32.mrb[43].mxu0  ;;  %v8114_v11 = vpop.f32.mrb[43].mxu1 }
 0x2e1   :  { %10655 = vst [vmem:[#allocation63_spill] sm:$0xff] %v8112_v19  ;;  %10656 = vst [vmem:[#allocation64_spill] sm:$0xff] %v8114_v11  ;;  %2538 = vmax.xlane.f32.xlu1 %v2537_v14 }
 0x2e3   :  { %2529 = vmax.xlane.f32.xlu0 %v2528_v29  ;;  %v2561_v29 = vsel %vm2419_vm3, %v8060_v20, -inf  ;;  %v2570_v20 = vsel %vm2419_vm3, %v8076_v10, -inf  ;;  %v2564_v10 = vsel %vm2419_vm3, %v8078_v37, -inf }
 0x2e5   :  { %2532 = vmax.xlane.f32.xlu1 %v2531_v49  ;;  %v8122_v16 = vpop.f32.mrb[44].mxu1  ;;  %v8124_v47 = vpop.f32.mrb[44].mxu0 }
 0x2e6   :  { %10657 = vst [vmem:[#allocation65_spill] sm:$0xff] %v8122_v16  ;;  %10658 = vst [vmem:[#allocation66_spill] sm:$0xff] %v8124_v47  ;;  %v8128_v46 = vpop.f32.mrb[45].mxu0  ;;  %v8130_v32 = vpop.f32.mrb[45].mxu1 }
 0x2e7   :  { %10659 = vst [vmem:[#allocation67_spill] sm:$0xff] %v8128_v46  ;;  %10660 = vst [vmem:[#allocation68_spill] sm:$0xff] %v8130_v32  ;;  %2559 = vmax.xlane.f32.xlu0 %v2558_v43  ;;  %v8132_v14 = vpop.f32.mrb[46].mxu1  ;;  %v8134_v23 = vpop.f32.mrb[46].mxu0 }
 0x2e8   :  { %10661 = vst [vmem:[#allocation69_spill] sm:$0xff] %v8132_v14  ;;  %10662 = vst [vmem:[#allocation70_spill] sm:$0xff] %v8134_v23  ;;  %v8138_v49 = vpop.f32.mrb[47].mxu0  ;;  %v8140_v55 = vpop.f32.mrb[47].mxu1 }
 0x2e9   :  { %10663 = vst [vmem:[#allocation71_spill] sm:$0xff] %v8138_v49  ;;  %2562 = vmax.xlane.f32.xlu1 %v2561_v29 }
 0x2eb   :  { %2553 = vmax.xlane.f32.xlu0 %v2552_v33  ;;  %v2573_v33 = vsel %vm2419_vm3, %v8086_v4, -inf  ;;  %v2594_v4 = vsel %vm2419_vm3, %v8074_v61, -inf  ;;  %v2588_v61 = vsel %vm2419_vm3, %v8080_v52, -inf }
 0x2ed   :  { %2556 = vmax.xlane.f32.xlu1 %v2555_v28  ;;  %v8146_v43 = vpop.f32.mrb[48].mxu1  ;;  %v8148_v59 = vpop.f32.mrb[48].mxu0 }
 0x2ee   :  { %10664 = vst [vmem:[#allocation72_spill] sm:$0xff] %v8146_v43  ;;  %v8152_v18 = vpop.f32.mrb[49].mxu0  ;;  %v8154_v0 = vpop.f32.mrb[49].mxu1 }
 0x2ef   :  { %2571 = vmax.xlane.f32.xlu0 %v2570_v20  ;;  %v8156_v29 = vpop.f32.mrb[50].mxu1  ;;  %v8158_v57 = vpop.f32.mrb[50].mxu0 }
 0x2f0   :  { %10665 = vst [vmem:[#allocation73_spill] sm:$0xff] %v8156_v29  ;;  %v8162_v28 = vpop.f32.mrb[51].mxu1  ;;  %v8164_v38 = vpop.f32.mrb[51].mxu0 }
 0x2f1   :  { %2574 = vmax.xlane.f32.xlu1 %v2573_v33 }
 0x2f3   :  { %2565 = vmax.xlane.f32.xlu0 %v2564_v10  ;;  %v2597_v10 = vsel %vm2419_vm3, %v8084_v30, -inf }
 0x2f5   :  { %2568 = vmax.xlane.f32.xlu1 %v2567_v48  ;;  %v8170_v20 = vpop.f32.mrb[52].mxu1  ;;  %v8172_v27 = vpop.f32.mrb[52].mxu0 }
 0x2f6   :  { %10666 = vst [vmem:[#allocation74_spill] sm:$0xff] %v8170_v20  ;;  %10667 = vst [vmem:[#allocation75_spill] sm:$0xff] %v8172_v27  ;;  %v8176_v25 = vpop.f32.mrb[53].mxu0  ;;  %v8178_v12 = vpop.f32.mrb[53].mxu1 }
 0x2f7   :  { %10668 = vst [vmem:[#allocation76_spill] sm:$0xff] %v8176_v25  ;;  %10669 = vst [vmem:[#allocation77_spill] sm:$0xff] %v8178_v12  ;;  %2595 = vmax.xlane.f32.xlu0 %v2594_v4  ;;  %v8180_v33 = vpop.f32.mrb[54].mxu1  ;;  %v8182_v37 = vpop.f32.mrb[54].mxu0 }
 0x2f8   :  { %10670 = vst [vmem:[#allocation78_spill] sm:$0xff] %v8180_v33  ;;  %10671 = vst [vmem:[#allocation79_spill] sm:$0xff] %v8182_v37  ;;  %v8186_v48 = vpop.f32.mrb[55].mxu1  ;;  %v8188_v9 = vpop.f32.mrb[55].mxu0 }
 0x2f9   :  { %10672 = vst [vmem:[#allocation80_spill] sm:$0xff] %v8186_v48  ;;  %10673 = vst [vmem:[#allocation81_spill] sm:$0xff] %v8188_v9  ;;  %2598 = vmax.xlane.f32.xlu1 %v2597_v10  ;;  %v2585_v10 = vsel %vm2419_vm3, %v8110_v15, -inf }
 0x2fb   :  { %2589 = vmax.xlane.f32.xlu0 %v2588_v61 }
 0x2fd   :  { %2592 = vmax.xlane.f32.xlu1 %v2591_v58  ;;  %v8194_v4 = vpop.f32.mrb[56].mxu1  ;;  %v8198_v40 = vpop.f32.mrb[56].mxu0 }
 0x2fe   :  { %10674 = vst [vmem:[#allocation82_spill] sm:$0xff] %v8194_v4  ;;  %10675 = vst [vmem:[#allocation83_spill] sm:$0xff] %v8198_v40  ;;  %v8200_v30 = vpop.f32.mrb[57].mxu0  ;;  %v8202_v22 = vpop.f32.mrb[57].mxu1 }
 0x2ff   :  { %2583 = vmax.xlane.f32.xlu0 %v2582_v26  ;;  %10676 = vst [vmem:[#allocation84_spill] sm:$0xff] %v8200_v30  ;;  %10677 = vst [vmem:[#allocation85_spill] sm:$0xff] %v8202_v22  ;;  %v8206_v61 = vpop.f32.mrb[58].mxu1  ;;  %v8208_v52 = vpop.f32.mrb[58].mxu0  ;;  %v2579_v26 = vsel %vm2419_vm3, %v8112_v19, -inf  ;;  %v2609_v19 = vsel %vm2419_vm3, %v8108_v41, -inf }
 0x300   :  { %10678 = vst [vmem:[#allocation86_spill] sm:$0xff] %v8206_v61  ;;  %10679 = vst [vmem:[#allocation87_spill] sm:$0xff] %v8208_v52  ;;  %v8210_v58 = vpop.f32.mrb[59].mxu1  ;;  %v8214_v54 = vpop.f32.mrb[59].mxu0 }
 0x301   :  { %2586 = vmax.xlane.f32.xlu1 %v2585_v10  ;;  %10680 = vst [vmem:[#allocation88_spill] sm:$0xff] %v8210_v58  ;;  %10681 = vst [vmem:[#allocation89_spill] sm:$0xff] %v8214_v54  ;;  %v8220_v15 = vpop.xlane.xlu1 %2421  ;;  %v2606_v10 = vsel %vm2419_vm3, %v8098_v13, -inf  ;;  %v2600_v13 = vsel %vm2419_vm3, %v8104_v53, -inf }
 0x303   :  { %2577 = vmax.xlane.f32.xlu0 %v2576_v34 }
 0x305   :  { %v8218_v22 = vpop.f32.mrb[60].mxu1  ;;  %2580 = vmax.xlane.f32.xlu1 %v2579_v26  ;;  %v8222_v61 = vpop.f32.mrb[60].mxu0 }
 0x306   :  { %10682 = vst [vmem:[#allocation90_spill] sm:$0xff] %v8218_v22  ;;  %10683 = vst [vmem:[#allocation91_spill] sm:$0xff] %v8222_v61  ;;  %v8226_v58 = vpop.f32.mrb[61].mxu0  ;;  %v8228_v4 = vpop.f32.mrb[61].mxu1 }
 0x307   :  { %10684 = vst [vmem:[#allocation92_spill] sm:$0xff] %v8226_v58  ;;  %10685 = vst [vmem:[#allocation93_spill] sm:$0xff] %v8228_v4  ;;  %2607 = vmax.xlane.f32.xlu0 %v2606_v10  ;;  %v8230_v50 = vpop.f32.mrb[62].mxu1  ;;  %v8232_v34 = vpop.f32.mrb[62].mxu0  ;;  %v2603_v10 = vsel %vm2419_vm3, %v8114_v11, -inf  ;;  %v2621_v11 = vsel %vm2419_vm3, %v8134_v23, -inf }
 0x308   :  { %10686 = vst [vmem:[#allocation94_spill] sm:$0xff] %v8230_v50  ;;  %10687 = vst [vmem:[#allocation95_spill] sm:$0xff] %v8232_v34  ;;  %v8236_v26 = vpop.f32.mrb[63].mxu0  ;;  %v8238_v54 = vpop.f32.mrb[63].mxu1 }
 0x309   :  { %10688 = vst [vmem:[#allocation96_spill] sm:$0xff] %v8236_v26  ;;  %10689 = vst [vmem:[#allocation97_spill] sm:$0xff] %v8238_v54  ;;  %2610 = vmax.xlane.f32.xlu1 %v2609_v19  ;;  %v8248_v34 = vpop.xlane.xlu1 %2430  ;;  %v2618_v54 = vsel %vm2419_vm3, %v8124_v47, -inf  ;;  %v2612_v47 = vsel %vm2419_vm3, %v8128_v46, -inf }
 0x30a   :  { %10692 = vst [vmem:[#allocation100_spill] sm:$0xff] %v8248_v34 }
 0x30b   :  { %2601 = vmax.xlane.f32.xlu0 %v2600_v13 }
 0x30d   :  { %v8246_v50 = vpop.f32.mrb[64].mxu1  ;;  %2604 = vmax.xlane.f32.xlu1 %v2603_v10  ;;  %v8250_v41 = vpop.f32.mrb[64].mxu0 }
 0x30e   :  { %10691 = vst [vmem:[#allocation99_spill] sm:$0xff] %v8246_v50  ;;  %10693 = vst [vmem:[#allocation101_spill] sm:$0xff] %v8250_v41  ;;  %v8254_v19 = vpop.f32.mrb[65].mxu0  ;;  %v8256_v26 = vpop.f32.mrb[65].mxu1 }
 0x30f   :  { %10694 = vst [vmem:[#allocation102_spill] sm:$0xff] %v8254_v19  ;;  %10695 = vst [vmem:[#allocation103_spill] sm:$0xff] %v8256_v26  ;;  %2619 = vmax.xlane.f32.xlu0 %v2618_v54  ;;  %v8258_v8 = vpop.f32.mrb[66].mxu1  ;;  %v8260_v13 = vpop.f32.mrb[66].mxu0  ;;  %v2615_v54 = vsel %vm2419_vm3, %v8138_v49, -inf  ;;  %v2645_v49 = vsel %vm2419_vm3, %v8132_v14, -inf }
 0x310   :  { %10696 = vst [vmem:[#allocation104_spill] sm:$0xff] %v8258_v8  ;;  %10697 = vst [vmem:[#allocation105_spill] sm:$0xff] %v8260_v13  ;;  %v8264_v10 = vpop.permute.xlu0 %442  ;;  %v8266_v34 = vpop.f32.mrb[67].mxu1 }
 0x311   :  { %10698 = vst [vmem:[#allocation106_spill] sm:$0xff] %v8264_v10  ;;  %10699 = vst [vmem:[#allocation107_spill] sm:$0xff] %v8266_v34  ;;  %2622 = vmax.xlane.f32.xlu1 %v2621_v11  ;;  %v8268_v53 = vpop.f32.mrb[67].mxu0  ;;  %v8278_v23 = vpop.xlane.xlu1 %2445  ;;  %v2642_v11 = vsel %vm2419_vm3, %v8122_v16, -inf  ;;  %v2636_v16 = vsel %vm2419_vm3, %v8130_v32, -inf }
 0x312   :  { %10700 = vst [vmem:[#allocation108_spill] sm:$0xff] %v8268_v53 }
 0x313   :  { %2613 = vmax.xlane.f32.xlu0 %v2612_v47 }
 0x314   :  { %v8274_v8 = vpop.xlane.xlu0 %2427 }
 0x315   :  { %v8276_v26 = vpop.f32.mrb[68].mxu1  ;;  %2616 = vmax.xlane.f32.xlu1 %v2615_v54  ;;  %v8280_v10 = vpop.f32.mrb[68].mxu0 }
 0x316   :  { %10701 = vst [vmem:[#allocation109_spill] sm:$0xff] %v8276_v26  ;;  %10702 = vst [vmem:[#allocation110_spill] sm:$0xff] %v8280_v10  ;;  %v8284_v34 = vpop.f32.mrb[69].mxu0  ;;  %v8286_v53 = vpop.f32.mrb[69].mxu1 }
 0x317   :  { %10703 = vst [vmem:[#allocation111_spill] sm:$0xff] %v8284_v34  ;;  %10704 = vst [vmem:[#allocation112_spill] sm:$0xff] %v8286_v53  ;;  %2643 = vmax.xlane.f32.xlu0 %v2642_v11  ;;  %v8288_v47 = vpop.f32.mrb[70].mxu1  ;;  %v8290_v46 = vpop.f32.mrb[70].mxu0  ;;  %v2639_v11 = vsel %vm2419_vm3, %v8140_v55, -inf }
 0x318   :  { %10705 = vst [vmem:[#allocation113_spill] sm:$0xff] %v8288_v47  ;;  %10706 = vst [vmem:[#allocation114_spill] sm:$0xff] %v8290_v46  ;;  %v8294_v54 = vpop.f32.mrb[71].mxu1  ;;  %v8296_v50 = vpop.f32.mrb[71].mxu0 }
 0x319   :  { %10707 = vst [vmem:[#allocation115_spill] sm:$0xff] %v8294_v54  ;;  %2646 = vmax.xlane.f32.xlu1 %v2645_v49  ;;  %10708 = vst [vmem:[#allocation116_spill] sm:$0xff] %v8296_v50  ;;  %v8300_v13 = vpop.xlane.xlu0 %2451  ;;  %v8302_v19 = vpop.xlane.xlu1 %2454  ;;  %v2657_v49 = vsel %vm2419_vm3, %v8156_v29, -inf }
 0x31a   :  { %10709 = vst [vmem:[#allocation117_spill] sm:$0xff] %v8302_v19 }
 0x31b   :  { %2637 = vmax.xlane.f32.xlu0 %v2636_v16 }
 0x31d   :  { %v8306_v47 = vpop.f32.mrb[72].mxu1  ;;  %2640 = vmax.xlane.f32.xlu1 %v2639_v11  ;;  %v8308_v14 = vpop.f32.mrb[72].mxu0  ;;  %v2666_v11 = vsel %vm2419_vm3, %v8172_v27, -inf  ;;  %v2714_v27 = vsel %vm2419_vm3, %v8222_v61, -inf }
 0x31e   :  { %10710 = vst [vmem:[#allocation118_spill] sm:$0xff] %v8306_v47  ;;  %10711 = vst [vmem:[#allocation119_spill] sm:$0xff] %v8308_v14  ;;  %v8310_v54 = vpop.f32.mrb[73].mxu0  ;;  %v8314_v50 = vpop.f32.mrb[73].mxu1  ;;  %v2630_v47 = vsel %vm2419_vm3, %v8148_v59, -inf }
 0x31f   :  { %10712 = vst [vmem:[#allocation120_spill] sm:$0xff] %v8310_v54  ;;  %10713 = vst [vmem:[#allocation121_spill] sm:$0xff] %v8314_v50  ;;  %2658 = vmax.xlane.f32.xlu0 %v2657_v49  ;;  %v8316_v16 = vpop.f32.mrb[74].mxu0  ;;  %v8318_v32 = vpop.f32.mrb[74].mxu1  ;;  %v2624_v49 = vsel %vm2419_vm3, %v8152_v18, -inf }
 0x320   :  { %10714 = vst [vmem:[#allocation122_spill] sm:$0xff] %v8316_v16  ;;  %10715 = vst [vmem:[#allocation123_spill] sm:$0xff] %v8318_v32  ;;  %v8320_v19 = vpop.f32.mrb[75].mxu0  ;;  %v8326_v14 = vpop.f32.mrb[75].mxu1  ;;  %v2690_v32 = vsel %vm2419_vm3, %v8170_v20, -inf  ;;  %v2627_v20 = vsel %vm2419_vm3, %v8164_v38, -inf }
 0x321   :  { %10716 = vst [vmem:[#allocation124_spill] sm:$0xff] %v8320_v19  ;;  %10717 = vst [vmem:[#allocation125_spill] sm:$0xff] %v8326_v14  ;;  %2631 = vmax.xlane.f32.xlu1 %v2630_v47  ;;  %v8328_v54 = vpop.xlane.xlu0 %2424  ;;  %v8330_v29 = vpop.xlane.xlu1 %2448  ;;  %v2633_v47 = vsel %vm2419_vm3, %v8158_v57, -inf  ;;  %v2654_v14 = vsel %vm2419_vm3, %v8146_v43, -inf  ;;  %v2806_v19 = vsub.f32 %v7906_v2, %v8274_v8  ;;  %v2762_v2 = vsel %vm2419_vm3, %v8280_v10, -inf }
 0x323   :  { %2667 = vmax.xlane.f32.xlu0 %v2666_v11 }
 0x325   :  { %2625 = vmax.xlane.f32.xlu1 %v2624_v49  ;;  %v8336_v16 = vpop.xlane.xlu0 %2439  ;;  %v8338_v50 = vpop.xlane.xlu1 %2442 }
 0x327   :  { %2691 = vmax.xlane.f32.xlu0 %v2690_v32  ;;  %v2708_v32 = vsel %vm2419_vm3, %v8226_v58, -inf  ;;  %v2651_v58 = vsel %vm2419_vm3, %v8162_v28, -inf }
 0x329   :  { %2634 = vmax.xlane.f32.xlu1 %v2633_v47  ;;  %v8344_v11 = vpop.xlane.xlu0 %2433  ;;  %v8348_v49 = vpop.xlane.xlu1 %2436 }
 0x32b   :  { %2715 = vmax.xlane.f32.xlu0 %v2714_v27  ;;  %v2738_v27 = vsel %vm2419_vm3, %v8218_v22, -inf  ;;  %v2936_v22 = vmul.f32 1.442695, %v2806_v19  ;;  %v2814_v19 = vsub.f32 %v7908_v35, %v8300_v13  ;;  %v2812_v35 = vsub.f32 %v7914_v45, %v8278_v23 }
 0x32c   :  { %v2810_v45 = vsub.f32 %v7936_v5, %v8336_v16  ;;  %v2808_v5 = vsub.f32 %v7944_v3, %v8344_v11 }
 0x32d   :  { %2655 = vmax.xlane.f32.xlu1 %v2654_v14  ;;  %v8354_v47 = vpop.xlane.xlu0 %2463  ;;  %v8358_v61 = vpop.xlane.xlu1 %2466  ;;  %v2648_v14 = vsel %vm2419_vm3, %v8154_v0, -inf  ;;  %6802 = vpow2.f32 %v2936_v22  ;;  %v2952_v22 = vmul.f32 1.442695, %v2814_v19  ;;  %v2780_v19 = vsel %vm2419_vm3, %v8286_v53, -inf }
 0x32e   :  { %v2818_v3 = vsub.f32 %v7940_v6, %v8354_v47  ;;  %v2687_v6 = vsel %vm2419_vm3, %v8186_v48, -inf }
 0x32f   :  { %2709 = vmax.xlane.f32.xlu0 %v2708_v32  ;;  %v2732_v32 = vsel %vm2419_vm3, %v8228_v4, -inf }
 0x330   :  { %v2960_v47 = vmul.f32 1.442695, %v2818_v3 }
 0x331   :  { %2628 = vmax.xlane.f32.xlu1 %v2627_v20  ;;  %v8366_v20 = vpop.xlane.xlu0 %2457  ;;  %v8372_v43 = vpop.xlane.xlu1 %2460 }
 0x333   :  { %2739 = vmax.xlane.f32.xlu0 %v2738_v27  ;;  %v2804_v27 = vsub.f32 %v7910_v39, %v8220_v15  ;;  %v2756_v39 = vsel %vm2419_vm3, %v8284_v34, -inf  ;;  %v2663_v15 = vsel %vm2419_vm3, %v8188_v9, -inf }
 0x335   :  { %2649 = vmax.xlane.f32.xlu1 %v2648_v14  ;;  %v2660_v14 = vsel %vm2419_vm3, %v8176_v25, -inf }
 0x337   :  { %2733 = vmax.xlane.f32.xlu0 %v2732_v32  ;;  %v2932_v32 = vmul.f32 1.442695, %v2804_v27  ;;  %v2786_v27 = vsel %vm2419_vm3, %v8276_v26, -inf }
 0x339   :  { %2652 = vmax.xlane.f32.xlu1 %v2651_v58  ;;  %6804 = vpow2.f32 %v2932_v32  ;;  %v2948_v32 = vmul.f32 1.442695, %v2812_v35  ;;  %v2944_v35 = vmul.f32 1.442695, %v2810_v45  ;;  %v2940_v45 = vmul.f32 1.442695, %v2808_v5 }
 0x33a   :  { %6806 = vpow2.f32 %v2952_v22  ;;  %v2684_v22 = vsel %vm2419_vm3, %v8178_v12, -inf  ;;  %v2816_v5 = vsub.f32 %v7946_v36, %v8366_v20 }
 0x33b   :  { %2763 = vmax.xlane.f32.xlu0 %v2762_v2  ;;  %v2669_v2 = vsel %vm2419_vm3, %v8182_v37, -inf  ;;  %6808 = vpow2.f32 %v2948_v32  ;;  %v2693_v32 = vsel %vm2419_vm3, %v8180_v33, -inf }
 0x33c   :  { %v8376_v8 = vpop.xlane.xlu0 %2475  ;;  %6810 = vpow2.f32 %v2944_v35  ;;  %v2956_v3 = vmul.f32 1.442695, %v2816_v5  ;;  %v2672_v5 = vsel %vm2419_vm3, %v8200_v30, -inf }
 0x33d   :  { %2661 = vmax.xlane.f32.xlu1 %v2660_v14  ;;  %6812 = vpow2.f32 %v2940_v45  ;;  %v2678_v45 = vsel %vm2419_vm3, %v8198_v40, -inf  ;;  %v2822_v36 = vsub.f32 %v7970_v56, %v8376_v8 }
 0x33e   :  { %v8382_v4 = vpop.xlane.xlu1 %2478  ;;  %6814 = vpow2.f32 %v2960_v47 }
 0x33f   :  { %2757 = vmax.xlane.f32.xlu0 %v2756_v39  ;;  %6816 = vpow2.f32 %v2956_v3  ;;  %v2968_v56 = vmul.f32 1.442695, %v2822_v36  ;;  %v2681_v3 = vsel %vm2419_vm3, %v8208_v52, -inf }
 0x340   :  { %v8388_v58 = vpop.xlane.xlu0 %2469 }
 0x341   :  { %2670 = vmax.xlane.f32.xlu1 %v2669_v2  ;;  %v8410_v2 = vpop.eup %6802  ;;  %v2820_v8 = vsub.f32 %v7974_v24, %v8388_v58  ;;  %6818 = vpow2.f32 %v2968_v56 }
 0x342   :  { %v8394_v13 = vpop.xlane.xlu1 %2472  ;;  %10718 = vst [vmem:[#allocation126_spill] sm:$0xff] %v8410_v2 }
 0x343   :  { %2787 = vmax.xlane.f32.xlu0 %v2786_v27  ;;  %v8424_v26 = vpop.eup %6804  ;;  %v2964_v36 = vmul.f32 1.442695, %v2820_v8 }
 0x344   :  { %v8400_v39 = vpop.xlane.xlu0 %2499  ;;  %10719 = vst [vmem:[#allocation127_spill] sm:$0xff] %v8424_v26 }
 0x345   :  { %2664 = vmax.xlane.f32.xlu1 %v2663_v15  ;;  %v3194_v15 = vsel %vm2419_vm3, %v8410_v2, 0.0  ;;  %v2830_v24 = vsub.f32 %v7972_v1, %v8400_v39  ;;  %v10726_v2 = vld [vmem:[#allocation82_spill] sm:$0xff]  ;;  %6820 = vpow2.f32 %v2964_v36 }
 0x346   :  { %v8406_v23 = vpop.xlane.xlu1 %2502  ;;  %v2702_v56 = vsel %vm2419_vm3, %v10726_v2, -inf  ;;  %v10727_v1 = vld [vmem:[#allocation30_spill] sm:$0xff] }
 0x347   :  { %2781 = vmax.xlane.f32.xlu0 %v2780_v19  ;;  %v3188_v19 = vsel %vm2419_vm3, %v8424_v26, 0.0  ;;  %v2984_v8 = vmul.f32 1.442695, %v2830_v24  ;;  %v10732_v24 = vld [vmem:[#allocation89_spill] sm:$0xff] }
 0x348   :  { %v8414_v14 = vpop.xlane.xlu0 %2493  ;;  %v2675_v37 = vsel %vm2419_vm3, %v10732_v24, -inf  ;;  %v10738_v24 = vld [vmem:[#allocation85_spill] sm:$0xff] }
 0x349   :  { %2685 = vmax.xlane.f32.xlu1 %v2684_v22  ;;  %v2828_v39 = vsub.f32 %v10727_v1, %v8414_v14  ;;  %6822 = vpow2.f32 %v2984_v8  ;;  %v10733_v1 = vld [vmem:[#allocation31_spill] sm:$0xff]  ;;  %v2696_v8 = vsel %vm2419_vm3, %v10738_v24, -inf }
 0x34a   :  { %v8420_v16 = vpop.xlane.xlu1 %2496 }
 0x34b   :  { %3195 = vadd.xlane.f32.xlu0 %v3194_v15  ;;  %v8440_v15 = vpop.eup %6806  ;;  %v2980_v14 = vmul.f32 1.442695, %v2828_v39 }
 0x34c   :  { %v8428_v27 = vpop.xlane.xlu0 %2487  ;;  %10720 = vst [vmem:[#allocation128_spill] sm:$0xff] %v8440_v15  ;;  %v3218_v11 = vsel %vm2419_vm3, %v8440_v15, 0.0  ;;  %v8454_v53 = vpop.eup %6808 }
 0x34d   :  { %2694 = vmax.xlane.f32.xlu1 %v2693_v32  ;;  %10721 = vst [vmem:[#allocation129_spill] sm:$0xff] %v8454_v53  ;;  %6824 = vpow2.f32 %v2980_v14  ;;  %v10745_v14 = vld [vmem:[#allocation86_spill] sm:$0xff] }
 0x34e   :  { %v8436_v22 = vpop.xlane.xlu1 %2490 }
 0x34f   :  { %3189 = vadd.xlane.f32.xlu0 %v3188_v19  ;;  %v3212_v19 = vsel %vm2419_vm3, %v8454_v53, 0.0 }
 0x350   :  { %v8444_v35 = vpop.xlane.xlu0 %2481 }
 0x351   :  { %2688 = vmax.xlane.f32.xlu1 %v2687_v6 }
 0x352   :  { %v8450_v32 = vpop.xlane.xlu1 %2484 }
 0x353   :  { %3219 = vadd.xlane.f32.xlu0 %v3218_v11  ;;  %v8470_v11 = vpop.eup %6810 }
 0x354   :  { %v8458_v10 = vpop.xlane.xlu0 %2511  ;;  %10722 = vst [vmem:[#allocation130_spill] sm:$0xff] %v8470_v11  ;;  %v3206_v20 = vsel %vm2419_vm3, %v8470_v11, 0.0  ;;  %v8482_v15 = vpop.eup %6812 }
 0x355   :  { %2679 = vmax.xlane.f32.xlu1 %v2678_v45  ;;  %10723 = vst [vmem:[#allocation131_spill] sm:$0xff] %v8482_v15  ;;  %v8494_v11 = vpop.eup %6814 }
 0x356   :  { %v8466_v6 = vpop.xlane.xlu1 %2514  ;;  %10724 = vst [vmem:[#allocation132_spill] sm:$0xff] %v8494_v11 }
 0x357   :  { %3213 = vadd.xlane.f32.xlu0 %v3212_v19  ;;  %v10725_v19 = vld [vmem:[#allocation38_spill] sm:$0xff] }
 0x358   :  { %v2506_v47 = vpop.xlane.xlu0 %2505 }
 0x359   :  { %2673 = vmax.xlane.f32.xlu1 %v2672_v5  ;;  %v3200_v5 = vsel %vm2419_vm3, %v8482_v15, 0.0 }
 0x35a   :  { %v8478_v45 = vpop.xlane.xlu1 %2508 }
 0x35b   :  { %3207 = vadd.xlane.f32.xlu0 %v3206_v20  ;;  %v3230_v20 = vsel %vm2419_vm3, %v8494_v11, 0.0 }
 0x35c   :  { %v2524_v34 = vpop.xlane.xlu0 %2523 }
 0x35d   :  { %2682 = vmax.xlane.f32.xlu1 %v2681_v3  ;;  %v10728_v3 = vld [vmem:[#allocation35_spill] sm:$0xff] }
 0x35e   :  { %v8490_v58 = vpop.xlane.xlu1 %2526 }
 0x35f   :  { %3201 = vadd.xlane.f32.xlu0 %v3200_v5  ;;  %v8510_v5 = vpop.eup %6816 }
 0x360   :  { %v8498_v53 = vpop.xlane.xlu0 %2517  ;;  %10730 = vst [vmem:[#allocation30_spill] sm:$0xff] %v8510_v5  ;;  %v3224_v11 = vsel %vm2419_vm3, %v8510_v5, 0.0  ;;  %v8522_v48 = vpop.eup %6818 }
 0x361   :  { %2703 = vmax.xlane.f32.xlu1 %v2702_v56  ;;  %v2824_v56 = vsub.f32 %v10733_v1, %v8444_v35  ;;  %10735 = vst [vmem:[#allocation31_spill] sm:$0xff] %v8522_v48  ;;  %v10739_v35 = vld [vmem:[#allocation32_spill] sm:$0xff]  ;;  %v3242_v2 = vsel %vm2419_vm3, %v8522_v48, 0.0 }
 0x362   :  { %v8506_v15 = vpop.xlane.xlu1 %2520 }
 0x363   :  { %10729 = vst [vmem:[#allocation38_spill] sm:$0xff] %v8506_v15  ;;  %3231 = vadd.xlane.f32.xlu0 %v3230_v20  ;;  %v2972_v39 = vmul.f32 1.442695, %v2824_v56  ;;  %v8537_v20 = vpop.eup %6820 }
 0x364   :  { %v2548_v36 = vpop.xlane.xlu0 %2547  ;;  %10742 = vst [vmem:[#allocation134_spill] sm:$0xff] %v8537_v20  ;;  %v8550_v1 = vpop.eup %6822 }
 0x365   :  { %2676 = vmax.xlane.f32.xlu1 %v2675_v37  ;;  %v2832_v37 = vsub.f32 %v10739_v35, %v2506_v47  ;;  %v2705_v47 = vsel %vm2419_vm3, %v10745_v14, -inf  ;;  %6826 = vpow2.f32 %v2972_v39  ;;  %v10746_v35 = vld [vmem:[#allocation34_spill] sm:$0xff] }
 0x366   :  { %v8518_v26 = vpop.xlane.xlu1 %2550  ;;  %10748 = vst [vmem:[#allocation34_spill] sm:$0xff] %v8550_v1 }
 0x367   :  { %10734 = vst [vmem:[#allocation35_spill] sm:$0xff] %v8518_v26  ;;  %3225 = vadd.xlane.f32.xlu0 %v3224_v11  ;;  %v10743_v11 = vld [vmem:[#allocation40_spill] sm:$0xff]  ;;  %v2988_v56 = vmul.f32 1.442695, %v2832_v37  ;;  %v10750_v37 = vld [vmem:[#allocation33_spill] sm:$0xff] }
 0x368   :  { %v8526_v15 = vpop.xlane.xlu0 %2541  ;;  %v10749_v26 = vld [vmem:[#allocation88_spill] sm:$0xff]  ;;  %v2846_v14 = vsub.f32 %v10750_v37, %v2548_v36  ;;  %v10756_v36 = vld [vmem:[#allocation43_spill] sm:$0xff]  ;;  %v10757_v37 = vld [vmem:[#allocation41_spill] sm:$0xff] }
 0x369   :  { %10737 = vst [vmem:[#allocation133_spill] sm:$0xff] %v8526_v15  ;;  %2697 = vmax.xlane.f32.xlu1 %v2696_v8  ;;  %v2838_v8 = vsub.f32 %v10746_v35, %v2524_v34  ;;  %v3236_v15 = vsel %vm2419_vm3, %v8537_v20, 0.0  ;;  %6828 = vpow2.f32 %v2988_v56  ;;  %v8559_v35 = vpop.eup %6824 }
 0x36a   :  { %v8533_v5 = vpop.xlane.xlu1 %2544  ;;  %10752 = vst [vmem:[#allocation135_spill] sm:$0xff] %v8559_v35  ;;  %v3260_v52 = vsel %vm2419_vm3, %v8559_v35, 0.0 }
 0x36b   :  { %10741 = vst [vmem:[#allocation32_spill] sm:$0xff] %v8533_v5  ;;  %3243 = vadd.xlane.f32.xlu0 %v3242_v2  ;;  %v2699_v5 = vsel %vm2419_vm3, %v10749_v26, -inf  ;;  %v3000_v39 = vmul.f32 1.442695, %v2838_v8  ;;  %v3016_v8 = vmul.f32 1.442695, %v2846_v14 }
 0x36c   :  { %v8541_v33 = vpop.xlane.xlu0 %2535 }
 0x36d   :  { %10744 = vst [vmem:[#allocation40_spill] sm:$0xff] %v8541_v33  ;;  %2706 = vmax.xlane.f32.xlu1 %v2705_v47  ;;  %v3266_v47 = vsel %vm2419_vm3, %v8550_v1, 0.0  ;;  %v10755_v33 = vld [vmem:[#allocation95_spill] sm:$0xff]  ;;  %6830 = vpow2.f32 %v3000_v39  ;;  %v10761_v39 = vld [vmem:[#allocation96_spill] sm:$0xff] }
 0x36e   :  { %v2539_v48 = vpop.xlane.xlu1 %2538  ;;  %v2717_v56 = vsel %vm2419_vm3, %v10755_v33, -inf  ;;  %v2711_v14 = vsel %vm2419_vm3, %v10761_v39, -inf  ;;  %6832 = vpow2.f32 %v3016_v8 }
 0x36f   :  { %3237 = vadd.xlane.f32.xlu0 %v3236_v15  ;;  %v8574_v20 = vpop.eup %6826 }
 0x370   :  { %v2530_v2 = vpop.xlane.xlu0 %2529  ;;  %10759 = vst [vmem:[#allocation41_spill] sm:$0xff] %v8574_v20  ;;  %v3248_v35 = vsel %vm2419_vm3, %v8574_v20, 0.0 }
 0x371   :  { %2700 = vmax.xlane.f32.xlu1 %v2699_v5  ;;  %v2840_v5 = vsub.f32 %v10756_v36, %v2530_v2  ;;  %v10762_v2 = vld [vmem:[#allocation46_spill] sm:$0xff] }
 0x372   :  { %v8555_v34 = vpop.xlane.xlu1 %2532  ;;  %v2843_v36 = vsub.f32 %v10762_v2, %v2539_v48  ;;  %v10767_v48 = vld [vmem:[#allocation44_spill] sm:$0xff] }
 0x373   :  { %10751 = vst [vmem:[#allocation33_spill] sm:$0xff] %v8555_v34  ;;  %3267 = vadd.xlane.f32.xlu0 %v3266_v47  ;;  %v3004_v26 = vmul.f32 1.442695, %v2840_v5  ;;  %v8585_v24 = vpop.eup %6828 }
 0x374   :  { %v8563_v15 = vpop.xlane.xlu0 %2559  ;;  %10764 = vst [vmem:[#allocation137_spill] sm:$0xff] %v8585_v24  ;;  %v3010_v8 = vmul.f32 1.442695, %v2843_v36  ;;  %v3272_v2 = vsel %vm2419_vm3, %v8585_v24, 0.0 }
 0x375   :  { %10754 = vst [vmem:[#allocation136_spill] sm:$0xff] %v8563_v15  ;;  %2718 = vmax.xlane.f32.xlu1 %v2717_v56  ;;  %6834 = vpow2.f32 %v3004_v26 }
 0x376   :  { %v8570_v1 = vpop.xlane.xlu1 %2562  ;;  %6836 = vpow2.f32 %v3010_v8  ;;  %v2726_v8 = vsel %vm2419_vm3, %v8250_v41, -inf }
 0x377   :  { %10758 = vst [vmem:[#allocation43_spill] sm:$0xff] %v8570_v1  ;;  %3261 = vadd.xlane.f32.xlu0 %v3260_v52  ;;  %v10766_v1 = vld [vmem:[#allocation94_spill] sm:$0xff]  ;;  %v8596_v20 = vpop.eup %6830 }
 0x378   :  { %v2554_v33 = vpop.xlane.xlu0 %2553  ;;  %v2741_v39 = vsel %vm2419_vm3, %v10766_v1, -inf  ;;  %10769 = vst [vmem:[#allocation138_spill] sm:$0xff] %v8596_v20  ;;  %v3290_v15 = vsel %vm2419_vm3, %v8596_v20, 0.0  ;;  %v8611_v34 = vpop.eup %6832 }
 0x379   :  { %2712 = vmax.xlane.f32.xlu1 %v2711_v14  ;;  %v2848_v5 = vsub.f32 %v10767_v48, %v2554_v33  ;;  %v10773_v33 = vld [vmem:[#allocation50_spill] sm:$0xff]  ;;  %v3314_v1 = vsel %vm2419_vm3, %v8611_v34, 0.0 }
 0x37a   :  { %v8581_v56 = vpop.xlane.xlu1 %2556  ;;  %10776 = vst [vmem:[#allocation50_spill] sm:$0xff] %v8611_v34 }
 0x37b   :  { %10763 = vst [vmem:[#allocation46_spill] sm:$0xff] %v8581_v56  ;;  %3249 = vadd.xlane.f32.xlu0 %v3248_v35  ;;  %v10772_v56 = vld [vmem:[#allocation97_spill] sm:$0xff]  ;;  %v3020_v26 = vmul.f32 1.442695, %v2848_v5 }
 0x37c   :  { %v2572_v52 = vpop.xlane.xlu0 %2571  ;;  %v2735_v36 = vsel %vm2419_vm3, %v10772_v56, -inf  ;;  %v10778_v5 = vld [vmem:[#allocation49_spill] sm:$0xff] }
 0x37d   :  { %2742 = vmax.xlane.f32.xlu1 %v2741_v39  ;;  %v2854_v39 = vsub.f32 %v10773_v33, %v2572_v52  ;;  %6838 = vpow2.f32 %v3020_v26 }
 0x37e   :  { %v8592_v14 = vpop.xlane.xlu1 %2574 }
 0x37f   :  { %10768 = vst [vmem:[#allocation44_spill] sm:$0xff] %v8592_v14  ;;  %3273 = vadd.xlane.f32.xlu0 %v3272_v2  ;;  %v3032_v52 = vmul.f32 1.442695, %v2854_v39  ;;  %v8622_v20 = vpop.eup %6834  ;;  %v10783_v39 = vld [vmem:[#allocation52_spill] sm:$0xff]  ;;  %v10792_v14 = vld [vmem:[#allocation99_spill] sm:$0xff] }
 0x380   :  { %v8600_v35 = vpop.xlane.xlu0 %2565  ;;  %10780 = vst [vmem:[#allocation140_spill] sm:$0xff] %v8622_v20  ;;  %v8633_v34 = vpop.eup %6836 }
 0x381   :  { %10771 = vst [vmem:[#allocation139_spill] sm:$0xff] %v8600_v35  ;;  %2736 = vmax.xlane.f32.xlu1 %v2735_v36  ;;  %6840 = vpow2.f32 %v3032_v52  ;;  %10785 = vst [vmem:[#allocation141_spill] sm:$0xff] %v8633_v34 }
 0x382   :  { %v8607_v24 = vpop.xlane.xlu1 %2568 }
 0x383   :  { %10775 = vst [vmem:[#allocation97_spill] sm:$0xff] %v8607_v24  ;;  %3291 = vadd.xlane.f32.xlu0 %v3290_v15  ;;  %v10782_v24 = vld [vmem:[#allocation102_spill] sm:$0xff] }
 0x384   :  { %v2596_v47 = vpop.xlane.xlu0 %2595  ;;  %v2720_v2 = vsel %vm2419_vm3, %v10782_v24, -inf }
 0x385   :  { %v2862_v33 = vsub.f32 %v10778_v5, %v2596_v47  ;;  %2727 = vmax.xlane.f32.xlu1 %v2726_v8  ;;  %v3296_v5 = vsel %vm2419_vm3, %v8622_v20, 0.0 }
 0x386   :  { %v8618_v36 = vpop.xlane.xlu1 %2598 }
 0x387   :  { %10779 = vst [vmem:[#allocation49_spill] sm:$0xff] %v8618_v36  ;;  %3315 = vadd.xlane.f32.xlu0 %v3314_v1  ;;  %v3048_v26 = vmul.f32 1.442695, %v2862_v33  ;;  %v10788_v36 = vld [vmem:[#allocation105_spill] sm:$0xff] }
 0x388   :  { %v2590_v15 = vpop.xlane.xlu0 %2589  ;;  %v2729_v52 = vsel %vm2419_vm3, %v10788_v36, -inf  ;;  %v10793_v36 = vld [vmem:[#allocation59_spill] sm:$0xff] }
 0x389   :  { %v2860_v47 = vsub.f32 %v10783_v39, %v2590_v15  ;;  %2721 = vmax.xlane.f32.xlu1 %v2720_v2  ;;  %6842 = vpow2.f32 %v3048_v26  ;;  %v3305_v15 = vsel %vm2419_vm3, %v8633_v34, 0.0  ;;  %v8645_v39 = vpop.eup %6838 }
 0x38a   :  { %v8629_v8 = vpop.xlane.xlu1 %2592  ;;  %10790 = vst [vmem:[#allocation144_spill] sm:$0xff] %v8645_v39 }
 0x38b   :  { %10784 = vst [vmem:[#allocation52_spill] sm:$0xff] %v8629_v8  ;;  %3297 = vadd.xlane.f32.xlu0 %v3296_v5  ;;  %v3044_v33 = vmul.f32 1.442695, %v2860_v47  ;;  %v8656_v34 = vpop.eup %6840 }
 0x38c   :  { %v8637_v1 = vpop.xlane.xlu0 %2583  ;;  %10795 = vst [vmem:[#allocation145_spill] sm:$0xff] %v8656_v34 }
 0x38d   :  { %10787 = vst [vmem:[#allocation142_spill] sm:$0xff] %v8637_v1  ;;  %2730 = vmax.xlane.f32.xlu1 %v2729_v52  ;;  %v2750_v1 = vsel %vm2419_vm3, %v10792_v14, -inf  ;;  %6844 = vpow2.f32 %v3044_v33  ;;  %v3320_v52 = vsel %vm2419_vm3, %v8645_v39, 0.0  ;;  %v10798_v33 = vld [vmem:[#allocation57_spill] sm:$0xff] }
 0x38e   :  { %v8641_v2 = vpop.xlane.xlu1 %2586 }
 0x38f   :  { %10789 = vst [vmem:[#allocation143_spill] sm:$0xff] %v8641_v2  ;;  %3306 = vadd.xlane.f32.xlu0 %v3305_v15  ;;  %v10797_v2 = vld [vmem:[#allocation108_spill] sm:$0xff] }
 0x390   :  { %v2578_v5 = vpop.xlane.xlu0 %2577  ;;  %v2723_v20 = vsel %vm2419_vm3, %v10797_v2, -inf }
 0x391   :  { %v2856_v26 = vsub.f32 %v10793_v36, %v2578_v5  ;;  %2751 = vmax.xlane.f32.xlu1 %v2750_v1  ;;  %v3338_v5 = vsel %vm2419_vm3, %v8656_v34, 0.0 }
 0x392   :  { %v8652_v47 = vpop.xlane.xlu1 %2580 }
 0x393   :  { %10794 = vst [vmem:[#allocation59_spill] sm:$0xff] %v8652_v47  ;;  %v3036_v8 = vmul.f32 1.442695, %v2856_v26  ;;  %3321 = vadd.xlane.f32.xlu0 %v3320_v52  ;;  %v8667_v39 = vpop.eup %6842  ;;  %v10802_v47 = vld [vmem:[#allocation103_spill] sm:$0xff] }
 0x394   :  { %v2608_v15 = vpop.xlane.xlu0 %2607  ;;  %10800 = vst [vmem:[#allocation146_spill] sm:$0xff] %v8667_v39  ;;  %v2744_v48 = vsel %vm2419_vm3, %v10802_v47, -inf  ;;  %v10812_v47 = vld [vmem:[#allocation24_spill] sm:$0xff] }
 0x395   :  { %6846 = vpow2.f32 %v3036_v8  ;;  %v2866_v36 = vsub.f32 %v10798_v33, %v2608_v15  ;;  %2724 = vmax.xlane.f32.xlu1 %v2723_v20  ;;  %v10803_v8 = vld [vmem:[#allocation60_spill] sm:$0xff]  ;;  %v3362_v33 = vsel %vm2419_vm3, %v8667_v39, 0.0 }
 0x396   :  { %v8663_v1 = vpop.xlane.xlu1 %2610 }
 0x397   :  { %10799 = vst [vmem:[#allocation57_spill] sm:$0xff] %v8663_v1  ;;  %v3056_v26 = vmul.f32 1.442695, %v2866_v36  ;;  %3339 = vadd.xlane.f32.xlu0 %v3338_v5  ;;  %v8678_v34 = vpop.eup %6844  ;;  %v10807_v1 = vld [vmem:[#allocation104_spill] sm:$0xff] }
 0x398   :  { %v2602_v52 = vpop.xlane.xlu0 %2601  ;;  %10805 = vst [vmem:[#allocation147_spill] sm:$0xff] %v8678_v34  ;;  %v2753_v14 = vsel %vm2419_vm3, %v10807_v1, -inf  ;;  %v10824_v1 = vld [vmem:[#allocation22_spill] sm:$0xff] }
 0x399   :  { %6848 = vpow2.f32 %v3056_v26  ;;  %v2864_v15 = vsub.f32 %v10803_v8, %v2602_v52  ;;  %2745 = vmax.xlane.f32.xlu1 %v2744_v48  ;;  %v10808_v26 = vld [vmem:[#allocation66_spill] sm:$0xff]  ;;  %v3356_v8 = vsel %vm2419_vm3, %v8678_v34, 0.0 }
 0x39a   :  { %v8674_v20 = vpop.xlane.xlu1 %2604 }
 0x39b   :  { %10804 = vst [vmem:[#allocation60_spill] sm:$0xff] %v8674_v20  ;;  %v3052_v36 = vmul.f32 1.442695, %v2864_v15  ;;  %3363 = vadd.xlane.f32.xlu0 %v3362_v33  ;;  %v10811_v15 = vld [vmem:[#allocation100_spill] sm:$0xff] }
 0x39c   :  { %v2620_v5 = vpop.xlane.xlu0 %2619  ;;  %v2807_v24 = vsub.f32 %v10812_v47, %v10811_v15 }
 0x39d   :  { %6850 = vpow2.f32 %v3052_v36  ;;  %v2870_v52 = vsub.f32 %v10808_v26, %v2620_v5  ;;  %2754 = vmax.xlane.f32.xlu1 %v2753_v14  ;;  %v10815_v36 = vld [vmem:[#allocation107_spill] sm:$0xff] }
 0x39e   :  { %v8685_v48 = vpop.xlane.xlu1 %2622  ;;  %v2747_v14 = vsel %vm2419_vm3, %v10815_v36, -inf  ;;  %v10816_v5 = vld [vmem:[#allocation23_spill] sm:$0xff]  ;;  %v2938_v15 = vmul.f32 1.442695, %v2807_v24  ;;  %v10823_v24 = vld [vmem:[#allocation117_spill] sm:$0xff] }
 0x39f   :  { %10809 = vst [vmem:[#allocation66_spill] sm:$0xff] %v8685_v48  ;;  %v8689_v39 = vpop.eup %6846  ;;  %v3064_v35 = vmul.f32 1.442695, %v2870_v52  ;;  %3357 = vadd.xlane.f32.xlu0 %v3356_v8  ;;  %v2805_v26 = vsub.f32 %v10816_v5, %v8328_v54  ;;  %v2815_v20 = vsub.f32 %v10824_v1, %v10823_v24  ;;  %v10829_v24 = vld [vmem:[#allocation26_spill] sm:$0xff] }
 0x3a0   :  { %10810 = vst [vmem:[#allocation148_spill] sm:$0xff] %v8689_v39  ;;  %v8695_v2 = vpop.xlane.xlu0 %2613  ;;  %v3344_v47 = vsel %vm2419_vm3, %v8689_v39, 0.0 }
 0x3a1   :  { %10814 = vst [vmem:[#allocation100_spill] sm:$0xff] %v8695_v2  ;;  %6852 = vpow2.f32 %v3064_v35  ;;  %2748 = vmax.xlane.f32.xlu1 %v2747_v14  ;;  %v2765_v35 = vsel %vm2419_vm3, %v8290_v46, -inf  ;;  %v10820_v14 = vld [vmem:[#allocation65_spill] sm:$0xff]  ;;  %v2934_v54 = vmul.f32 1.442695, %v2805_v26 }
 0x3a2   :  { %v8701_v34 = vpop.xlane.xlu1 %2616  ;;  %6854 = vpow2.f32 %v2938_v15 }
 0x3a3   :  { %10817 = vst [vmem:[#allocation24_spill] sm:$0xff] %v8701_v34  ;;  %v8705_v52 = vpop.eup %6848  ;;  %3345 = vadd.xlane.f32.xlu0 %v3344_v47  ;;  %v10825_v34 = vld [vmem:[#allocation69_spill] sm:$0xff] }
 0x3a4   :  { %10818 = vst [vmem:[#allocation107_spill] sm:$0xff] %v8705_v52  ;;  %v2644_v48 = vpop.xlane.xlu0 %2643  ;;  %v3374_v39 = vsel %vm2419_vm3, %v8705_v52, 0.0 }
 0x3a5   :  { %v2878_v33 = vsub.f32 %v10820_v14, %v2644_v48  ;;  %2766 = vmax.xlane.f32.xlu1 %v2765_v35  ;;  %v10826_v48 = vld [vmem:[#allocation116_spill] sm:$0xff] }
 0x3a6   :  { %v8712_v5 = vpop.xlane.xlu1 %2646  ;;  %v2759_v26 = vsel %vm2419_vm3, %v10826_v48, -inf  ;;  %v10827_v35 = vld [vmem:[#allocation68_spill] sm:$0xff] }
 0x3a7   :  { %10821 = vst [vmem:[#allocation23_spill] sm:$0xff] %v8712_v5  ;;  %v8716_v2 = vpop.eup %6850  ;;  %v3080_v47 = vmul.f32 1.442695, %v2878_v33  ;;  %3375 = vadd.xlane.f32.xlu0 %v3374_v39  ;;  %v2954_v33 = vmul.f32 1.442695, %v2815_v20  ;;  %v2813_v39 = vsub.f32 %v10829_v24, %v8330_v29  ;;  %v10834_v24 = vld [vmem:[#allocation115_spill] sm:$0xff] }
 0x3a8   :  { %10822 = vst [vmem:[#allocation65_spill] sm:$0xff] %v8716_v2  ;;  %v2638_v46 = vpop.xlane.xlu0 %2637  ;;  %v3368_v15 = vsel %vm2419_vm3, %v8716_v2, 0.0 }
 0x3a9   :  { %6856 = vpow2.f32 %v3080_v47  ;;  %v2876_v14 = vsub.f32 %v10827_v35, %v2638_v46  ;;  %2760 = vmax.xlane.f32.xlu1 %v2759_v26  ;;  %v10831_v46 = vld [vmem:[#allocation113_spill] sm:$0xff]  ;;  %v2950_v20 = vmul.f32 1.442695, %v2813_v39 }
 0x3aa   :  { %6858 = vpow2.f32 %v2934_v54  ;;  %v8725_v52 = vpop.xlane.xlu1 %2640  ;;  %v2789_v54 = vsel %vm2419_vm3, %v10831_v46, -inf  ;;  %v10832_v26 = vld [vmem:[#allocation25_spill] sm:$0xff] }
 0x3ab   :  { %v8729_v1 = vpop.eup %6852  ;;  %v3076_v8 = vmul.f32 1.442695, %v2876_v14  ;;  %3369 = vadd.xlane.f32.xlu0 %v3368_v15  ;;  %v2811_v35 = vsub.f32 %v10832_v26, %v8338_v50 }
 0x3ac   :  { %10828 = vst [vmem:[#allocation117_spill] sm:$0xff] %v8729_v1  ;;  %v8735_v47 = vpop.xlane.xlu0 %2658  ;;  %v3386_v29 = vsel %vm2419_vm3, %v8729_v1, 0.0 }
 0x3ad   :  { %10830 = vst [vmem:[#allocation22_spill] sm:$0xff] %v8735_v47  ;;  %6860 = vpow2.f32 %v3076_v8  ;;  %2790 = vmax.xlane.f32.xlu1 %v2789_v54  ;;  %v2783_v8 = vsel %vm2419_vm3, %v10834_v24, -inf  ;;  %v8751_v54 = vpop.eup %6854  ;;  %v2946_v50 = vmul.f32 1.442695, %v2811_v35 }
 0x3ae   :  { %v8741_v2 = vpop.xlane.xlu1 %2631  ;;  %6862 = vpow2.f32 %v2954_v33  ;;  %v10836_v33 = vld [vmem:[#allocation28_spill] sm:$0xff] }
 0x3af   :  { %3387 = vadd.xlane.f32.xlu0 %v3386_v29  ;;  %6864 = vpow2.f32 %v2950_v20  ;;  %v2809_v39 = vsub.f32 %v10836_v33, %v8348_v49 }
 0x3b0   :  { %v8747_v15 = vpop.xlane.xlu0 %2667  ;;  %6866 = vpow2.f32 %v2946_v50 }
 0x3b1   :  { %10833 = vst [vmem:[#allocation69_spill] sm:$0xff] %v8747_v15  ;;  %2784 = vmax.xlane.f32.xlu1 %v2783_v8  ;;  %v3197_v8 = vsel %vm2419_vm3, %v8751_v54, 0.0  ;;  %v2942_v49 = vmul.f32 1.442695, %v2809_v39 }
 0x3b2   :  { %v2626_v26 = vpop.xlane.xlu1 %2625 }
 0x3b3   :  { %v8753_v5 = vpop.eup %6856  ;;  %v2872_v1 = vsub.f32 %v8152_v18, %v2626_v26  ;;  %v10840_v18 = vld [vmem:[#allocation27_spill] sm:$0xff] }
 0x3b4   :  { %10835 = vst [vmem:[#allocation116_spill] sm:$0xff] %v8753_v5  ;;  %v8758_v14 = vpop.eup %6858  ;;  %v8760_v29 = vpop.xlane.xlu0 %2691  ;;  %v3410_v15 = vsel %vm2419_vm3, %v8753_v5, 0.0  ;;  %v2819_v26 = vsub.f32 %v10840_v18, %v8358_v61 }
 0x3b5   :  { %10837 = vst [vmem:[#allocation68_spill] sm:$0xff] %v8760_v29  ;;  %v3068_v35 = vmul.f32 1.442695, %v2872_v1  ;;  %3411 = vadd.xlane.f32.xlu0 %v3410_v15  ;;  %3198 = vadd.xlane.f32.xlu1 %v3197_v8  ;;  %v3191_v15 = vsel %vm2419_vm3, %v8758_v14, 0.0  ;;  %v10842_v8 = vld [vmem:[#allocation29_spill] sm:$0xff] }
 0x3b6   :  { %v8766_v20 = vpop.xlane.xlu1 %2634  ;;  %v2962_v61 = vmul.f32 1.442695, %v2819_v26 }
 0x3b7   :  { %10838 = vst [vmem:[#allocation26_spill] sm:$0xff] %v8766_v20  ;;  %v8768_v47 = vpop.eup %6860  ;;  %6868 = vpow2.f32 %v3068_v35  ;;  %v2817_v35 = vsub.f32 %v10842_v8, %v8372_v43 }
 0x3b8   :  { %10839 = vst [vmem:[#allocation113_spill] sm:$0xff] %v8768_v47  ;;  %v8774_v5 = vpop.xlane.xlu0 %2715  ;;  %v3404_v1 = vsel %vm2419_vm3, %v8768_v47, 0.0  ;;  %v8780_v50 = vpop.eup %6862  ;;  %6870 = vpow2.f32 %v2942_v49 }
 0x3b9   :  { %10841 = vst [vmem:[#allocation25_spill] sm:$0xff] %v8774_v5  ;;  %3405 = vadd.xlane.f32.xlu0 %v3404_v1  ;;  %3192 = vadd.xlane.f32.xlu1 %v3191_v15  ;;  %v3221_v33 = vsel %vm2419_vm3, %v8780_v50, 0.0  ;;  %v8790_v47 = vpop.eup %6864  ;;  %6872 = vpow2.f32 %v2962_v61  ;;  %v2958_v1 = vmul.f32 1.442695, %v2817_v35 }
 0x3ba   :  { %v8782_v39 = vpop.xlane.xlu1 %2655  ;;  %v8796_v49 = vpop.eup %6866  ;;  %v3215_v43 = vsel %vm2419_vm3, %v8790_v47, 0.0 }
 0x3bb   :  { %6874 = vpow2.f32 %v2958_v1 }
 0x3bc   :  { %v8786_v18 = vpop.xlane.xlu0 %2709 }
 0x3bd   :  { %10843 = vst [vmem:[#allocation115_spill] sm:$0xff] %v8786_v18  ;;  %3222 = vadd.xlane.f32.xlu1 %v3221_v33  ;;  %v10846_v33 = vsub.f32 %v7982_v60, %v8382_v4  ;;  %v10848_v4 = vsub.f32 %v7984_v62, %v8394_v13 }
 0x3be   :  { %v8792_v5 = vpop.xlane.xlu1 %2628 }
 0x3bf   :  { %v2970_v18 = vmul.f32 1.442695, %v10846_v33  ;;  %v2966_v33 = vmul.f32 1.442695, %v10848_v4 }
 0x3c0   :  { %v8798_v26 = vpop.xlane.xlu0 %2739 }
 0x3c1   :  { %10844 = vst [vmem:[#allocation28_spill] sm:$0xff] %v8798_v26  ;;  %v8802_v8 = vpop.eup %6868  ;;  %3216 = vadd.xlane.f32.xlu1 %v3215_v43  ;;  %v3209_v26 = vsel %vm2419_vm3, %v8796_v49, 0.0  ;;  %6876 = vpow2.f32 %v2970_v18  ;;  %v10851_v18 = vsub.f32 %v7980_v17, %v8406_v23 }
 0x3c2   :  { %10845 = vst [vmem:[#allocation27_spill] sm:$0xff] %v8802_v8  ;;  %v2650_v29 = vpop.xlane.xlu1 %2649  ;;  %v3392_v61 = vsel %vm2419_vm3, %v8802_v8, 0.0  ;;  %v8814_v20 = vpop.eup %6870 }
 0x3c3   :  { %v2880_v35 = vsub.f32 %v8154_v0, %v2650_v29  ;;  %3393 = vadd.xlane.f32.xlu0 %v3392_v61  ;;  %v3203_v1 = vsel %vm2419_vm3, %v8814_v20, 0.0  ;;  %v8827_v61 = vpop.eup %6872  ;;  %v2986_v62 = vmul.f32 1.442695, %v10851_v18 }
 0x3c4   :  { %v8810_v15 = vpop.xlane.xlu0 %2733 }
 0x3c5   :  { %10847 = vst [vmem:[#allocation29_spill] sm:$0xff] %v8810_v15  ;;  %v3084_v43 = vmul.f32 1.442695, %v2880_v35  ;;  %3210 = vadd.xlane.f32.xlu1 %v3209_v26  ;;  %v8840_v4 = vpop.eup %6874 }
 0x3c6   :  { %v8816_v60 = vpop.xlane.xlu1 %2652  ;;  %v3227_v18 = vsel %vm2419_vm3, %v8840_v4, 0.0 }
 0x3c7   :  { %6878 = vpow2.f32 %v3084_v43  ;;  %v3233_v43 = vsel %vm2419_vm3, %v8827_v61, 0.0 }
 0x3c8   :  { %v8823_v29 = vpop.xlane.xlu0 %2763  ;;  %6880 = vpow2.f32 %v2966_v33  ;;  %v10853_v33 = vsub.f32 %v7986_v31, %v8420_v16  ;;  %v10857_v31 = vsub.f32 %v8004_v63, %v8428_v27  ;;  %v10860_v63 = vsub.f32 %v8014_v21, %v8436_v22 }
 0x3c9   :  { %10849 = vst [vmem:[#allocation149_spill] sm:$0xff] %v8823_v29  ;;  %3204 = vadd.xlane.f32.xlu1 %v3203_v1  ;;  %6882 = vpow2.f32 %v2986_v62 }
 0x3ca   :  { %v8829_v26 = vpop.xlane.xlu1 %2661  ;;  %v2982_v1 = vmul.f32 1.442695, %v10853_v33  ;;  %v2976_v16 = vmul.f32 1.442695, %v10857_v31  ;;  %v2978_v27 = vmul.f32 1.442695, %v10860_v63 }
 0x3cb   :  { %10850 = vst [vmem:[#allocation150_spill] sm:$0xff] %v8829_v26  ;;  %v8847_v17 = vpop.eup %6876 }
 0x3cc   :  { %v8836_v35 = vpop.xlane.xlu0 %2757  ;;  %6884 = vpow2.f32 %v2982_v1 }
 0x3cd   :  { %10852 = vst [vmem:[#allocation151_spill] sm:$0xff] %v8836_v35  ;;  %3234 = vadd.xlane.f32.xlu1 %v3233_v43  ;;  %6886 = vpow2.f32 %v2976_v16  ;;  %v10861_v16 = vsub.f32 %v8002_v42, %v8458_v10 }
 0x3ce   :  { %v8842_v0 = vpop.xlane.xlu1 %2670  ;;  %6888 = vpow2.f32 %v2978_v27 }
 0x3d0   :  { %v8849_v23 = vpop.xlane.xlu0 %2787 }
 0x3d1   :  { %10854 = vst [vmem:[#allocation152_spill] sm:$0xff] %v8849_v23  ;;  %v8853_v13 = vpop.eup %6878  ;;  %3228 = vadd.xlane.f32.xlu1 %v3227_v18  ;;  %v3245_v23 = vsel %vm2419_vm3, %v8847_v17, 0.0 }
 0x3d2   :  { %10855 = vst [vmem:[#allocation153_spill] sm:$0xff] %v8853_v13  ;;  %v8855_v8 = vpop.xlane.xlu1 %2664  ;;  %v3416_v43 = vsel %vm2419_vm3, %v8853_v13, 0.0  ;;  %v8868_v18 = vpop.eup %6880  ;;  %v10518_v13 = vmov 0.0  }
 0x3d3   :  { %10856 = vst [vmem:[#allocation154_spill] sm:$0xff] %v8855_v8  ;;  %3417 = vadd.xlane.f32.xlu0 %v3416_v43  ;;  %6145 = vmatprep.subr.bf16.mxu0 %v10518_v13  ;;  %v8883_v31 = vpop.eup %6882 }
 0x3d4   :  { %v8864_v33 = vpop.xlane.xlu0 %2781  ;;  %6157 = vmatprep.subr.bf16.mxu1 %v10518_v13  ;;  %v2992_v13 = vmul.f32 1.442695, %v10861_v16  ;;  %v3269_v22 = vsel %vm2419_vm3, %v8883_v31, 0.0 }
 0x3d5   :  { %10858 = vst [vmem:[#allocation155_spill] sm:$0xff] %v8864_v33  ;;  %3246 = vadd.xlane.f32.xlu1 %v3245_v23  ;;  %v3239_v23 = vsel %vm2419_vm3, %v8868_v18, 0.0 }
 0x3d6   :  { %v8870_v29 = vpop.xlane.xlu1 %2685  ;;  %v8894_v63 = vpop.eup %6884  ;;  %6890 = vpow2.f32 %v2992_v13 }
 0x3d7   :  { %10859 = vst [vmem:[#allocation156_spill] sm:$0xff] %v8870_v29  ;;  %v3263_v42 = vsel %vm2419_vm3, %v8894_v63, 0.0  ;;  %v8905_v10 = vpop.eup %6886 }
 0x3d8   :  { %v8879_v43 = vpop.xlane.xlu0 %3195  ;;  %10863 = vst [vmem:[#allocation157_spill] sm:$0xff] %v8905_v10  ;;  %v3254_v13 = vsel %vm2419_vm3, %v8905_v10, 0.0  ;;  %v10877_v10 = vld [vmem:[#allocation39_spill] sm:$0xff] }
 0x3d9   :  { %3240 = vadd.xlane.f32.xlu1 %v3239_v23  ;;  %v10862_v23 = vsub.f32 %v8016_v44, %v8450_v32 }
 0x3da   :  { %v8885_v62 = vpop.xlane.xlu1 %2694 }
 0x3db   :  { %v2974_v33 = vmul.f32 1.442695, %v10862_v23  ;;  %v8918_v23 = vpop.eup %6888 }
 0x3dc   :  { %v8890_v21 = vpop.xlane.xlu0 %3189  ;;  %10866 = vst [vmem:[#allocation159_spill] sm:$0xff] %v8918_v23 }
 0x3dd   :  { %3270 = vadd.xlane.f32.xlu1 %v3269_v22  ;;  %6892 = vpow2.f32 %v2974_v33  ;;  %v10865_v22 = vsub.f32 %v8012_v7, %v8466_v6  ;;  %v10868_v33 = vsub.f32 %v8018_v51, %v8478_v45  ;;  %v10870_v51 = vsub.f32 %v10728_v3, %v8498_v53 }
 0x3de   :  { %v8896_v1 = vpop.xlane.xlu1 %2688 }
 0x3df   :  { %v2994_v35 = vmul.f32 1.442695, %v10865_v22  ;;  %v3257_v22 = vsel %vm2419_vm3, %v8918_v23, 0.0  ;;  %v2996_v45 = vmul.f32 1.442695, %v10870_v51 }
 0x3e0   :  { %v8901_v27 = vpop.xlane.xlu0 %3219  ;;  %v8931_v44 = vpop.eup %6890 }
 0x3e1   :  { %3264 = vadd.xlane.f32.xlu1 %v3263_v42  ;;  %6894 = vpow2.f32 %v2994_v35  ;;  %v2990_v42 = vmul.f32 1.442695, %v10868_v33  ;;  %10869 = vst [vmem:[#allocation161_spill] sm:$0xff] %v8931_v44  ;;  %v3278_v7 = vsel %vm2419_vm3, %v8931_v44, 0.0 }
 0x3e2   :  { %v8907_v16 = vpop.xlane.xlu1 %2679 }
 0x3e3   :  { %10864 = vst [vmem:[#allocation158_spill] sm:$0xff] %v8907_v16  ;;  %6896 = vpow2.f32 %v2990_v42 }
 0x3e4   :  { %v8914_v32 = vpop.xlane.xlu0 %3213  ;;  %6898 = vpow2.f32 %v2996_v45 }
 0x3e5   :  { %3255 = vadd.xlane.f32.xlu1 %v3254_v13  ;;  %v7322_v13 = vld [vmem:[%s10328_s5 + $0x18] sm:$0xff] }
 0x3e6   :  { %v8920_v15 = vpop.xlane.xlu1 %2673 }
 0x3e7   :  { %10867 = vst [vmem:[#allocation160_spill] sm:$0xff] %v8920_v15  ;;  %v8945_v16 = vpop.eup %6892 }
 0x3e8   :  { %v8927_v6 = vpop.xlane.xlu0 %3207  ;;  %10871 = vst [vmem:[#allocation162_spill] sm:$0xff] %v8945_v16  ;;  %v3251_v3 = vsel %vm2419_vm3, %v8945_v16, 0.0 }
 0x3e9   :  { %446 = vperm.xlu0 %6436, %v7322_v13   ;;  %3258 = vadd.xlane.f32.xlu1 %v3257_v22  ;;  %v10873_v22 = vsub.f32 %v10725_v19, %v8490_v58  ;;  %v10878_v19 = vld [vmem:[#allocation38_spill] sm:$0xff] }
 0x3ea   :  { %v8936_v35 = vpop.xlane.xlu1 %2682  ;;  %v10879_v58 = vsub.f32 %v10877_v10, %v10878_v19  ;;  %v10884_v19 = vld [vmem:[#allocation36_spill] sm:$0xff] }
 0x3eb   :  { %v3002_v13 = vmul.f32 1.442695, %v10873_v22  ;;  %v8958_v51 = vpop.eup %6894 }
 0x3ec   :  { %v8941_v33 = vpop.xlane.xlu0 %3201  ;;  %10875 = vst [vmem:[#allocation164_spill] sm:$0xff] %v8958_v51  ;;  %v2998_v45 = vmul.f32 1.442695, %v10879_v58  ;;  %v3281_v15 = vsel %vm2419_vm3, %v8958_v51, 0.0  ;;  %v10885_v58 = vld [vmem:[#allocation133_spill] sm:$0xff] }
 0x3ed   :  { %3279 = vadd.xlane.f32.xlu1 %v3278_v7  ;;  %v10876_v7 = vld [vmem:[#allocation72_spill] sm:$0xff]  ;;  %6900 = vpow2.f32 %v3002_v13  ;;  %v10886_v42 = vsub.f32 %v10884_v19, %v10885_v58  ;;  %v10890_v19 = vld [vmem:[#allocation37_spill] sm:$0xff] }
 0x3ee   :  { %v8947_v40 = vpop.xlane.xlu1 %2703  ;;  %v2882_v44 = vsub.f32 %v10876_v7, %v8782_v39  ;;  %v10882_v13 = vld [vmem:[#allocation80_spill] sm:$0xff]  ;;  %6902 = vpow2.f32 %v2998_v45 }
 0x3ef   :  { %10872 = vst [vmem:[#allocation163_spill] sm:$0xff] %v8947_v40  ;;  %v10880_v40 = vmov 0.0   ;;  %v2893_v10 = vsub.f32 %v10882_v13, %v8896_v1  ;;  %v3012_v51 = vmul.f32 1.442695, %v10886_v42  ;;  %v10889_v1 = vld [vmem:[#allocation79_spill] sm:$0xff] }
 0x3f0   :  { %v8954_v53 = vpop.xlane.xlu0 %3231  ;;  %6153 = vmatprep.mubr.msk.bf16.mxu0 %vm7355_vm4, %v10880_v40  ;;  %6165 = vmatprep.mubr.msk.bf16.mxu1 %vm7355_vm4, %v10880_v40  ;;  %v3088_v39 = vmul.f32 1.442695, %v2882_v44  ;;  %v2887_v44 = vsub.f32 %v10889_v1, %v8842_v0  ;;  %v10891_v42 = vld [vmem:[#allocation35_spill] sm:$0xff]  ;;  %v10895_v1 = vld [vmem:[#allocation32_spill] sm:$0xff] }
 0x3f1   :  { %3252 = vadd.xlane.f32.xlu1 %v3251_v3  ;;  %v8973_v3 = vpop.eup %6896  ;;  %v3110_v45 = vmul.f32 1.442695, %v2893_v10  ;;  %v10892_v58 = vsub.f32 %v10890_v19, %v10891_v42  ;;  %v10896_v19 = vsub.f32 %v10743_v11, %v10895_v1 }
 0x3f2   :  { %v2677_v30 = vpop.xlane.xlu1 %2676  ;;  %10881 = vst [vmem:[#allocation72_spill] sm:$0xff] %v8973_v3  ;;  %v3275_v8 = vsel %vm2419_vm3, %v8973_v3, 0.0  ;;  %6904 = vpow2.f32 %v3088_v39  ;;  %v10894_v39 = vld [vmem:[#allocation78_spill] sm:$0xff] }
 0x3f3   :  { %v3018_v9 = vmul.f32 1.442695, %v10892_v58  ;;  %6906 = vpow2.f32 %v3012_v51  ;;  %v2895_v0 = vsub.f32 %v10894_v39, %v8885_v62  ;;  %v3014_v42 = vmul.f32 1.442695, %v10896_v19 }
 0x3f4   :  { %v8965_v22 = vpop.xlane.xlu0 %3225  ;;  %6908 = vpow2.f32 %v3110_v45  ;;  %v10900_v45 = vld [vmem:[#allocation40_spill] sm:$0xff] }
 0x3f5   :  { %3282 = vadd.xlane.f32.xlu1 %v3281_v15  ;;  %v8988_v15 = vpop.eup %6898  ;;  %6910 = vpow2.f32 %v3018_v9  ;;  %v10899_v9 = vld [vmem:[#allocation42_spill] sm:$0xff] }
 0x3f6   :  { %v8977_v7 = vpop.xlane.xlu1 %2697  ;;  %10888 = vst [vmem:[#allocation38_spill] sm:$0xff] %v8988_v15  ;;  %v10901_v39 = vsub.f32 %v10899_v9, %v10900_v45 }
 0x3f7   :  { %10883 = vst [vmem:[#allocation39_spill] sm:$0xff] %v8977_v7  ;;  %v3284_v7 = vsel %vm2419_vm3, %v8988_v15, 0.0  ;;  %v9001_v23 = vpop.eup %6900 }
 0x3f8   :  { %v8984_v12 = vpop.xlane.xlu0 %3243  ;;  %10893 = vst [vmem:[#allocation80_spill] sm:$0xff] %v9001_v23  ;;  %v3293_v58 = vsel %vm2419_vm3, %v9001_v23, 0.0  ;;  %v9012_v15 = vpop.eup %6902  ;;  %v3008_v11 = vmul.f32 1.442695, %v10901_v39 }
 0x3f9   :  { %3276 = vadd.xlane.f32.xlu1 %v3275_v8  ;;  %v3098_v8 = vmul.f32 1.442695, %v2887_v44  ;;  %10897 = vst [vmem:[#allocation36_spill] sm:$0xff] %v9012_v15  ;;  %v10898_v44 = vld [vmem:[#allocation89_spill] sm:$0xff]  ;;  %v3287_v23 = vsel %vm2419_vm3, %v9012_v15, 0.0 }
 0x3fa   :  { %v8992_v13 = vpop.xlane.xlu1 %2706  ;;  %v2889_v3 = vsub.f32 %v10898_v44, %v2677_v30  ;;  %v10904_v30 = vld [vmem:[#allocation88_spill] sm:$0xff] }
 0x3fb   :  { %6912 = vpow2.f32 %v3098_v8 }
 0x3fc   :  { %v8997_v29 = vpop.xlane.xlu0 %3237  ;;  %6914 = vpow2.f32 %v3014_v42  ;;  %v9020_v1 = vpop.eup %6904  ;;  %v3102_v8 = vmul.f32 1.442695, %v2889_v3  ;;  %v10905_v42 = vld [vmem:[#allocation136_spill] sm:$0xff] }
 0x3fd   :  { %3285 = vadd.xlane.f32.xlu1 %v3284_v7  ;;  %v3114_v7 = vmul.f32 1.442695, %v2895_v0  ;;  %10902 = vst [vmem:[#allocation133_spill] sm:$0xff] %v9020_v1  ;;  %v9026_v16 = vpop.eup %6906  ;;  %v10906_v44 = vsub.f32 %v10757_v37, %v10905_v42  ;;  %v3422_v45 = vsel %vm2419_vm3, %v9020_v1, 0.0  ;;  %v10911_v42 = vld [vmem:[#allocation33_spill] sm:$0xff] }
 0x3fe   :  { %v2701_v10 = vpop.xlane.xlu1 %2700  ;;  %10903 = vst [vmem:[#allocation79_spill] sm:$0xff] %v9026_v16  ;;  %v9034_v39 = vpop.eup %6908 }
 0x3ff   :  { %6916 = vpow2.f32 %v3114_v7  ;;  %v2897_v0 = vsub.f32 %v10904_v30, %v2701_v10  ;;  %v3024_v9 = vmul.f32 1.442695, %v10906_v44  ;;  %10907 = vst [vmem:[#allocation37_spill] sm:$0xff] %v9034_v39  ;;  %v9040_v3 = vpop.eup %6910  ;;  %v10909_v10 = vld [vmem:[#allocation87_spill] sm:$0xff] }
 0x400   :  { %v9008_v51 = vpop.xlane.xlu0 %3267  ;;  %6918 = vpow2.f32 %v3008_v11  ;;  %10908 = vst [vmem:[#allocation35_spill] sm:$0xff] %v9040_v3  ;;  %v2891_v7 = vsub.f32 %v10909_v10, %v8936_v35  ;;  %v10910_v30 = vld [vmem:[#allocation47_spill] sm:$0xff]  ;;  %v3317_v35 = vsel %vm2419_vm3, %v9040_v3, 0.0 }
 0x401   :  { %3294 = vadd.xlane.f32.xlu1 %v3293_v58  ;;  %6920 = vpow2.f32 %v3102_v8  ;;  %v3118_v37 = vmul.f32 1.442695, %v2897_v0  ;;  %v10912_v44 = vsub.f32 %v10910_v30, %v10911_v42  ;;  %v10916_v30 = vld [vmem:[#allocation45_spill] sm:$0xff]  ;;  %v10917_v42 = vld [vmem:[#allocation43_spill] sm:$0xff] }
 0x402   :  { %v9015_v62 = vpop.xlane.xlu1 %2718  ;;  %6922 = vpow2.f32 %v3024_v9  ;;  %v3106_v0 = vmul.f32 1.442695, %v2891_v7 }
 0x403   :  { %v3006_v1 = vmul.f32 1.442695, %v10912_v44  ;;  %6924 = vpow2.f32 %v3118_v37  ;;  %v10918_v44 = vsub.f32 %v10916_v30, %v10917_v42  ;;  %v10924_v30 = vld [vmem:[#allocation48_spill] sm:$0xff]  ;;  %v10925_v42 = vld [vmem:[#allocation46_spill] sm:$0xff] }
 0x404   :  { %v9022_v19 = vpop.xlane.xlu0 %3261 }
 0x405   :  { %3288 = vadd.xlane.f32.xlu1 %v3287_v23  ;;  %v3308_v23 = vsel %vm2419_vm3, %v9026_v16, 0.0  ;;  %v9051_v26 = vpop.eup %6912  ;;  %6926 = vpow2.f32 %v3006_v1  ;;  %v10922_v1 = vld [vmem:[#allocation96_spill] sm:$0xff] }
 0x406   :  { %v2713_v58 = vpop.xlane.xlu1 %2712  ;;  %10913 = vst [vmem:[#allocation78_spill] sm:$0xff] %v9051_v26  ;;  %v9057_v8 = vpop.eup %6914  ;;  %6928 = vpow2.f32 %v3106_v0 }
 0x407   :  { %10914 = vst [vmem:[#allocation32_spill] sm:$0xff] %v9057_v8  ;;  %v3311_v7 = vsel %vm2419_vm3, %v9057_v8, 0.0  ;;  %v2901_v37 = vsub.f32 %v10922_v1, %v2713_v58 }
 0x408   :  { %3423 = vadd.xlane.f32.xlu0 %v3422_v45  ;;  %v9036_v15 = vpop.xlane.xlu0 %3249  ;;  %v3455_v45 = vsel %vm2419_vm3, %v9034_v39, 0.0  ;;  %v3026_v39 = vmul.f32 1.442695, %v10918_v44  ;;  %v10926_v44 = vsub.f32 %v10924_v30, %v10925_v42  ;;  %v10930_v30 = vld [vmem:[#allocation51_spill] sm:$0xff] }
 0x409   :  { %3309 = vadd.xlane.f32.xlu1 %v3308_v23  ;;  %v10915_v23 = vld [vmem:[#allocation86_spill] sm:$0xff]  ;;  %v9066_v25 = vpop.eup %6916  ;;  %v10931_v42 = vld [vmem:[#allocation139_spill] sm:$0xff] }
 0x40a   :  { %v9044_v11 = vpop.xlane.xlu1 %2742  ;;  %v2899_v10 = vsub.f32 %v10915_v23, %v8992_v13  ;;  %10919 = vst [vmem:[#allocation89_spill] sm:$0xff] %v9066_v25  ;;  %6930 = vpow2.f32 %v3026_v39  ;;  %v3461_v8 = vsel %vm2419_vm3, %v9066_v25, 0.0  ;;  %v3126_v39 = vmul.f32 1.442695, %v2901_v37 }
 0x40c   :  { %3456 = vadd.xlane.f32.xlu0 %v3455_v45  ;;  %v9053_v16 = vpop.xlane.xlu0 %3273  ;;  %v3437_v45 = vsel %vm2419_vm3, %v9051_v26, 0.0  ;;  %v3122_v13 = vmul.f32 1.442695, %v2899_v10  ;;  %v3022_v26 = vmul.f32 1.442695, %v10926_v44  ;;  %v10932_v44 = vsub.f32 %v10930_v30, %v10931_v42  ;;  %v10937_v42 = vld [vmem:[#allocation54_spill] sm:$0xff] }
 0x40d   :  { %3318 = vadd.xlane.f32.xlu1 %v3317_v35  ;;  %v9072_v35 = vpop.eup %6918 }
 0x40e   :  { %v2737_v9 = vpop.xlane.xlu1 %2736  ;;  %10921 = vst [vmem:[#allocation40_spill] sm:$0xff] %v9072_v35  ;;  %v3302_v0 = vsel %vm2419_vm3, %v9072_v35, 0.0  ;;  %6932 = vpow2.f32 %v3122_v13  ;;  %v10953_v35 = vld [vmem:[#allocation108_spill] sm:$0xff] }
 0x40f   :  { %v2909_v10 = vsub.f32 %v10772_v56, %v2737_v9  ;;  %6934 = vpow2.f32 %v3022_v26  ;;  %v10936_v26 = vld [vmem:[#allocation95_spill] sm:$0xff] }
 0x410   :  { %3438 = vadd.xlane.f32.xlu0 %v3437_v45  ;;  %v9068_v3 = vpop.xlane.xlu0 %3291  ;;  %v3028_v45 = vmul.f32 1.442695, %v10932_v44  ;;  %v2903_v13 = vsub.f32 %v10936_v26, %v9015_v62  ;;  %6936 = vpow2.f32 %v3126_v39  ;;  %v10938_v44 = vld [vmem:[#allocation44_spill] sm:$0xff] }
 0x411   :  { %10920 = vst [vmem:[#allocation42_spill] sm:$0xff] %v9068_v3  ;;  %3312 = vadd.xlane.f32.xlu1 %v3311_v7  ;;  %v9084_v3 = vpop.eup %6920  ;;  %v3142_v37 = vmul.f32 1.442695, %v2909_v10  ;;  %v10939_v25 = vsub.f32 %v10937_v42, %v10938_v44  ;;  %v10945_v42 = vld [vmem:[#allocation97_spill] sm:$0xff] }
 0x412   :  { %v9075_v23 = vpop.xlane.xlu1 %2727  ;;  %10927 = vst [vmem:[#allocation136_spill] sm:$0xff] %v9084_v3  ;;  %v9088_v58 = vpop.eup %6922  ;;  %6938 = vpow2.f32 %v3028_v45  ;;  %v3130_v10 = vmul.f32 1.442695, %v2903_v13  ;;  %v10944_v45 = vld [vmem:[#allocation55_spill] sm:$0xff] }
 0x413   :  { %10923 = vst [vmem:[#allocation88_spill] sm:$0xff] %v9075_v23  ;;  %10928 = vst [vmem:[#allocation87_spill] sm:$0xff] %v9088_v58  ;;  %v3443_v23 = vsel %vm2419_vm3, %v9084_v3, 0.0  ;;  %v3326_v56 = vsel %vm2419_vm3, %v9088_v58, 0.0  ;;  %v3034_v3 = vmul.f32 1.442695, %v10939_v25  ;;  %6940 = vpow2.f32 %v3142_v37 }
 0x414   :  { %3462 = vadd.xlane.f32.xlu0 %v3461_v8  ;;  %v9091_v7 = vpop.xlane.xlu0 %3315  ;;  %v10946_v44 = vsub.f32 %v10944_v45, %v10945_v42  ;;  %v10950_v37 = vld [vmem:[#allocation53_spill] sm:$0xff] }
 0x415   :  { %3303 = vadd.xlane.f32.xlu1 %v3302_v0  ;;  %v9102_v0 = vpop.eup %6924  ;;  %6942 = vpow2.f32 %v3034_v3  ;;  %v10951_v3 = vld [vmem:[#allocation49_spill] sm:$0xff] }
 0x416   :  { %v9093_v1 = vpop.xlane.xlu1 %2721  ;;  %10934 = vst [vmem:[#allocation33_spill] sm:$0xff] %v9102_v0  ;;  %v9106_v9 = vpop.eup %6926  ;;  %6944 = vpow2.f32 %v3130_v10 }
 0x417   :  { %10929 = vst [vmem:[#allocation47_spill] sm:$0xff] %v9093_v1  ;;  %10935 = vst [vmem:[#allocation86_spill] sm:$0xff] %v9106_v9  ;;  %v9117_v41 = vpop.eup %6928  ;;  %v3299_v62 = vsel %vm2419_vm3, %v9106_v9, 0.0 }
 0x418   :  { %3444 = vadd.xlane.f32.xlu0 %v3443_v23  ;;  %v3467_v23 = vsel %vm2419_vm3, %v9102_v0, 0.0  ;;  %10940 = vst [vmem:[#allocation45_spill] sm:$0xff] %v9117_v41  ;;  %v9119_v58 = vpop.xlane.xlu0 %3297  ;;  %v9123_v39 = vpop.eup %6930  ;;  %v3030_v0 = vmul.f32 1.442695, %v10946_v44  ;;  %v3449_v1 = vsel %vm2419_vm3, %v9117_v41, 0.0 }
 0x419   :  { %3327 = vadd.xlane.f32.xlu1 %v3326_v56  ;;  %10941 = vst [vmem:[#allocation43_spill] sm:$0xff] %v9123_v39  ;;  %v10942_v56 = vld [vmem:[#allocation94_spill] sm:$0xff]  ;;  %v9136_v8 = vpop.eup %6932 }
 0x41a   :  { %v9110_v30 = vpop.xlane.xlu1 %2730  ;;  %v2911_v26 = vsub.f32 %v10942_v56, %v9044_v11  ;;  %10948 = vst [vmem:[#allocation48_spill] sm:$0xff] %v9136_v8  ;;  %v3329_v11 = vsel %vm2419_vm3, %v9123_v39, 0.0  ;;  %v9140_v13 = vpop.eup %6934  ;;  %6946 = vpow2.f32 %v3030_v0  ;;  %v10957_v0 = vld [vmem:[#allocation56_spill] sm:$0xff] }
 0x41b   :  { %10949 = vst [vmem:[#allocation46_spill] sm:$0xff] %v9140_v13 }
 0x41c   :  { %3468 = vadd.xlane.f32.xlu0 %v3467_v23  ;;  %v3146_v45 = vmul.f32 1.442695, %v2911_v26  ;;  %v9145_v42 = vpop.xlane.xlu0 %3306  ;;  %v3323_v23 = vsel %vm2419_vm3, %v9140_v13, 0.0 }
 0x41d   :  { %3300 = vadd.xlane.f32.xlu1 %v3299_v62  ;;  %v10952_v62 = vsub.f32 %v10950_v37, %v10951_v3 }
 0x41e   :  { %v9127_v25 = vpop.xlane.xlu1 %2751 }
 0x41f   :  { %10943 = vst [vmem:[#allocation96_spill] sm:$0xff] %v9127_v25  ;;  %v3050_v56 = vmul.f32 1.442695, %v10952_v62  ;;  %v9150_v25 = vpop.eup %6936  ;;  %v10960_v62 = vld [vmem:[#allocation142_spill] sm:$0xff] }
 0x420   :  { %3450 = vadd.xlane.f32.xlu0 %v3449_v1  ;;  %v3473_v1 = vsel %vm2419_vm3, %v9136_v8, 0.0  ;;  %10954 = vst [vmem:[#allocation51_spill] sm:$0xff] %v9150_v25  ;;  %v9154_v37 = vpop.eup %6938  ;;  %v3479_v13 = vsel %vm2419_vm3, %v9150_v25, 0.0 }
 0x421   :  { %3330 = vadd.xlane.f32.xlu1 %v3329_v11  ;;  %10955 = vst [vmem:[#allocation139_spill] sm:$0xff] %v9154_v37  ;;  %6948 = vpow2.f32 %v3050_v56  ;;  %v10958_v11 = vld [vmem:[#allocation52_spill] sm:$0xff]  ;;  %v9167_v9 = vpop.eup %6940 }
 0x422   :  { %v2725_v44 = vpop.xlane.xlu1 %2724  ;;  %6950 = vpow2.f32 %v3146_v45  ;;  %10963 = vst [vmem:[#allocation54_spill] sm:$0xff] %v9167_v9  ;;  %v9173_v56 = vpop.eup %6942 }
 0x423   :  { %v2905_v41 = vsub.f32 %v10953_v35, %v2725_v44  ;;  %v10959_v35 = vsub.f32 %v10957_v0, %v10958_v11  ;;  %v10961_v44 = vld [vmem:[#allocation58_spill] sm:$0xff]  ;;  %10964 = vst [vmem:[#allocation44_spill] sm:$0xff] %v9173_v56  ;;  %v3503_v11 = vsel %vm2419_vm3, %v9167_v9, 0.0 }
 0x424   :  { %3474 = vadd.xlane.f32.xlu0 %v3473_v1  ;;  %v2858_v8 = vsub.f32 %v10961_v44, %v10960_v62  ;;  %v3341_v62 = vsel %vm2419_vm3, %v9173_v56, 0.0  ;;  %v10966_v44 = vld [vmem:[#allocation105_spill] sm:$0xff] }
 0x425   :  { %3324 = vadd.xlane.f32.xlu1 %v3323_v23  ;;  %v3134_v10 = vmul.f32 1.442695, %v2905_v41  ;;  %v3046_v3 = vmul.f32 1.442695, %v10959_v35  ;;  %v9169_v23 = vpop.xlane.xlu0 %3321  ;;  %v3332_v41 = vsel %vm2419_vm3, %v9154_v37, 0.0  ;;  %v9177_v35 = vpop.eup %6944  ;;  %v2907_v39 = vsub.f32 %v10966_v44, %v9110_v30  ;;  %v10973_v44 = vld [vmem:[#allocation104_spill] sm:$0xff] }
 0x426   :  { %v9156_v26 = vpop.xlane.xlu1 %2745  ;;  %v3040_v0 = vmul.f32 1.442695, %v2858_v8  ;;  %10965 = vst [vmem:[#allocation94_spill] sm:$0xff] %v9177_v35  ;;  %v3485_v56 = vsel %vm2419_vm3, %v9177_v35, 0.0 }
 0x427   :  { %10956 = vst [vmem:[#allocation95_spill] sm:$0xff] %v9156_v26  ;;  %6952 = vpow2.f32 %v3134_v10  ;;  %v10968_v10 = vld [vmem:[#allocation143_spill] sm:$0xff] }
 0x428   :  { %3480 = vadd.xlane.f32.xlu0 %v3479_v13  ;;  %6954 = vpow2.f32 %v3046_v3  ;;  %v9181_v13 = vpop.eup %6946 }
 0x429   :  { %3333 = vadd.xlane.f32.xlu1 %v3332_v41  ;;  %v10967_v41 = vld [vmem:[#allocation62_spill] sm:$0xff]  ;;  %v9188_v8 = vpop.xlane.xlu0 %3339  ;;  %6956 = vpow2.f32 %v3040_v0  ;;  %v3335_v30 = vsel %vm2419_vm3, %v9181_v13, 0.0  ;;  %v10975_v0 = vld [vmem:[#allocation59_spill] sm:$0xff] }
 0x42a   :  { %v2755_v45 = vpop.xlane.xlu1 %2754  ;;  %v10969_v25 = vsub.f32 %v10967_v41, %v10968_v10  ;;  %10970 = vst [vmem:[#allocation55_spill] sm:$0xff] %v9188_v8  ;;  %v10974_v8 = vld [vmem:[#allocation63_spill] sm:$0xff] }
 0x42b   :  { %v9190_v9 = vpop.eup %6948  ;;  %v10976_v1 = vsub.f32 %v10974_v8, %v10975_v0  ;;  %v10980_v8 = vld [vmem:[#allocation57_spill] sm:$0xff] }
 0x42c   :  { %3504 = vadd.xlane.f32.xlu0 %v3503_v11  ;;  %v3042_v3 = vmul.f32 1.442695, %v10969_v25  ;;  %10971 = vst [vmem:[#allocation97_spill] sm:$0xff] %v9190_v9  ;;  %v9195_v26 = vpop.eup %6950  ;;  %v2915_v25 = vsub.f32 %v10973_v44, %v2755_v45 }
 0x42d   :  { %3342 = vadd.xlane.f32.xlu1 %v3341_v62  ;;  %10972 = vst [vmem:[#allocation53_spill] sm:$0xff] %v9195_v26  ;;  %v3138_v62 = vmul.f32 1.442695, %v2907_v39  ;;  %v3365_v39 = vsel %vm2419_vm3, %v9190_v9, 0.0 }
 0x42e   :  { %v2749_v37 = vpop.xlane.xlu1 %2748  ;;  %6958 = vpow2.f32 %v3042_v3  ;;  %v3154_v3 = vmul.f32 1.442695, %v2915_v25  ;;  %v10983_v25 = vld [vmem:[#allocation100_spill] sm:$0xff] }
 0x42f   :  { %v2913_v11 = vsub.f32 %v10815_v36, %v2749_v37  ;;  %v3038_v36 = vmul.f32 1.442695, %v10976_v1  ;;  %v3509_v37 = vsel %vm2419_vm3, %v9195_v26, 0.0  ;;  %v10979_v1 = vld [vmem:[#allocation61_spill] sm:$0xff] }
 0x430   :  { %3486 = vadd.xlane.f32.xlu0 %v3485_v56  ;;  %v9207_v56 = vpop.xlane.xlu0 %3363 }
 0x431   :  { %v3150_v41 = vmul.f32 1.442695, %v2913_v11  ;;  %3336 = vadd.xlane.f32.xlu1 %v3335_v30  ;;  %v9205_v35 = vpop.eup %6952  ;;  %v10981_v30 = vsub.f32 %v10979_v1, %v10980_v8 }
 0x432   :  { %v2767_v10 = vpop.xlane.xlu1 %2766  ;;  %10977 = vst [vmem:[#allocation49_spill] sm:$0xff] %v9205_v35  ;;  %v9211_v45 = vpop.eup %6954  ;;  %v3491_v0 = vsel %vm2419_vm3, %v9205_v35, 0.0 }
 0x433   :  { %6960 = vpow2.f32 %v3150_v41  ;;  %10978 = vst [vmem:[#allocation108_spill] sm:$0xff] %v9211_v45  ;;  %v3058_v44 = vmul.f32 1.442695, %v10981_v30  ;;  %v9221_v26 = vpop.eup %6956 }
 0x434   :  { %3510 = vadd.xlane.f32.xlu0 %v3509_v37  ;;  %6962 = vpow2.f32 %v3138_v62  ;;  %v3359_v37 = vsel %vm2419_vm3, %v9211_v45, 0.0  ;;  %10982 = vst [vmem:[#allocation56_spill] sm:$0xff] %v9221_v26  ;;  %v9225_v9 = vpop.xlane.xlu0 %3357  ;;  %v3350_v35 = vsel %vm2419_vm3, %v9221_v26, 0.0 }
 0x435   :  { %3366 = vadd.xlane.f32.xlu1 %v3365_v39  ;;  %6964 = vpow2.f32 %v3038_v36  ;;  %v10984_v36 = vld [vmem:[#allocation67_spill] sm:$0xff] }
 0x436   :  { %v2761_v11 = vpop.xlane.xlu1 %2760  ;;  %6966 = vpow2.f32 %v3154_v3  ;;  %v2868_v39 = vsub.f32 %v10984_v36, %v10983_v25  ;;  %v10990_v3 = vld [vmem:[#allocation114_spill] sm:$0xff] }
 0x437   :  { %v2917_v41 = vsub.f32 %v10826_v48, %v2761_v11  ;;  %6968 = vpow2.f32 %v3058_v44  ;;  %v10985_v48 = vld [vmem:[#allocation64_spill] sm:$0xff] }
 0x438   :  { %3492 = vadd.xlane.f32.xlu0 %v3491_v0  ;;  %v10986_v11 = vld [vmem:[#allocation60_spill] sm:$0xff]  ;;  %v9230_v0 = vpop.eup %6958 }
 0x439   :  { %v3158_v62 = vmul.f32 1.442695, %v2917_v41  ;;  %3360 = vadd.xlane.f32.xlu1 %v3359_v37  ;;  %v10987_v8 = vsub.f32 %v10985_v48, %v10986_v11  ;;  %10988 = vst [vmem:[#allocation52_spill] sm:$0xff] %v9230_v0  ;;  %v2919_v41 = vsub.f32 %v10990_v3, %v2767_v10  ;;  %v3060_v37 = vmul.f32 1.442695, %v2868_v39  ;;  %v9242_v11 = vpop.xlane.xlu0 %3345 }
 0x43a   :  { %v2791_v1 = vpop.xlane.xlu1 %2790 }
 0x43b   :  { %v3054_v30 = vmul.f32 1.442695, %v10987_v8  ;;  %6970 = vpow2.f32 %v3158_v62  ;;  %v3353_v8 = vsel %vm2419_vm3, %v9230_v0, 0.0  ;;  %v3162_v10 = vmul.f32 1.442695, %v2919_v41 }
 0x43d   :  { %v9234_v45 = vpop.eup %6960  ;;  %3351 = vadd.xlane.f32.xlu1 %v3350_v35  ;;  %6972 = vpow2.f32 %v3054_v30  ;;  %v2927_v35 = vsub.f32 %v10831_v46, %v2791_v1  ;;  %v9261_v1 = vpop.xlane.xlu0 %3375 }
 0x43e   :  { %10989 = vst [vmem:[#allocation142_spill] sm:$0xff] %v9234_v45  ;;  %v2785_v25 = vpop.xlane.xlu1 %2784  ;;  %v3515_v44 = vsel %vm2419_vm3, %v9234_v45, 0.0  ;;  %v9239_v36 = vpop.eup %6962  ;;  %6974 = vpow2.f32 %v3060_v37 }
 0x43f   :  { %10991 = vst [vmem:[#allocation58_spill] sm:$0xff] %v9239_v36  ;;  %v2925_v48 = vsub.f32 %v10834_v24, %v2785_v25  ;;  %3516 = vadd.xlane.f32.xlu0 %v3515_v44  ;;  %v9246_v26 = vpop.eup %6964  ;;  %v3497_v30 = vsel %vm2419_vm3, %v9239_v36, 0.0  ;;  %v10993_v24 = vld [vmem:[#allocation70_spill] sm:$0xff]  ;;  %v3178_v46 = vmul.f32 1.442695, %v2927_v35 }
 0x440   :  { %v9251_v3 = vpop.eup %6966  ;;  %v10994_v25 = vld [vmem:[#allocation66_spill] sm:$0xff]  ;;  %v3347_v41 = vsel %vm2419_vm3, %v9246_v26, 0.0 }
 0x441   :  { %v3174_v62 = vmul.f32 1.442695, %v2925_v48  ;;  %3354 = vadd.xlane.f32.xlu1 %v3353_v8  ;;  %10992 = vst [vmem:[#allocation105_spill] sm:$0xff] %v9251_v3  ;;  %v10995_v44 = vsub.f32 %v10993_v24, %v10994_v25  ;;  %v9258_v0 = vpop.eup %6968  ;;  %v3521_v48 = vsel %vm2419_vm3, %v9251_v3, 0.0 }
 0x442   :  { %v3199_v39 = vpop.xlane.xlu1 %3198 }
 0x443   :  { %v3066_v45 = vmul.f32 1.442695, %v10995_v44  ;;  %6976 = vpow2.f32 %v3174_v62  ;;  %3498 = vadd.xlane.f32.xlu0 %v3497_v30  ;;  %v10997_v62 = vld [vmem:[#allocation71_spill] sm:$0xff]  ;;  %v10998_v30 = vld [vmem:[#allocation24_spill] sm:$0xff] }
 0x444   :  { %6978 = vpow2.f32 %v3162_v10  ;;  %v10999_v24 = vsub.f32 %v10997_v62, %v10998_v30  ;;  %v3377_v10 = vsel %vm2419_vm3, %v9258_v0, 0.0 }
 0x445   :  { %3348 = vadd.xlane.f32.xlu1 %v3347_v41  ;;  %6980 = vrcp.f32 %v8890_v21  ;;  %v9265_v8 = vpop.eup %6970  ;;  %v11000_v21 = vld [vmem:[#allocation23_spill] sm:$0xff] }
 0x446   :  { %v3193_v37 = vpop.xlane.xlu1 %3192  ;;  %10996 = vst [vmem:[#allocation62_spill] sm:$0xff] %v9265_v8  ;;  %6982 = vpow2.f32 %v3066_v45  ;;  %v3062_v25 = vmul.f32 1.442695, %v10999_v24  ;;  %v11001_v44 = vsub.f32 %v10825_v34, %v11000_v21  ;;  %v3527_v45 = vsel %vm2419_vm3, %v9265_v8, 0.0 }
 0x447   :  { %3522 = vadd.xlane.f32.xlu0 %v3521_v48  ;;  %6984 = vrcp.f32 %v3193_v37  ;;  %v9272_v35 = vpop.eup %6972  ;;  %v9282_v37 = vpop.xlane.xlu0 %3369  ;;  %v11003_v34 = vsub.f32 %v8140_v55, %v8725_v52  ;;  %v11005_v55 = vsub.f32 %v8164_v38, %v8792_v5 }
 0x448   :  { %6986 = vpow2.f32 %v3178_v46  ;;  %v3082_v41 = vmul.f32 1.442695, %v11001_v44  ;;  %v9279_v48 = vpop.eup %6974  ;;  %v3371_v46 = vsel %vm2419_vm3, %v9272_v35, 0.0 }
 0x449   :  { %3378 = vadd.xlane.f32.xlu1 %v3377_v10  ;;  %6988 = vrcp.f32 %v3199_v39  ;;  %v3078_v39 = vmul.f32 1.442695, %v11003_v34  ;;  %v3380_v10 = vsel %vm2419_vm3, %v9279_v48, 0.0  ;;  %v3070_v52 = vmul.f32 1.442695, %v11005_v55  ;;  %v11007_v34 = vld [vmem:[#allocation127_spill] sm:$0xff] }
 0x44a   :  { %v3223_v3 = vpop.xlane.xlu1 %3222  ;;  %6990 = vpow2.f32 %v3062_v25 }
 0x44b   :  { %3528 = vadd.xlane.f32.xlu0 %v3527_v45  ;;  %6992 = vrcp.f32 %v8879_v43  ;;  %v9303_v44 = vpop.xlane.xlu0 %3387 }
 0x44c   :  { %6994 = vrcp.f32 %v8914_v32 }
 0x44d   :  { %v9286_v62 = vpop.eup %6976  ;;  %3372 = vadd.xlane.f32.xlu1 %v3371_v46  ;;  %6996 = vpow2.f32 %v3082_v41 }
 0x44e   :  { %11002 = vst [vmem:[#allocation143_spill] sm:$0xff] %v9286_v62  ;;  %v3217_v30 = vpop.xlane.xlu1 %3216  ;;  %v3551_v24 = vsel %vm2419_vm3, %v9286_v62, 0.0  ;;  %v9294_v43 = vpop.eup %6978 }
 0x44f   :  { %11004 = vst [vmem:[#allocation104_spill] sm:$0xff] %v9294_v43  ;;  %6998 = vrcp.f32 %v3217_v30  ;;  %3552 = vadd.xlane.f32.xlu0 %v3551_v24  ;;  %v6981_v25 = vpop.eup %6980  ;;  %v3533_v45 = vsel %vm2419_vm3, %v9294_v43, 0.0  ;;  %v9317_v55 = vpop.xlane.xlu0 %3411 }
 0x450   :  { %v9298_v21 = vpop.eup %6982  ;;  %7000 = vrcp.f32 %v3223_v3  ;;  %v3700_v3 = vmul.f32 %v6981_v25, %v11007_v34 }
 0x451   :  { %3381 = vadd.xlane.f32.xlu1 %v3380_v10  ;;  %v6985_v32 = vpop.eup %6984  ;;  %7002 = vpow2.f32 %v3078_v39  ;;  %v3389_v38 = vsel %vm2419_vm3, %v9298_v21, 0.0 }
 0x452   :  { %v3211_v41 = vpop.xlane.xlu1 %3210  ;;  %v9307_v46 = vpop.eup %6986  ;;  %7004 = vrcp.f32 %v8901_v27  ;;  %v3701_v30 = vmul.f32 %v6985_v32, %v8758_v14 }
 0x453   :  { %11006 = vst [vmem:[#allocation63_spill] sm:$0xff] %v9307_v46  ;;  %3534 = vadd.xlane.f32.xlu0 %v3533_v45  ;;  %v6989_v39 = vpop.eup %6988  ;;  %7006 = vrcp.f32 %v8941_v33  ;;  %v3557_v25 = vsel %vm2419_vm3, %v9307_v46, 0.0 }
 0x454   :  { %v9314_v5 = vpop.eup %6990  ;;  %v3828_v24 = vpack.c.bf16 %v3701_v30, %v3700_v3  ;;  %7008 = vpow2.f32 %v3070_v52  ;;  %v3703_v32 = vmul.f32 %v6989_v39, %v8751_v54  ;;  %v11008_v3 = vld [vmem:[#allocation126_spill] sm:$0xff] }
 0x455   :  { %3390 = vadd.xlane.f32.xlu1 %v3389_v38  ;;  %v6993_v10 = vpop.eup %6992  ;;  %v3383_v33 = vsel %vm2419_vm3, %v9314_v5, 0.0 }
 0x456   :  { %v3205_v27 = vpop.xlane.xlu1 %3204  ;;  %v6995_v45 = vpop.eup %6994  ;;  %v3896_v14 = vsel %vm2419_vm3, %v3828_v24, 0  ;;  %v3702_v30 = vmul.f32 %v6993_v10, %v11008_v3 }
 0x457   :  { %7010 = vrcp.f32 %v3205_v27  ;;  %3558 = vadd.xlane.f32.xlu0 %v3557_v25  ;;  %v9323_v34 = vpop.eup %6996  ;;  %6146 = vmatpush3.bf16.xpose.msra.mxu0 %v3896_v14  ;;  %v11009_v27 = vld [vmem:[#allocation129_spill] sm:$0xff]  ;;  %v9334_v14 = vpop.xlane.xlu0 %3405 }
 0x458   :  { %6147 = vmatprep.subr.bf16.mxu0 %v10880_v40  ;;  %7012 = vrcp.f32 %v3211_v41  ;;  %v3708_v25 = vmul.f32 %v6995_v45, %v11009_v27  ;;  %v3829_v54 = vpack.c.bf16 %v3703_v32, %v3702_v30 }
 0x459   :  { %v6999_v52 = vpop.eup %6998  ;;  %3384 = vadd.xlane.f32.xlu1 %v3383_v33  ;;  %7014 = vrcp.f32 %v8927_v6  ;;  %v3413_v33 = vsel %vm2419_vm3, %v9323_v34, 0.0 }
 0x45a   :  { %v3235_v38 = vpop.xlane.xlu1 %3234  ;;  %v3709_v24 = vmul.f32 %v6999_v52, %v8790_v47  ;;  %v7001_v46 = vpop.eup %7000  ;;  %7016 = vrcp.f32 %v8965_v22  ;;  %v3899_v32 = vsel %vm2419_vm3, %v3829_v54, 0  ;;  %v11010_v22 = vld [vmem:[#allocation128_spill] sm:$0xff] }
 0x45b   :  { %v9331_v39 = vpop.eup %7002  ;;  %v3711_v47 = vmul.f32 %v7001_v46, %v8780_v50  ;;  %v9344_v52 = vpop.xlane.xlu0 %3393  ;;  %v11011_v46 = vld [vmem:[#allocation131_spill] sm:$0xff] }
 0x45c   :  { %v3832_v43 = vpack.c.bf16 %v3709_v24, %v3708_v25  ;;  %v7005_v62 = vpop.eup %7004  ;;  %v3407_v3 = vsel %vm2419_vm3, %v9331_v39, 0.0 }
 0x45d   :  { %3414 = vadd.xlane.f32.xlu1 %v3413_v33  ;;  %v7007_v45 = vpop.eup %7006  ;;  %v3710_v30 = vmul.f32 %v7005_v62, %v11010_v22 }
 0x45e   :  { %v3229_v41 = vpop.xlane.xlu1 %3228  ;;  %v3951_v10 = vsel %vm2419_vm3, %v3832_v43, 0  ;;  %v9342_v6 = vpop.eup %7008  ;;  %v3704_v27 = vmul.f32 %v7007_v45, %v11011_v46  ;;  %v11014_v46 = vld [vmem:[#allocation19_spill] sm:$0xff] }
 0x45f   :  { %7018 = vrcp.f32 %v3229_v41  ;;  %6158 = vmatpush3.bf16.xpose.msra.mxu1 %v3951_v10  ;;  %6148 = vmatpush3.bf16.xpose.msra.mxu0 %v3899_v32  ;;  %v3833_v24 = vpack.c.bf16 %v3711_v47, %v3710_v30  ;;  %v3395_v41 = vsel %vm2419_vm3, %v9342_v6, 0.0 }
 0x460   :  { %6159 = vmatprep.subr.bf16.mxu1 %v10880_v40  ;;  %7020 = vrcp.f32 %v3235_v38  ;;  %6149 = vmatprep.subr.bf16.mxu0 %v10880_v40  ;;  %v9354_v33 = vpop.xlane.xlu0 %3417 }
 0x461   :  { %v7011_v43 = vpop.eup %7010  ;;  %3408 = vadd.xlane.f32.xlu1 %v3407_v3  ;;  %7022 = vrcp.f32 %v8954_v53  ;;  %v3954_v45 = vsel %vm2419_vm3, %v3833_v24, 0  ;;  %v11012_v53 = vsub.f32 %v8148_v59, %v8741_v2  ;;  %v11016_v59 = vld [vmem:[#allocation130_spill] sm:$0xff] }
 0x462   :  { %v3247_v50 = vpop.xlane.xlu1 %3246  ;;  %v3705_v25 = vmul.f32 %v7011_v43, %v8814_v20  ;;  %v7013_v54 = vpop.eup %7012  ;;  %7024 = vrcp.f32 %v8997_v29  ;;  %v11013_v29 = vld [vmem:[#allocation120_spill] sm:$0xff] }
 0x463   :  { %v7015_v38 = vpop.eup %7014  ;;  %v3072_v47 = vmul.f32 1.442695, %v11012_v53  ;;  %v3707_v3 = vmul.f32 %v7013_v54, %v8796_v49  ;;  %v2768_v30 = vsel %vm2419_vm3, %v11013_v29, -inf  ;;  %v11017_v49 = vld [vmem:[#allocation26_spill] sm:$0xff]  ;;  %v11020_v53 = vld [vmem:[#allocation124_spill] sm:$0xff] }
 0x464   :  { %v3830_v62 = vpack.c.bf16 %v3705_v25, %v3704_v27  ;;  %v7017_v20 = vpop.eup %7016  ;;  %v3706_v2 = vmul.f32 %v7015_v38, %v11016_v59  ;;  %v11018_v25 = vsub.f32 %v8158_v57, %v11017_v49  ;;  %v11024_v49 = vld [vmem:[#allocation17_spill] sm:$0xff] }
 0x465   :  { %3396 = vadd.xlane.f32.xlu1 %v3395_v41  ;;  %v11019_v41 = vld [vmem:[#allocation30_spill] sm:$0xff] }
 0x466   :  { %v3241_v10 = vpop.xlane.xlu1 %3240  ;;  %v3902_v32 = vsel %vm2419_vm3, %v3830_v62, 0  ;;  %v3074_v24 = vmul.f32 1.442695, %v11018_v25  ;;  %v3712_v62 = vmul.f32 %v7017_v20, %v11019_v41  ;;  %v11025_v41 = vld [vmem:[#allocation134_spill] sm:$0xff] }
 0x467   :  { %7026 = vrcp.f32 %v3241_v10  ;;  %6160 = vmatpush3.bf16.xpose.msra.mxu1 %v3954_v45  ;;  %6150 = vmatpush3.bf16.xpose.msra.mxu0 %v3902_v32  ;;  %v3831_v45 = vpack.c.bf16 %v3707_v3, %v3706_v2  ;;  %v11023_v2 = vld [vmem:[#allocation15_spill] sm:$0xff] }
 0x468   :  { %v9365_v22 = vpop.permute.xlu0 %446  ;;  %6161 = vmatprep.subr.bf16.mxu1 %v10880_v40  ;;  %6151 = vmatprep.subr.bf16.mxu0 %v10880_v40  ;;  %7028 = vrcp.f32 %v3247_v50  ;;  %v449_v25 = vadd.f32 %v11024_v49, %v11023_v2 }
 0x469   :  { %v7019_v43 = vpop.eup %7018  ;;  %v9372_v27 = vadd.f32 %v11014_v46, %v9365_v22  ;;  %2769 = vmax.xlane.f32.xlu1 %v2768_v30  ;;  %7030 = vpow2.f32 %v3072_v47  ;;  %v2771_v30 = vsel %vm2419_vm3, %v11020_v53, -inf  ;;  %v3905_v47 = vsel %vm2419_vm3, %v3831_v45, 0  ;;  %v11026_v45 = vld [vmem:[#allocation125_spill] sm:$0xff] }
 0x46a   :  { %v3271_v54 = vpop.xlane.xlu1 %3270  ;;  %v3713_v10 = vmul.f32 %v7019_v43, %v8840_v4  ;;  %v7021_v32 = vpop.eup %7020  ;;  %7032 = vrcp.f32 %v8984_v12  ;;  %v11021_v12 = vld [vmem:[#allocation121_spill] sm:$0xff]  ;;  %v11022_v43 = vld [vmem:[#allocation132_spill] sm:$0xff] }
 0x46b   :  { %11015 = vst [vmem:[#allocation59_spill] sm:$0xff] %v9372_v27  ;;  %v7023_v38 = vpop.eup %7022  ;;  %7034 = vrcp.f32 %v9022_v19  ;;  %v3715_v20 = vmul.f32 %v7021_v32, %v8827_v61  ;;  %v2792_v3 = vsel %vm2419_vm3, %v11021_v12, -inf  ;;  %v11055_v27 = vld [vmem:[#allocation123_spill] sm:$0xff] }
 0x46c   :  { %v3834_v46 = vpack.c.bf16 %v3713_v10, %v3712_v62  ;;  %7036 = vpow2.f32 %v3074_v24  ;;  %v7025_v4 = vpop.eup %7024  ;;  %v3714_v19 = vmul.f32 %v7023_v38, %v11022_v43 }
 0x46d   :  { %2772 = vmax.xlane.f32.xlu1 %v2771_v30  ;;  %v3716_v62 = vmul.f32 %v7025_v4, %v11025_v41  ;;  %v2795_v30 = vsel %vm2419_vm3, %v11026_v45, -inf }
 0x46e   :  { %v3265_v57 = vpop.xlane.xlu1 %3264  ;;  %v3957_v50 = vsel %vm2419_vm3, %v3834_v46, 0  ;;  %v3835_v24 = vpack.c.bf16 %v3715_v20, %v3714_v19 }
 0x46f   :  { %7038 = vrcp.f32 %v3265_v57  ;;  %6162 = vmatpush3.bf16.xpose.msra.mxu1 %v3957_v50  ;;  %6152 = vmatpush3.bf16.xpose.msra.mxu0 %v3905_v47  ;;  %v1121_v57 = vpack.c.bf16 %v449_v25, %v449_v25  ;;  %v11027_v50 = vld [vmem:[#allocation22_spill] sm:$0xff]  ;;  %v11028_v47 = vld [vmem:[#allocation73_spill] sm:$0xff] }
 0x470   :  { %6163 = vmatprep.subr.bf16.mxu1 %v10880_v40  ;;  %7040 = vrcp.f32 %v3271_v54  ;;  %6169 = vmatprep.subr.bf16.mxu0 %v10880_v40  ;;  %v3960_v4 = vsel %vm2419_vm3, %v3835_v24, 0  ;;  %v11029_v24 = vld [vmem:[#allocation31_spill] sm:$0xff] }
 0x471   :  { %v7027_v59 = vpop.eup %7026  ;;  %2793 = vmax.xlane.f32.xlu1 %v2792_v3  ;;  %7042 = vrcp.f32 %v9008_v51  ;;  %v2883_v3 = vsub.f32 %v11028_v47, %v11027_v50 }
 0x472   :  { %v3256_v61 = vpop.xlane.xlu1 %3255  ;;  %v3717_v10 = vmul.f32 %v7027_v59, %v8868_v18  ;;  %v7029_v32 = vpop.eup %7028  ;;  %v1105_v59 = vcombine.high %v449_v25, %v449_v25  ;;  %7044 = vrcp.f32 %v9036_v15  ;;  %v11032_v15 = vld [vmem:[#allocation119_spill] sm:$0xff] }
 0x473   :  { %v9400_v38 = vpop.eup %7030  ;;  %v3719_v51 = vmul.f32 %v7029_v32, %v8847_v17 }
 0x474   :  { %v3836_v46 = vpack.c.bf16 %v3717_v10, %v3716_v62  ;;  %v7033_v54 = vpop.eup %7032  ;;  %v3398_v2 = vsel %vm2419_vm3, %v9400_v38, 0.0  ;;  %v3090_v10 = vmul.f32 1.442695, %v2883_v3  ;;  %v1122_v50 = vpack.c.bf16 %v1105_v59, %v1105_v59 }
 0x475   :  { %2796 = vmax.xlane.f32.xlu1 %v2795_v30  ;;  %v7035_v43 = vpop.eup %7034  ;;  %v3718_v62 = vmul.f32 %v7033_v54, %v11029_v24  ;;  %v11031_v54 = vsub.f32 %v8162_v28, %v8816_v60  ;;  %v11033_v28 = vld [vmem:[#allocation34_spill] sm:$0xff] }
 0x476   :  { %v3259_v20 = vpop.xlane.xlu1 %3258  ;;  %v4006_v18 = vsel %vm2419_vm3, %v3836_v46, 0  ;;  %6154 = vmatmul.mubr.msk.bf16.vlgmr.msra.gmra.mrb[76].mxu0 %vm2419_vm3, %v1121_v57  ;;  %v9408_v19 = vpop.eup %7036  ;;  %v11030_v46 = vld [vmem:[#allocation135_spill] sm:$0xff]  ;;  %7046 = vpow2.f32 %v3090_v10  ;;  %v11034_v24 = vld [vmem:[#allocation122_spill] sm:$0xff]  ;;  %v11035_v10 = vld [vmem:[#allocation76_spill] sm:$0xff] }
 0x477   :  { %6164 = vmatpush3.bf16.xpose.msra.mxu1 %v3960_v4  ;;  %6170 = vmatpush3.bf16.xpose.msra.mxu0 %v4006_v18  ;;  %v3724_v57 = vmul.f32 %v7035_v43, %v11030_v46  ;;  %v3837_v32 = vpack.c.bf16 %v3719_v51, %v3718_v62  ;;  %v3401_v47 = vsel %vm2419_vm3, %v9408_v19, 0.0  ;;  %v3086_v3 = vmul.f32 1.442695, %v11031_v54  ;;  %v11036_v46 = vld [vmem:[#allocation150_spill] sm:$0xff] }
 0x478   :  { %6181 = vmatprep.subr.bf16.mxu1 %v10880_v40  ;;  %6171 = vmatprep.subr.bf16.mxu0 %v10880_v40  ;;  %v2777_v62 = vsel %vm2419_vm3, %v11034_v24, -inf }
 0x479   :  { %v7039_v41 = vpop.eup %7038  ;;  %3399 = vadd.xlane.f32.xlu1 %v3398_v2  ;;  %6177 = vmatprep.mubr.msk.bf16.mxu0 %vm7355_vm4, %v10880_v40  ;;  %v4009_v59 = vsel %vm2419_vm3, %v3837_v32, 0  ;;  %v2774_v2 = vsel %vm2419_vm3, %v11032_v15, -inf }
 0x47a   :  { %v3280_v30 = vpop.xlane.xlu1 %3279  ;;  %v3725_v17 = vmul.f32 %v7039_v41, %v8894_v63  ;;  %v7041_v25 = vpop.eup %7040 }
 0x47b   :  { %v7043_v18 = vpop.eup %7042  ;;  %v3727_v51 = vmul.f32 %v7041_v25, %v8883_v31 }
 0x47c   :  { %v3840_v4 = vpack.c.bf16 %v3725_v17, %v3724_v57  ;;  %v3726_v60 = vmul.f32 %v7043_v18, %v11033_v28  ;;  %v11037_v57 = vsub.f32 %v11035_v10, %v11036_v46  ;;  %v7045_v32 = vpop.eup %7044  ;;  %v11039_v18 = vld [vmem:[#allocation41_spill] sm:$0xff]  ;;  %v11045_v46 = vld [vmem:[#allocation75_spill] sm:$0xff] }
 0x47d   :  { %3402 = vadd.xlane.f32.xlu1 %v3401_v47  ;;  %v11038_v47 = vld [vmem:[#allocation118_spill] sm:$0xff]  ;;  %v3720_v54 = vmul.f32 %v7045_v32, %v11039_v18  ;;  %v11044_v10 = vld [vmem:[#allocation69_spill] sm:$0xff]  ;;  %v11049_v18 = vld [vmem:[#allocation159_spill] sm:$0xff] }
 0x47e   :  { %6166 = vmatmul.mubr.msk.bf16.vlgmr.msra.gmra.mrb[76].mxu1 %vm2419_vm3, %v1122_v50  ;;  %v3253_v63 = vpop.xlane.xlu1 %3252  ;;  %v4061_v43 = vsel %vm2419_vm3, %v3840_v4, 0  ;;  %v3841_v41 = vpack.c.bf16 %v3727_v51, %v3726_v60  ;;  %v3092_v17 = vmul.f32 1.442695, %v11037_v57  ;;  %v11041_v51 = vld [vmem:[#allocation81_spill] sm:$0xff]  ;;  %v2886_v57 = vsub.f32 %v11045_v46, %v11044_v10 }
 0x47f   :  { %7048 = vrcp.f32 %v3253_v63  ;;  %6182 = vmatpush3.bf16.xpose.msra.mxu1 %v4061_v43  ;;  %6189 = vmatprep.mubr.msk.bf16.mxu1 %vm7355_vm4, %v10880_v40 }
 0x480   :  { %6172 = vmatpush3.bf16.xpose.msra.mxu0 %v4009_v59  ;;  %6183 = vmatprep.subr.bf16.mxu1 %v10880_v40  ;;  %7050 = vrcp.f32 %v3259_v20  ;;  %v4064_v20 = vsel %vm2419_vm3, %v3841_v41, 0  ;;  %v9443_v50 = vpop.eup %7046  ;;  %v11042_v59 = vld [vmem:[#allocation154_spill] sm:$0xff] }
 0x481   :  { %2775 = vmax.xlane.f32.xlu1 %v2774_v2  ;;  %6173 = vmatprep.subr.bf16.mxu0 %v10880_v40  ;;  %7052 = vpow2.f32 %v3086_v3  ;;  %v11040_v3 = vld [vmem:[#allocation162_spill] sm:$0xff]  ;;  %v11043_v2 = vsub.f32 %v11041_v51, %v11042_v59  ;;  %v3425_v41 = vsel %vm2419_vm3, %v9443_v50, 0.0 }
 0x482   :  { %v3283_v31 = vpop.xlane.xlu1 %3282  ;;  %7054 = vrcp.f32 %v3256_v61  ;;  %v2798_v61 = vsel %vm2419_vm3, %v11038_v47, -inf }
 0x483   :  { %7056 = vrcp.f32 %v9053_v16  ;;  %v3094_v28 = vmul.f32 1.442695, %v11043_v2  ;;  %v3096_v2 = vmul.f32 1.442695, %v2886_v57 }
 0x485   :  { %2778 = vmax.xlane.f32.xlu1 %v2777_v62 }
 0x486   :  { %v3277_v25 = vpop.xlane.xlu1 %3276 }
 0x487   :  { %7058 = vrcp.f32 %v3277_v25  ;;  %6184 = vmatpush3.bf16.xpose.msra.mxu1 %v4064_v20  ;;  %v11047_v25 = vld [vmem:[#allocation156_spill] sm:$0xff] }
 0x488   :  { %6185 = vmatprep.subr.bf16.mxu1 %v10880_v40  ;;  %7060 = vrcp.f32 %v3283_v31 }
 0x489   :  { %v7049_v4 = vpop.eup %7048  ;;  %2799 = vmax.xlane.f32.xlu1 %v2798_v61  ;;  %7062 = vpow2.f32 %v3092_v17  ;;  %v11046_v17 = vld [vmem:[#allocation77_spill] sm:$0xff] }
 0x48a   :  { %v3286_v16 = vpop.xlane.xlu1 %3285  ;;  %v3721_v63 = vmul.f32 %v7049_v4, %v11040_v3  ;;  %v7051_v43 = vpop.eup %7050  ;;  %7064 = vrcp.f32 %v3280_v30  ;;  %v11048_v20 = vsub.f32 %v11046_v17, %v11047_v25  ;;  %v11053_v25 = vld [vmem:[#allocation68_spill] sm:$0xff] }
 0x48b   :  { %v9453_v60 = vpop.eup %7052  ;;  %v3723_v30 = vmul.f32 %v7051_v43, %v11049_v18  ;;  %7066 = vpow2.f32 %v3094_v28  ;;  %v11052_v43 = vld [vmem:[#allocation72_spill] sm:$0xff] }
 0x48c   :  { %v3838_v62 = vpack.c.bf16 %v3721_v63, %v3720_v54  ;;  %v7055_v31 = vpop.eup %7054  ;;  %v3108_v32 = vmul.f32 1.442695, %v11048_v20  ;;  %v3419_v54 = vsel %vm2419_vm3, %v9453_v60, 0.0  ;;  %v11050_v63 = vld [vmem:[#allocation157_spill] sm:$0xff]  ;;  %7068 = vrcp.f32 %v3286_v16  ;;  %v11054_v20 = vld [vmem:[#allocation74_spill] sm:$0xff] }
 0x48d   :  { %3426 = vadd.xlane.f32.xlu1 %v3425_v41  ;;  %v7057_v3 = vpop.eup %7056  ;;  %v3722_v51 = vmul.f32 %v7055_v31, %v11050_v63  ;;  %v2801_v31 = vsel %vm2419_vm3, %v11055_v27, -inf }
 0x48e   :  { %v3295_v61 = vpop.xlane.xlu1 %3294  ;;  %v4012_v4 = vsel %vm2419_vm3, %v3838_v62, 0  ;;  %7070 = vpow2.f32 %v3108_v32  ;;  %v11051_v62 = vld [vmem:[#allocation137_spill] sm:$0xff] }
 0x48f   :  { %6174 = vmatpush3.bf16.xpose.msra.mxu0 %v4012_v4  ;;  %v3839_v10 = vpack.c.bf16 %v3723_v30, %v3722_v51  ;;  %v3728_v46 = vmul.f32 %v7057_v3, %v11051_v62  ;;  %v2894_v4 = vsub.f32 %v11054_v20, %v11053_v25  ;;  %v11059_v62 = vld [vmem:[#allocation98_spill] sm:$0xff] }
 0x490   :  { %6175 = vmatprep.subr.bf16.mxu0 %v10880_v40 }
 0x491   :  { %v7059_v59 = vpop.eup %7058  ;;  %3420 = vadd.xlane.f32.xlu1 %v3419_v54  ;;  %v4015_v30 = vsel %vm2419_vm3, %v3839_v10, 0  ;;  %v11056_v54 = vld [vmem:[#allocation164_spill] sm:$0xff]  ;;  %v3112_v51 = vmul.f32 1.442695, %v2894_v4  ;;  %v11063_v10 = vld [vmem:[#allocation161_spill] sm:$0xff] }
 0x492   :  { %v3289_v41 = vpop.xlane.xlu1 %3288  ;;  %v3729_v17 = vmul.f32 %v7059_v59, %v11052_v43  ;;  %v7061_v28 = vpop.eup %7060  ;;  %v11057_v59 = vld [vmem:[#allocation42_spill] sm:$0xff] }
 0x493   :  { %7072 = vrcp.f32 %v3289_v41  ;;  %v9472_v18 = vpop.eup %7062  ;;  %v3731_v63 = vmul.f32 %v7061_v28, %v11056_v54  ;;  %v11058_v41 = vld [vmem:[#allocation20_spill] sm:$0xff] }
 0x494   :  { %v3842_v57 = vpack.c.bf16 %v3729_v17, %v3728_v46  ;;  %v7065_v16 = vpop.eup %7064  ;;  %7074 = vrcp.f32 %v3295_v61  ;;  %v450_v43 = vadd.f32 %v11059_v62, %v11058_v41  ;;  %v11060_v46 = vld [vmem:[#allocation84_spill] sm:$0xff]  ;;  %v11065_v41 = vld [vmem:[#allocation39_spill] sm:$0xff] }
 0x495   :  { %2802 = vmax.xlane.f32.xlu1 %v2801_v31  ;;  %7076 = vpow2.f32 %v3096_v2  ;;  %v11061_v17 = vld [vmem:[#allocation160_spill] sm:$0xff]  ;;  %v3428_v2 = vsel %vm2419_vm3, %v9472_v18, 0.0  ;;  %v3730_v20 = vmul.f32 %v7065_v16, %v11063_v10  ;;  %v9490_v28 = vpop.eup %7066  ;;  %v11064_v16 = vld [vmem:[#allocation85_spill] sm:$0xff] }
 0x496   :  { %v3310_v32 = vpop.xlane.xlu1 %3309  ;;  %v4067_v3 = vsel %vm2419_vm3, %v3842_v57, 0  ;;  %7078 = vrcp.f32 %v11057_v59  ;;  %v11062_v61 = vsub.f32 %v11060_v46, %v11061_v17  ;;  %v7069_v57 = vpop.eup %7068  ;;  %v3431_v54 = vsel %vm2419_vm3, %v9490_v28, 0.0  ;;  %v11068_v10 = vld [vmem:[#allocation36_spill] sm:$0xff] }
 0x497   :  { %6176 = vmatpush3.bf16.xpose.msra.mxu0 %v4015_v30  ;;  %6186 = vmatpush3.bf16.xpose.msra.mxu1 %v4067_v3  ;;  %v3843_v31 = vpack.c.bf16 %v3731_v63, %v3730_v20  ;;  %7080 = vpow2.f32 %v3112_v51  ;;  %v1123_v3 = vpack.c.bf16 %v450_v43, %v450_v43  ;;  %v11066_v46 = vsub.f32 %v11064_v16, %v11065_v41  ;;  %v11067_v51 = vld [vmem:[#allocation38_spill] sm:$0xff]  ;;  %v11069_v41 = vld [vmem:[#allocation80_spill] sm:$0xff] }
 0x498   :  { %v3100_v25 = vmul.f32 1.442695, %v11062_v61  ;;  %6187 = vmatprep.subr.bf16.mxu1 %v10880_v40  ;;  %6193 = vmatprep.subr.bf16.mxu0 %v10880_v40  ;;  %v9492_v30 = vpop.eup %7070 }
 0x499   :  { %3429 = vadd.xlane.f32.xlu1 %v3428_v2  ;;  %v3116_v17 = vmul.f32 1.442695, %v11066_v46  ;;  %v4070_v63 = vsel %vm2419_vm3, %v3843_v31, 0  ;;  %v3732_v2 = vmul.f32 %v7069_v57, %v11067_v51  ;;  %v3452_v16 = vsel %vm2419_vm3, %v9492_v30, 0.0 }
 0x49a   :  { %v3319_v4 = vpop.xlane.xlu1 %3318  ;;  %7082 = vpow2.f32 %v3100_v25 }
 0x49b   :  { %7084 = vrcp.f32 %v3310_v32 }
 0x49d   :  { %v7073_v59 = vpop.eup %7072  ;;  %3432 = vadd.xlane.f32.xlu1 %v3431_v54  ;;  %v1106_v54 = vcombine.high %v450_v43, %v450_v43 }
 0x49e   :  { %6178 = vmatmul.mubr.msk.bf16.vlgmr.msra.gmra.mrb[80].mxu0 %vm2419_vm3, %v1123_v3  ;;  %v3313_v61 = vpop.xlane.xlu1 %3312  ;;  %v3733_v20 = vmul.f32 %v7073_v59, %v11068_v10  ;;  %v7075_v25 = vpop.eup %7074 }
 0x49f   :  { %7086 = vrcp.f32 %v3313_v61  ;;  %6188 = vmatpush3.bf16.xpose.msra.mxu1 %v4070_v63  ;;  %6201 = vmatprep.mubr.msk.bf16.mxu0 %vm7355_vm4, %v10880_v40  ;;  %v9505_v32 = vpop.eup %7076  ;;  %v3735_v46 = vmul.f32 %v7075_v25, %v11069_v41  ;;  %v11070_v61 = vld [vmem:[#allocation83_spill] sm:$0xff]  ;;  %v11071_v63 = vld [vmem:[#allocation158_spill] sm:$0xff]  ;;  %v1124_v43 = vpack.c.bf16 %v1106_v54, %v1106_v54 }
 0x4a0   :  { %v3844_v3 = vpack.c.bf16 %v3733_v20, %v3732_v2  ;;  %6205 = vmatprep.subr.bf16.mxu1 %v10880_v40  ;;  %v7079_v31 = vpop.eup %7078  ;;  %7088 = vrcp.f32 %v3319_v4  ;;  %v11072_v51 = vsub.f32 %v11070_v61, %v11071_v63  ;;  %v3434_v2 = vsel %vm2419_vm3, %v9505_v32, 0.0  ;;  %v11073_v4 = vld [vmem:[#allocation138_spill] sm:$0xff]  ;;  %v11077_v63 = vld [vmem:[#allocation163_spill] sm:$0xff] }
 0x4a1   :  { %3453 = vadd.xlane.f32.xlu1 %v3452_v16  ;;  %7090 = vpow2.f32 %v3116_v17  ;;  %v3734_v17 = vmul.f32 %v7079_v31, %v11073_v4  ;;  %v9520_v20 = vpop.eup %7080  ;;  %v11074_v16 = vld [vmem:[#allocation115_spill] sm:$0xff]  ;;  %v11076_v61 = vld [vmem:[#allocation82_spill] sm:$0xff] }
 0x4a2   :  { %v3304_v57 = vpop.xlane.xlu1 %3303  ;;  %v4116_v59 = vsel %vm2419_vm3, %v3844_v3, 0  ;;  %v3104_v10 = vmul.f32 1.442695, %v11072_v51  ;;  %7092 = vrcp.f32 %v9091_v7  ;;  %v11075_v3 = vld [vmem:[#allocation92_spill] sm:$0xff]  ;;  %v11078_v7 = vsub.f32 %v11076_v61, %v11077_v63 }
 0x4a3   :  { %6194 = vmatpush3.bf16.xpose.msra.mxu0 %v4116_v59  ;;  %v2900_v25 = vsub.f32 %v11075_v3, %v11074_v16  ;;  %v3845_v51 = vpack.c.bf16 %v3735_v46, %v3734_v17  ;;  %v3458_v31 = vsel %vm2419_vm3, %v9520_v20, 0.0  ;;  %v11079_v16 = vld [vmem:[#allocation29_spill] sm:$0xff]  ;;  %v11081_v17 = vld [vmem:[#allocation79_spill] sm:$0xff]  ;;  %v11082_v61 = vld [vmem:[#allocation32_spill] sm:$0xff] }
 0x4a4   :  { %6195 = vmatprep.subr.bf16.mxu0 %v10880_v40  ;;  %v9524_v41 = vpop.eup %7082  ;;  %v3120_v59 = vmul.f32 1.442695, %v11078_v7  ;;  %7094 = vpow2.f32 %v3104_v10  ;;  %v11080_v3 = vld [vmem:[#allocation93_spill] sm:$0xff] }
 0x4a5   :  { %3435 = vadd.xlane.f32.xlu1 %v3434_v2  ;;  %v7085_v8 = vpop.eup %7084  ;;  %v3124_v2 = vmul.f32 1.442695, %v2900_v25  ;;  %v2908_v36 = vsub.f32 %v11080_v3, %v11079_v16  ;;  %7096 = vrcp.f32 %v9119_v58  ;;  %v4119_v46 = vsel %vm2419_vm3, %v3845_v51, 0 }
 0x4a6   :  { %6190 = vmatmul.mubr.msk.bf16.vlgmr.msra.gmra.mrb[80].mxu1 %vm2419_vm3, %v1124_v43  ;;  %v3328_v54 = vpop.xlane.xlu1 %3327  ;;  %7098 = vpow2.f32 %v3120_v59  ;;  %v3740_v10 = vmul.f32 %v7085_v8, %v11081_v17  ;;  %v3440_v25 = vsel %vm2419_vm3, %v9524_v41, 0.0  ;;  %v11084_v59 = vld [vmem:[#allocation25_spill] sm:$0xff] }
 0x4a7   :  { %6213 = vmatprep.mubr.msk.bf16.mxu1 %vm7355_vm4, %v10880_v40  ;;  %v3140_v8 = vmul.f32 1.442695, %v2908_v36 }
 0x4a9   :  { %v7087_v4 = vpop.eup %7086  ;;  %3459 = vadd.xlane.f32.xlu1 %v3458_v31  ;;  %v11085_v31 = vld [vmem:[#allocation91_spill] sm:$0xff] }
 0x4aa   :  { %v3301_v43 = vpop.xlane.xlu1 %3300  ;;  %v3741_v63 = vmul.f32 %v7087_v4, %v11082_v61  ;;  %v7089_v7 = vpop.eup %7088  ;;  %v2902_v3 = vsub.f32 %v11085_v31, %v11084_v59 }
 0x4ab   :  { %7100 = vrcp.f32 %v3301_v43  ;;  %6196 = vmatpush3.bf16.xpose.msra.mxu0 %v4119_v46  ;;  %v9540_v62 = vpop.eup %7090  ;;  %v11086_v43 = vld [vmem:[#allocation35_spill] sm:$0xff] }
 0x4ac   :  { %11083 = vst [vmem:[#allocation61_spill] sm:$0xff] %v9540_v62  ;;  %v3848_v16 = vpack.c.bf16 %v3741_v63, %v3740_v10  ;;  %6197 = vmatprep.subr.bf16.mxu0 %v10880_v40  ;;  %v7093_v58 = vpop.eup %7092  ;;  %7102 = vrcp.f32 %v3304_v57  ;;  %v3743_v46 = vmul.f32 %v7089_v7, %v11086_v43  ;;  %v3464_v17 = vsel %vm2419_vm3, %v9540_v62, 0.0  ;;  %v11087_v10 = vld [vmem:[#allocation50_spill] sm:$0xff] }
 0x4ad   :  { %3441 = vadd.xlane.f32.xlu1 %v3440_v25  ;;  %7104 = vpow2.f32 %v3124_v2  ;;  %v3742_v61 = vmul.f32 %v7093_v58, %v11087_v10  ;;  %v3128_v36 = vmul.f32 1.442695, %v2902_v3  ;;  %v11089_v25 = vld [vmem:[#allocation28_spill] sm:$0xff]  ;;  %v11093_v43 = vld [vmem:[#allocation86_spill] sm:$0xff] }
 0x4ae   :  { %v3331_v51 = vpop.xlane.xlu1 %3330  ;;  %v4171_v4 = vsel %vm2419_vm3, %v3848_v16, 0  ;;  %7106 = vrcp.f32 %v9145_v42  ;;  %v9554_v63 = vpop.eup %7094  ;;  %v11090_v42 = vld [vmem:[#allocation90_spill] sm:$0xff] }
 0x4af   :  { %6206 = vmatpush3.bf16.xpose.msra.mxu1 %v4171_v4  ;;  %11088 = vst [vmem:[#allocation57_spill] sm:$0xff] %v9554_v63  ;;  %7108 = vrcp.f32 %v9169_v23  ;;  %v3849_v2 = vpack.c.bf16 %v3743_v46, %v3742_v61  ;;  %v7097_v7 = vpop.eup %7096  ;;  %v2910_v16 = vsub.f32 %v11090_v42, %v11089_v25  ;;  %v3446_v31 = vsel %vm2419_vm3, %v9554_v63, 0.0 }
 0x4b0   :  { %6207 = vmatprep.subr.bf16.mxu1 %v10880_v40  ;;  %7110 = vpow2.f32 %v3140_v8  ;;  %v9559_v59 = vpop.eup %7098  ;;  %v11092_v8 = vld [vmem:[#allocation140_spill] sm:$0xff] }
 0x4b1   :  { %3465 = vadd.xlane.f32.xlu1 %v3464_v17  ;;  %11091 = vst [vmem:[#allocation100_spill] sm:$0xff] %v9559_v59  ;;  %v4174_v3 = vsel %vm2419_vm3, %v3849_v2, 0  ;;  %v3736_v4 = vmul.f32 %v7097_v7, %v11092_v8  ;;  %v3144_v10 = vmul.f32 1.442695, %v2910_v16  ;;  %v11096_v2 = vld [vmem:[#allocation47_spill] sm:$0xff]  ;;  %v11098_v16 = vld [vmem:[#allocation40_spill] sm:$0xff] }
 0x4b2   :  { %v3325_v57 = vpop.xlane.xlu1 %3324 }
 0x4b3   :  { %7112 = vrcp.f32 %v3325_v57  ;;  %v3470_v57 = vsel %vm2419_vm3, %v9559_v59, 0.0  ;;  %v11103_v59 = vld [vmem:[#allocation95_spill] sm:$0xff] }
 0x4b4   :  { %7114 = vrcp.f32 %v3331_v51 }
 0x4b5   :  { %v7101_v58 = vpop.eup %7100  ;;  %3447 = vadd.xlane.f32.xlu1 %v3446_v31  ;;  %7116 = vpow2.f32 %v3128_v36  ;;  %v11095_v36 = vld [vmem:[#allocation102_spill] sm:$0xff] }
 0x4b6   :  { %v3334_v23 = vpop.xlane.xlu1 %3333  ;;  %v3737_v46 = vmul.f32 %v7101_v58, %v11093_v43  ;;  %v7103_v17 = vpop.eup %7102  ;;  %7118 = vrcp.f32 %v3328_v54  ;;  %v11097_v42 = vsub.f32 %v11095_v36, %v11096_v2  ;;  %v11099_v43 = vld [vmem:[#allocation141_spill] sm:$0xff]  ;;  %v11100_v2 = vld [vmem:[#allocation144_spill] sm:$0xff] }
 0x4b7   :  { %6208 = vmatpush3.bf16.xpose.msra.mxu1 %v4174_v3  ;;  %v9566_v61 = vpop.eup %7104  ;;  %v3738_v54 = vmul.f32 %v7103_v17, %v11098_v16  ;;  %7120 = vpow2.f32 %v3144_v10  ;;  %v11102_v16 = vld [vmem:[#allocation103_spill] sm:$0xff] }
 0x4b8   :  { %11094 = vst [vmem:[#allocation67_spill] sm:$0xff] %v9566_v61  ;;  %v3846_v25 = vpack.c.bf16 %v3737_v46, %v3736_v4  ;;  %6209 = vmatprep.subr.bf16.mxu1 %v10880_v40  ;;  %v7107_v51 = vpop.eup %7106  ;;  %v3132_v7 = vmul.f32 1.442695, %v11097_v42  ;;  %v3476_v4 = vsel %vm2419_vm3, %v9566_v61, 0.0  ;;  %7122 = vrcp.f32 %v3334_v23  ;;  %v11101_v42 = vld [vmem:[#allocation46_spill] sm:$0xff] }
 0x4b9   :  { %3471 = vadd.xlane.f32.xlu1 %v3470_v57  ;;  %v7109_v3 = vpop.eup %7108  ;;  %v3739_v46 = vmul.f32 %v7107_v51, %v11099_v43  ;;  %v11104_v63 = vsub.f32 %v11102_v16, %v11103_v59  ;;  %v11106_v43 = vld [vmem:[#allocation88_spill] sm:$0xff] }
 0x4ba   :  { %v3343_v31 = vpop.xlane.xlu1 %3342  ;;  %v4122_v58 = vsel %vm2419_vm3, %v3846_v25, 0  ;;  %v9576_v8 = vpop.eup %7110  ;;  %7124 = vpow2.f32 %v3132_v7  ;;  %v3744_v17 = vmul.f32 %v7109_v3, %v11100_v2  ;;  %v11105_v7 = vld [vmem:[#allocation101_spill] sm:$0xff]  ;;  %v11108_v3 = vld [vmem:[#allocation55_spill] sm:$0xff] }
 0x4bb   :  { %6198 = vmatpush3.bf16.xpose.msra.mxu0 %v4122_v58  ;;  %v3847_v25 = vpack.c.bf16 %v3739_v46, %v3738_v54  ;;  %v3148_v62 = vmul.f32 1.442695, %v11104_v63  ;;  %v3500_v51 = vsel %vm2419_vm3, %v9576_v8, 0.0  ;;  %v11107_v54 = vsub.f32 %v11105_v7, %v11106_v43 }
 0x4bc   :  { %6199 = vmatprep.subr.bf16.mxu0 %v10880_v40 }
 0x4bd   :  { %v7113_v57 = vpop.eup %7112  ;;  %3477 = vadd.xlane.f32.xlu1 %v3476_v4  ;;  %v3136_v46 = vmul.f32 1.442695, %v11107_v54  ;;  %v4125_v59 = vsel %vm2419_vm3, %v3847_v25, 0 }
 0x4be   :  { %v3337_v36 = vpop.xlane.xlu1 %3336  ;;  %v3745_v10 = vmul.f32 %v7113_v57, %v11101_v42  ;;  %v7115_v58 = vpop.eup %7114  ;;  %v11111_v42 = vld [vmem:[#allocation13_spill] sm:$0xff] }
 0x4bf   :  { %7126 = vrcp.f32 %v3337_v36  ;;  %v9587_v61 = vpop.eup %7116  ;;  %v11109_v36 = vld [vmem:[#allocation43_spill] sm:$0xff] }
 0x4c0   :  { %v3850_v23 = vpack.c.bf16 %v3745_v10, %v3744_v17  ;;  %v7119_v4 = vpop.eup %7118  ;;  %7128 = vrcp.f32 %v3343_v31  ;;  %v3747_v2 = vmul.f32 %v7115_v58, %v11109_v36  ;;  %v11110_v17 = vld [vmem:[#allocation106_spill] sm:$0xff]  ;;  %v3482_v16 = vsel %vm2419_vm3, %v9587_v61, 0.0  ;;  %v11112_v31 = vld [vmem:[#allocation87_spill] sm:$0xff]  ;;  %v11114_v58 = vld [vmem:[#allocation96_spill] sm:$0xff] }
 0x4c1   :  { %3501 = vadd.xlane.f32.xlu1 %v3500_v51  ;;  %7130 = vrcp.f32 %v11108_v3  ;;  %v451_v10 = vadd.f32 %v11111_v42, %v11110_v17  ;;  %v3746_v51 = vmul.f32 %v7119_v4, %v11112_v31  ;;  %v9605_v25 = vpop.eup %7120 }
 0x4c2   :  { %v3367_v57 = vpop.xlane.xlu1 %3366  ;;  %v4177_v63 = vsel %vm2419_vm3, %v3850_v23, 0  ;;  %7132 = vpow2.f32 %v3148_v62  ;;  %v11113_v62 = vld [vmem:[#allocation99_spill] sm:$0xff]  ;;  %v7123_v3 = vpop.eup %7122  ;;  %v3506_v31 = vsel %vm2419_vm3, %v9605_v25, 0.0 }
 0x4c3   :  { %6200 = vmatpush3.bf16.xpose.msra.mxu0 %v4125_v59  ;;  %6210 = vmatpush3.bf16.xpose.msra.mxu1 %v4177_v63  ;;  %7134 = vrcp.f32 %v9225_v9  ;;  %v11115_v23 = vsub.f32 %v11113_v62, %v11114_v58  ;;  %v3851_v54 = vpack.c.bf16 %v3747_v2, %v3746_v51  ;;  %v11116_v59 = vld [vmem:[#allocation151_spill] sm:$0xff]  ;;  %v1125_v42 = vpack.c.bf16 %v451_v10, %v451_v10 }
 0x4c4   :  { %6211 = vmatprep.subr.bf16.mxu1 %v10880_v40  ;;  %6217 = vmatprep.subr.bf16.mxu0 %v10880_v40  ;;  %7136 = vpow2.f32 %v3136_v46  ;;  %v11117_v63 = vld [vmem:[#allocation111_spill] sm:$0xff]  ;;  %v9613_v4 = vpop.eup %7124  ;;  %v11120_v46 = vld [vmem:[#allocation112_spill] sm:$0xff] }
 0x4c5   :  { %3483 = vadd.xlane.f32.xlu1 %v3482_v16  ;;  %v3152_v7 = vmul.f32 1.442695, %v11115_v23  ;;  %v2916_v36 = vsub.f32 %v11117_v63, %v11116_v59  ;;  %11118 = vst [vmem:[#allocation64_spill] sm:$0xff] %v9613_v4  ;;  %v11119_v16 = vld [vmem:[#allocation155_spill] sm:$0xff]  ;;  %v4180_v51 = vsel %vm2419_vm3, %v3851_v54, 0  ;;  %v1107_v63 = vcombine.high %v451_v10, %v451_v10 }
 0x4c6   :  { %v3361_v43 = vpop.xlane.xlu1 %3360  ;;  %v2924_v17 = vsub.f32 %v11120_v46, %v11119_v16  ;;  %v11121_v62 = vld [vmem:[#allocation139_spill] sm:$0xff]  ;;  %v3488_v54 = vsel %vm2419_vm3, %v9613_v4, 0.0  ;;  %v11128_v4 = vld [vmem:[#allocation109_spill] sm:$0xff] }
 0x4c7   :  { %7138 = vrcp.f32 %v3361_v43  ;;  %v3748_v58 = vmul.f32 %v7123_v3, %v11121_v62  ;;  %v3156_v59 = vmul.f32 1.442695, %v2916_v36  ;;  %v1126_v62 = vpack.c.bf16 %v1107_v63, %v1107_v63  ;;  %v11129_v63 = vld [vmem:[#allocation147_spill] sm:$0xff] }
 0x4c8   :  { %7140 = vrcp.f32 %v3367_v57  ;;  %v3172_v3 = vmul.f32 1.442695, %v2924_v17 }
 0x4c9   :  { %v7127_v9 = vpop.eup %7126  ;;  %3507 = vadd.xlane.f32.xlu1 %v3506_v31  ;;  %7142 = vpow2.f32 %v3152_v7  ;;  %v11122_v7 = vld [vmem:[#allocation149_spill] sm:$0xff]  ;;  %v11123_v31 = vld [vmem:[#allocation110_spill] sm:$0xff] }
 0x4ca   :  { %6202 = vmatmul.mubr.msk.bf16.vlgmr.msra.gmra.mrb[84].mxu0 %vm2419_vm3, %v1125_v42  ;;  %v3352_v2 = vpop.xlane.xlu1 %3351  ;;  %v3749_v23 = vmul.f32 %v7127_v9, %v9181_v13  ;;  %v7129_v43 = vpop.eup %7128  ;;  %7144 = vrcp.f32 %v9207_v56  ;;  %v2918_v42 = vsub.f32 %v11123_v31, %v11122_v7  ;;  %v11125_v9 = vld [vmem:[#allocation44_spill] sm:$0xff] }
 0x4cb   :  { %6212 = vmatpush3.bf16.xpose.msra.mxu1 %v4180_v51  ;;  %6225 = vmatprep.mubr.msk.bf16.mxu0 %vm7355_vm4, %v10880_v40  ;;  %v7131_v57 = vpop.eup %7130  ;;  %v3751_v46 = vmul.f32 %v7129_v43, %v11125_v9  ;;  %7146 = vpow2.f32 %v3156_v59 }
 0x4cc   :  { %v3852_v16 = vpack.c.bf16 %v3749_v23, %v3748_v58  ;;  %6229 = vmatprep.subr.bf16.mxu1 %v10880_v40  ;;  %v9631_v13 = vpop.eup %7132  ;;  %v3160_v7 = vmul.f32 1.442695, %v2918_v42  ;;  %v11126_v23 = vld [vmem:[#allocation145_spill] sm:$0xff]  ;;  %7148 = vrcp.f32 %v9242_v11 }
 0x4cd   :  { %11124 = vst [vmem:[#allocation60_spill] sm:$0xff] %v9631_v13  ;;  %3489 = vadd.xlane.f32.xlu1 %v3488_v54  ;;  %v7135_v51 = vpop.eup %7134  ;;  %v3512_v58 = vsel %vm2419_vm3, %v9631_v13, 0.0  ;;  %v3750_v31 = vmul.f32 %v7131_v57, %v11126_v23  ;;  %v11127_v54 = vld [vmem:[#allocation152_spill] sm:$0xff]  ;;  %7150 = vpow2.f32 %v3172_v3  ;;  %v11131_v23 = vld [vmem:[#allocation97_spill] sm:$0xff] }
 0x4ce   :  { %v3355_v56 = vpop.xlane.xlu1 %3354  ;;  %v4226_v36 = vsel %vm2419_vm3, %v3852_v16, 0  ;;  %v9635_v10 = vpop.eup %7136  ;;  %v2926_v16 = vsub.f32 %v11128_v4, %v11127_v54  ;;  %v3756_v42 = vmul.f32 %v7135_v51, %v11129_v63 }
 0x4cf   :  { %6218 = vmatpush3.bf16.xpose.msra.mxu0 %v4226_v36  ;;  %v3853_v59 = vpack.c.bf16 %v3751_v46, %v3750_v31  ;;  %v11130_v36 = vld [vmem:[#allocation108_spill] sm:$0xff]  ;;  %v3494_v11 = vsel %vm2419_vm3, %v9635_v10, 0.0 }
 0x4d0   :  { %6219 = vmatprep.subr.bf16.mxu0 %v10880_v40  ;;  %v3176_v46 = vmul.f32 1.442695, %v2926_v16 }
 0x4d1   :  { %v7139_v17 = vpop.eup %7138  ;;  %3513 = vadd.xlane.f32.xlu1 %v3512_v58  ;;  %v4229_v51 = vsel %vm2419_vm3, %v3853_v59, 0 }
 0x4d2   :  { %6214 = vmatmul.mubr.msk.bf16.vlgmr.msra.gmra.mrb[84].mxu1 %vm2419_vm3, %v1126_v62  ;;  %v3349_v43 = vpop.xlane.xlu1 %3348  ;;  %v3757_v9 = vmul.f32 %v7139_v17, %v11130_v36  ;;  %v7141_v13 = vpop.eup %7140  ;;  %v11132_v17 = vld [vmem:[#allocation146_spill] sm:$0xff] }
 0x4d3   :  { %7152 = vrcp.f32 %v3349_v43  ;;  %6237 = vmatprep.mubr.msk.bf16.mxu1 %vm7355_vm4, %v10880_v40  ;;  %v9649_v57 = vpop.eup %7142  ;;  %v3759_v31 = vmul.f32 %v7141_v13, %v11131_v23 }
 0x4d4   :  { %7154 = vpow2.f32 %v3160_v7  ;;  %v3856_v4 = vpack.c.bf16 %v3757_v9, %v3756_v42  ;;  %v7145_v3 = vpop.eup %7144  ;;  %v3518_v7 = vsel %vm2419_vm3, %v9649_v57, 0.0 }
 0x4d5   :  { %7156 = vrcp.f32 %v3355_v56  ;;  %3495 = vadd.xlane.f32.xlu1 %v3494_v11  ;;  %v3758_v54 = vmul.f32 %v7145_v3, %v11132_v17  ;;  %v9661_v56 = vpop.eup %7146 }
 0x4d6   :  { %v3379_v62 = vpop.xlane.xlu1 %3378  ;;  %v4281_v58 = vsel %vm2419_vm3, %v3856_v4, 0  ;;  %7158 = vrcp.f32 %v3352_v2  ;;  %v7149_v2 = vpop.eup %7148  ;;  %v3524_v59 = vsel %vm2419_vm3, %v9661_v56, 0.0 }
 0x4d7   :  { %6220 = vmatpush3.bf16.xpose.msra.mxu0 %v4229_v51  ;;  %6230 = vmatpush3.bf16.xpose.msra.mxu1 %v4281_v58  ;;  %7160 = vrcp.f32 %v9282_v37  ;;  %v3857_v13 = vpack.c.bf16 %v3759_v31, %v3758_v54  ;;  %v9664_v43 = vpop.eup %7150  ;;  %v11133_v37 = vld [vmem:[#allocation148_spill] sm:$0xff] }
 0x4d8   :  { %6231 = vmatprep.subr.bf16.mxu1 %v10880_v40  ;;  %6221 = vmatprep.subr.bf16.mxu0 %v10880_v40  ;;  %7162 = vpow2.f32 %v3176_v46  ;;  %v3752_v11 = vmul.f32 %v7149_v2, %v11133_v37  ;;  %v3548_v46 = vsel %vm2419_vm3, %v9664_v43, 0.0  ;;  %v11134_v31 = vld [vmem:[#allocation52_spill] sm:$0xff] }
 0x4d9   :  { %3519 = vadd.xlane.f32.xlu1 %v3518_v7  ;;  %v4284_v9 = vsel %vm2419_vm3, %v3857_v13, 0  ;;  %v11135_v54 = vld [vmem:[#allocation56_spill] sm:$0xff] }
 0x4da   :  { %v3373_v16 = vpop.xlane.xlu1 %3372 }
 0x4db   :  { %7164 = vrcp.f32 %v3373_v16 }
 0x4dc   :  { %7166 = vrcp.f32 %v3379_v62 }
 0x4dd   :  { %v7153_v63 = vpop.eup %7152  ;;  %3525 = vadd.xlane.f32.xlu1 %v3524_v59  ;;  %7168 = vrcp.f32 %v9261_v1 }
 0x4de   :  { %v9668_v42 = vpop.eup %7154  ;;  %v3382_v36 = vpop.xlane.xlu1 %3381  ;;  %v3753_v4 = vmul.f32 %v7153_v63, %v9246_v26  ;;  %v11136_v63 = vld [vmem:[#allocation65_spill] sm:$0xff] }
 0x4df   :  { %v7157_v3 = vpop.eup %7156  ;;  %6232 = vmatpush3.bf16.xpose.msra.mxu1 %v4284_v9  ;;  %v3530_v1 = vsel %vm2419_vm3, %v9668_v42, 0.0  ;;  %7170 = vrcp.f32 %v3382_v36 }
 0x4e0   :  { %v3854_v51 = vpack.c.bf16 %v3753_v4, %v3752_v11  ;;  %6233 = vmatprep.subr.bf16.mxu1 %v10880_v40  ;;  %v7159_v62 = vpop.eup %7158  ;;  %v3755_v7 = vmul.f32 %v7157_v3, %v11134_v31 }
 0x4e1   :  { %3549 = vadd.xlane.f32.xlu1 %v3548_v46  ;;  %v7161_v17 = vpop.eup %7160  ;;  %v3754_v16 = vmul.f32 %v7159_v62, %v11135_v54 }
 0x4e2   :  { %v3391_v58 = vpop.xlane.xlu1 %3390  ;;  %v4232_v23 = vsel %vm2419_vm3, %v3854_v51, 0  ;;  %v9679_v26 = vpop.eup %7162  ;;  %v3760_v9 = vmul.f32 %v7161_v17, %v11136_v63 }
 0x4e3   :  { %6222 = vmatpush3.bf16.xpose.msra.mxu0 %v4232_v23  ;;  %v3855_v59 = vpack.c.bf16 %v3755_v7, %v3754_v16  ;;  %v3554_v4 = vsel %vm2419_vm3, %v9679_v26, 0.0  ;;  %v11138_v7 = vld [vmem:[#allocation107_spill] sm:$0xff] }
 0x4e4   :  { %6223 = vmatprep.subr.bf16.mxu0 %v10880_v40 }
 0x4e5   :  { %v7165_v13 = vpop.eup %7164  ;;  %3531 = vadd.xlane.f32.xlu1 %v3530_v1  ;;  %v4235_v62 = vsel %vm2419_vm3, %v3855_v59, 0 }
 0x4e6   :  { %v3385_v2 = vpop.xlane.xlu1 %3384  ;;  %v3761_v37 = vmul.f32 %v7165_v13, %v9272_v35  ;;  %v7167_v11 = vpop.eup %7166  ;;  %v11137_v35 = vld [vmem:[#allocation18_spill] sm:$0xff] }
 0x4e7   :  { %7172 = vrcp.f32 %v3385_v2  ;;  %v7169_v46 = vpop.eup %7168  ;;  %v3763_v23 = vmul.f32 %v7167_v11, %v9258_v0  ;;  %v452_v31 = vadd.f32 %v11137_v35, %v9365_v22  ;;  %v11140_v35 = vld [vmem:[#allocation113_spill] sm:$0xff] }
 0x4e8   :  { %v3858_v3 = vpack.c.bf16 %v3761_v37, %v3760_v9  ;;  %7174 = vrcp.f32 %v3391_v58  ;;  %v3762_v17 = vmul.f32 %v7169_v46, %v11138_v7 }
 0x4e9   :  { %3555 = vadd.xlane.f32.xlu1 %v3554_v4  ;;  %7176 = vrcp.f32 %v9303_v44  ;;  %v7171_v54 = vpop.eup %7170  ;;  %v1127_v0 = vpack.c.bf16 %v452_v31, %v452_v31  ;;  %v11139_v4 = vld [vmem:[#allocation117_spill] sm:$0xff] }
 0x4ea   :  { %v3415_v51 = vpop.xlane.xlu1 %3414  ;;  %v4287_v36 = vsel %vm2419_vm3, %v3858_v3, 0  ;;  %7178 = vrcp.f32 %v9334_v14  ;;  %v3859_v1 = vpack.c.bf16 %v3763_v23, %v3762_v17  ;;  %v3764_v13 = vmul.f32 %v7171_v54, %v9279_v48 }
 0x4eb   :  { %6224 = vmatpush3.bf16.xpose.msra.mxu0 %v4235_v62  ;;  %6234 = vmatpush3.bf16.xpose.msra.mxu1 %v4287_v36 }
 0x4ec   :  { %6235 = vmatprep.subr.bf16.mxu1 %v10880_v40  ;;  %6241 = vmatprep.subr.bf16.mxu0 %v10880_v40  ;;  %v4290_v16 = vsel %vm2419_vm3, %v3859_v1, 0 }
 0x4ee   :  { %v3409_v58 = vpop.xlane.xlu1 %3408 }
 0x4ef   :  { %7180 = vrcp.f32 %v3409_v58 }
 0x4f0   :  { %7182 = vrcp.f32 %v9317_v55  ;;  %v1108_v55 = vcombine.high %v452_v31, %v452_v31 }
 0x4f1   :  { %v7173_v44 = vpop.eup %7172  ;;  %7184 = vrcp.f32 %v3415_v51 }
 0x4f2   :  { %7186 = vrcp.f32 %v9344_v52  ;;  %6226 = vmatmul.mubr.msk.bf16.vlgmr.msra.gmra.mrb[88].mxu0 %vm2419_vm3, %v1127_v0  ;;  %v3397_v22 = vpop.xlane.xlu1 %3396  ;;  %v3765_v14 = vmul.f32 %v7173_v44, %v9314_v5  ;;  %v7175_v2 = vpop.eup %7174  ;;  %v1128_v5 = vpack.c.bf16 %v1108_v55, %v1108_v55 }
 0x4f3   :  { %7188 = vrcp.f32 %v3397_v22  ;;  %6236 = vmatpush3.bf16.xpose.msra.mxu1 %v4290_v16  ;;  %6249 = vmatprep.mubr.msk.bf16.mxu0 %vm7355_vm4, %v10880_v40  ;;  %v7177_v52 = vpop.eup %7176  ;;  %v3767_v37 = vmul.f32 %v7175_v2, %v9298_v21  ;;  %v11142_v2 = vld [vmem:[#allocation116_spill] sm:$0xff] }
 0x4f4   :  { %v3860_v59 = vpack.c.bf16 %v3765_v14, %v3764_v13  ;;  %6253 = vmatprep.subr.bf16.mxu1 %v10880_v40  ;;  %v7179_v11 = vpop.eup %7178  ;;  %v3766_v3 = vmul.f32 %v7177_v52, %v11139_v4 }
 0x4f5   :  { %v3772_v31 = vmul.f32 %v7179_v11, %v11140_v35 }
 0x4f6   :  { %v2770_v63 = vpop.xlane.xlu1 %2769  ;;  %v4336_v9 = vsel %vm2419_vm3, %v3860_v59, 0  ;;  %v3861_v23 = vpack.c.bf16 %v3767_v37, %v3766_v3  ;;  %v9728_v59 = vpop.xlane.xlu0 %3423 }
 0x4f7   :  { %v2920_v48 = vsub.f32 %v11013_v29, %v2770_v63  ;;  %6242 = vmatpush3.bf16.xpose.msra.mxu0 %v4336_v9 }
 0x4f8   :  { %6243 = vmatprep.subr.bf16.mxu0 %v10880_v40  ;;  %v4339_v44 = vsel %vm2419_vm3, %v3861_v23, 0 }
 0x4f9   :  { %v7181_v46 = vpop.eup %7180  ;;  %v3164_v51 = vmul.f32 1.442695, %v2920_v48 }
 0x4fa   :  { %v7183_v62 = vpop.eup %7182  ;;  %6238 = vmatmul.mubr.msk.bf16.vlgmr.msra.gmra.mrb[88].mxu1 %vm2419_vm3, %v1128_v5  ;;  %v2773_v36 = vpop.xlane.xlu1 %2772  ;;  %v3773_v21 = vmul.f32 %v7181_v46, %v9331_v39 }
 0x4fb   :  { %v7185_v7 = vpop.eup %7184  ;;  %7190 = vpow2.f32 %v3164_v51  ;;  %v2921_v29 = vsub.f32 %v11020_v53, %v2773_v36  ;;  %6261 = vmatprep.mubr.msk.bf16.mxu1 %vm7355_vm4, %v10880_v40  ;;  %v11141_v53 = vld [vmem:[#allocation27_spill] sm:$0xff]  ;;  %v3774_v55 = vmul.f32 %v7183_v62, %v11142_v2  ;;  %v9737_v3 = vpop.xlane.xlu0 %3456 }
 0x4fc   :  { %v7187_v17 = vpop.eup %7186  ;;  %v3864_v58 = vpack.c.bf16 %v3773_v21, %v3772_v31  ;;  %v3775_v39 = vmul.f32 %v7185_v7, %v9323_v34 }
 0x4fd   :  { %v7189_v1 = vpop.eup %7188  ;;  %v3166_v54 = vmul.f32 1.442695, %v2921_v29  ;;  %v3768_v14 = vmul.f32 %v7187_v17, %v11141_v53 }
 0x4fe   :  { %v2794_v0 = vpop.xlane.xlu1 %2793  ;;  %v4391_v22 = vsel %vm2419_vm3, %v3864_v58, 0  ;;  %v3769_v16 = vmul.f32 %v7189_v1, %v9342_v6  ;;  %v3865_v9 = vpack.c.bf16 %v3775_v39, %v3774_v55 }
 0x4ff   :  { %7192 = vpow2.f32 %v3166_v54  ;;  %v2928_v13 = vsub.f32 %v11021_v12, %v2794_v0  ;;  %6244 = vmatpush3.bf16.xpose.msra.mxu0 %v4339_v44  ;;  %6254 = vmatpush3.bf16.xpose.msra.mxu1 %v4391_v22  ;;  %v9747_v36 = vpop.xlane.xlu0 %3438 }
 0x500   :  { %6245 = vmatprep.subr.bf16.mxu0 %v10880_v40  ;;  %6255 = vmatprep.subr.bf16.mxu1 %v10880_v40  ;;  %v3862_v6 = vpack.c.bf16 %v3769_v16, %v3768_v14  ;;  %v4394_v5 = vsel %vm2419_vm3, %v3865_v9, 0 }
 0x501   :  { %v3180_v52 = vmul.f32 1.442695, %v2928_v13 }
 0x502   :  { %v2797_v63 = vpop.xlane.xlu1 %2796  ;;  %v4342_v48 = vsel %vm2419_vm3, %v3862_v6, 0 }
 0x503   :  { %7194 = vpow2.f32 %v3180_v52  ;;  %v2929_v34 = vsub.f32 %v11026_v45, %v2797_v63  ;;  %v9756_v1 = vpop.xlane.xlu0 %3462 }
 0x505   :  { %v9731_v12 = vpop.eup %7190  ;;  %v3182_v37 = vmul.f32 1.442695, %v2929_v34 }
 0x506   :  { %v3400_v11 = vpop.xlane.xlu1 %3399  ;;  %v3536_v4 = vsel %vm2419_vm3, %v9731_v12, 0.0 }
 0x507   :  { %7196 = vpow2.f32 %v3182_v37  ;;  %6246 = vmatpush3.bf16.xpose.msra.mxu0 %v4342_v48  ;;  %6256 = vmatpush3.bf16.xpose.msra.mxu1 %v4394_v5  ;;  %v9762_v53 = vpop.xlane.xlu0 %3444 }
 0x508   :  { %3537 = vadd.xlane.f32.xlu1 %v3536_v4  ;;  %6247 = vmatprep.subr.bf16.mxu0 %v10880_v40  ;;  %7198 = vrcp.f32 %v3400_v11 }
 0x509   :  { %v9740_v45 = vpop.eup %7192  ;;  %6257 = vmatprep.subr.bf16.mxu1 %v10880_v40 }
 0x50a   :  { %v3403_v46 = vpop.xlane.xlu1 %3402  ;;  %v3539_v51 = vsel %vm2419_vm3, %v9740_v45, 0.0 }
 0x50b   :  { %7200 = vrcp.f32 %v3403_v46  ;;  %3540 = vadd.xlane.f32.xlu0 %v3539_v51  ;;  %v9775_v63 = vpop.xlane.xlu0 %3468 }
 0x50d   :  { %v9745_v62 = vpop.eup %7194 }
 0x50e   :  { %v2776_v23 = vpop.xlane.xlu1 %2775  ;;  %v3560_v35 = vsel %vm2419_vm3, %v9745_v62, 0.0 }
 0x50f   :  { %v2922_v31 = vsub.f32 %v11032_v15, %v2776_v23  ;;  %3561 = vadd.xlane.f32.xlu1 %v3560_v35  ;;  %v9790_v11 = vpop.xlane.xlu0 %3450 }
 0x511   :  { %v9752_v21 = vpop.eup %7196  ;;  %v3168_v7 = vmul.f32 1.442695, %v2922_v31 }
 0x512   :  { %v2779_v29 = vpop.xlane.xlu1 %2778  ;;  %v3563_v17 = vsel %vm2419_vm3, %v9752_v21, 0.0  ;;  %v7199_v58 = vpop.eup %7198 }
 0x513   :  { %7202 = vpow2.f32 %v3168_v7  ;;  %v2923_v54 = vsub.f32 %v11034_v24, %v2779_v29  ;;  %3564 = vadd.xlane.f32.xlu0 %v3563_v17  ;;  %v3770_v15 = vmul.f32 %v7199_v58, %v9400_v38  ;;  %v11143_v24 = vld [vmem:[#allocation16_spill] sm:$0xff]  ;;  %v9796_v7 = vpop.xlane.xlu0 %3474 }
 0x514   :  { %v9767_v52 = vadd.f32 %v11024_v49, %v11143_v24 }
 0x515   :  { %v7201_v0 = vpop.eup %7200  ;;  %v3170_v44 = vmul.f32 1.442695, %v2923_v54 }
 0x516   :  { %v2800_v22 = vpop.xlane.xlu1 %2799  ;;  %v3771_v16 = vmul.f32 %v7201_v0, %v9408_v19  ;;  %v1129_v6 = vpack.c.bf16 %v9767_v52, %v9767_v52 }
 0x517   :  { %7204 = vpow2.f32 %v3170_v44  ;;  %v2930_v39 = vsub.f32 %v11038_v47, %v2800_v22  ;;  %v11145_v44 = vld [vmem:[#allocation133_spill] sm:$0xff] }
 0x518   :  { %v3863_v13 = vpack.c.bf16 %v3771_v16, %v3770_v15  ;;  %v9806_v15 = vpop.xlane.xlu0 %3480 }
 0x519   :  { %v3184_v14 = vmul.f32 1.442695, %v2930_v39 }
 0x51a   :  { %v3427_v2 = vpop.xlane.xlu1 %3426  ;;  %v4345_v55 = vsel %vm2419_vm3, %v3863_v13, 0 }
 0x51b   :  { %7206 = vpow2.f32 %v3184_v14  ;;  %6248 = vmatpush3.bf16.xpose.msra.mxu0 %v4345_v55 }
 0x51c   :  { %6265 = vmatprep.subr.bf16.mxu0 %v10880_v40  ;;  %7208 = vrcp.f32 %v9354_v33 }
 0x51d   :  { %v9770_v38 = vpop.eup %7202 }
 0x51e   :  { %v3421_v19 = vpop.xlane.xlu1 %3420  ;;  %v3542_v47 = vsel %vm2419_vm3, %v9770_v38, 0.0 }
 0x51f   :  { %7210 = vrcp.f32 %v3421_v19  ;;  %3543 = vadd.xlane.f32.xlu1 %v3542_v47  ;;  %v9814_v19 = vpop.xlane.xlu0 %3504  ;;  %v1109_v47 = vcombine.high %v9767_v52, %v9767_v52 }
 0x520   :  { %7212 = vrcp.f32 %v3427_v2 }
 0x521   :  { %v9779_v9 = vpop.eup %7204  ;;  %7214 = vrcp.f32 %v9728_v59 }
 0x522   :  { %6250 = vmatmul.mubr.msk.bf16.vlgmr.msra.gmra.mrb[92].mxu0 %vm2419_vm3, %v1129_v6  ;;  %v2803_v49 = vpop.xlane.xlu1 %2802  ;;  %v3545_v33 = vsel %vm2419_vm3, %v9779_v9, 0.0 }
 0x523   :  { %v2931_v34 = vsub.f32 %v11055_v27, %v2803_v49  ;;  %3546 = vadd.xlane.f32.xlu0 %v3545_v33  ;;  %6273 = vmatprep.mubr.msk.bf16.mxu0 %vm7355_vm4, %v10880_v40  ;;  %v11144_v27 = vld [vmem:[#allocation153_spill] sm:$0xff] }
 0x525   :  { %v9788_v37 = vpop.eup %7206  ;;  %v3186_v48 = vmul.f32 1.442695, %v2931_v34 }
 0x526   :  { %v3430_v5 = vpop.xlane.xlu1 %3429  ;;  %v3566_v4 = vsel %vm2419_vm3, %v9788_v37, 0.0  ;;  %v7209_v46 = vpop.eup %7208 }
 0x527   :  { %7216 = vpow2.f32 %v3186_v48  ;;  %3567 = vadd.xlane.f32.xlu1 %v3566_v4  ;;  %v3776_v23 = vmul.f32 %v7209_v46, %v11144_v27  ;;  %v9825_v46 = vpop.xlane.xlu0 %3486 }
 0x528   :  { %7218 = vrcp.f32 %v3430_v5  ;;  %v1130_v5 = vpack.c.bf16 %v1109_v47, %v1109_v47 }
 0x529   :  { %v7211_v51 = vpop.eup %7210 }
 0x52a   :  { %v3433_v59 = vpop.xlane.xlu1 %3432  ;;  %v3777_v35 = vmul.f32 %v7211_v51, %v9453_v60  ;;  %v7213_v31 = vpop.eup %7212 }
 0x52b   :  { %7220 = vrcp.f32 %v3433_v59  ;;  %v7215_v17 = vpop.eup %7214  ;;  %v3779_v0 = vmul.f32 %v7213_v31, %v9443_v50  ;;  %v11147_v59 = vld [vmem:[#allocation78_spill] sm:$0xff] }
 0x52c   :  { %v3866_v29 = vpack.c.bf16 %v3777_v35, %v3776_v23  ;;  %7222 = vrcp.f32 %v9737_v3  ;;  %v3778_v22 = vmul.f32 %v7215_v17, %v11145_v44 }
 0x52e   :  { %v3454_v58 = vpop.xlane.xlu1 %3453  ;;  %v4397_v54 = vsel %vm2419_vm3, %v3866_v29, 0  ;;  %v3867_v39 = vpack.c.bf16 %v3779_v0, %v3778_v22  ;;  %v3511_v0 = vpop.xlane.xlu0 %3510 }
 0x52f   :  { %7224 = vrcp.f32 %v3454_v58  ;;  %6258 = vmatpush3.bf16.xpose.msra.mxu1 %v4397_v54 }
 0x530   :  { %6259 = vmatprep.subr.bf16.mxu1 %v10880_v40  ;;  %7226 = vrcp.f32 %v9747_v36  ;;  %v4400_v2 = vsel %vm2419_vm3, %v3867_v39, 0  ;;  %v11149_v39 = vld [vmem:[#allocation136_spill] sm:$0xff] }
 0x531   :  { %v9803_v60 = vpop.eup %7216 }
 0x532   :  { %v3436_v16 = vpop.xlane.xlu1 %3435  ;;  %v3569_v3 = vsel %vm2419_vm3, %v9803_v60, 0.0  ;;  %v7219_v13 = vpop.eup %7218 }
 0x533   :  { %7228 = vrcp.f32 %v3436_v16  ;;  %3570 = vadd.xlane.f32.xlu0 %v3569_v3  ;;  %v3780_v55 = vmul.f32 %v7219_v13, %v9472_v18 }
 0x534   :  { %7230 = vrcp.f32 %v9756_v1 }
 0x535   :  { %v7221_v50 = vpop.eup %7220 }
 0x536   :  { %v3460_v14 = vpop.xlane.xlu1 %3459  ;;  %v3781_v36 = vmul.f32 %v7221_v50, %v9490_v28  ;;  %v7223_v24 = vpop.eup %7222  ;;  %v11146_v28 = vld [vmem:[#allocation37_spill] sm:$0xff] }
 0x537   :  { %7232 = vrcp.f32 %v3460_v14  ;;  %6260 = vmatpush3.bf16.xpose.msra.mxu1 %v4400_v2  ;;  %v3789_v34 = vmul.f32 %v7223_v24, %v11146_v28  ;;  %v3493_v2 = vpop.xlane.xlu0 %3492  ;;  %v11150_v24 = vld [vmem:[#allocation61_spill] sm:$0xff] }
 0x538   :  { %v3868_v6 = vpack.c.bf16 %v3781_v36, %v3780_v55  ;;  %6277 = vmatprep.subr.bf16.mxu1 %v10880_v40  ;;  %7234 = vrcp.f32 %v9762_v53 }
 0x539   :  { %v7225_v49 = vpop.eup %7224 }
 0x53a   :  { %v3442_v1 = vpop.xlane.xlu1 %3441  ;;  %v4446_v33 = vsel %vm2419_vm3, %v3868_v6, 0  ;;  %v3788_v18 = vmul.f32 %v7225_v49, %v9492_v30  ;;  %v7227_v48 = vpop.eup %7226 }
 0x53b   :  { %7236 = vrcp.f32 %v3442_v1  ;;  %6266 = vmatpush3.bf16.xpose.msra.mxu0 %v4446_v33  ;;  %v3783_v27 = vmul.f32 %v7227_v48, %v11147_v59 }
 0x53c   :  { %v3872_v4 = vpack.c.bf16 %v3789_v34, %v3788_v18  ;;  %6267 = vmatprep.subr.bf16.mxu0 %v10880_v40  ;;  %7238 = vrcp.f32 %v9775_v63 }
 0x53d   :  { %v7229_v52 = vpop.eup %7228 }
 0x53e   :  { %6262 = vmatmul.mubr.msk.bf16.vlgmr.msra.gmra.mrb[92].mxu1 %vm2419_vm3, %v1130_v5  ;;  %v3466_v53 = vpop.xlane.xlu1 %3465  ;;  %v4501_v51 = vsel %vm2419_vm3, %v3872_v4, 0  ;;  %v3782_v30 = vmul.f32 %v7229_v52, %v9505_v32  ;;  %v7231_v23 = vpop.eup %7230  ;;  %v11148_v32 = vld [vmem:[#allocation89_spill] sm:$0xff] }
 0x53f   :  { %7240 = vrcp.f32 %v3466_v53  ;;  %6278 = vmatpush3.bf16.xpose.msra.mxu1 %v4501_v51  ;;  %6285 = vmatprep.mubr.msk.bf16.mxu1 %vm7355_vm4, %v10880_v40  ;;  %v3791_v58 = vmul.f32 %v7231_v23, %v11148_v32  ;;  %v11152_v4 = vld [vmem:[#allocation57_spill] sm:$0xff]  ;;  %v11155_v32 = vld [vmem:[#allocation48_spill] sm:$0xff] }
 0x540   :  { %v3869_v35 = vpack.c.bf16 %v3783_v27, %v3782_v30  ;;  %6279 = vmatprep.subr.bf16.mxu1 %v10880_v40  ;;  %7242 = vrcp.f32 %v9790_v11  ;;  %v11153_v53 = vld [vmem:[#allocation45_spill] sm:$0xff] }
 0x541   :  { %v7233_v63 = vpop.eup %7232 }
 0x542   :  { %v3448_v31 = vpop.xlane.xlu1 %3447  ;;  %v4449_v29 = vsel %vm2419_vm3, %v3869_v35, 0  ;;  %v3790_v17 = vmul.f32 %v7233_v63, %v9520_v20  ;;  %v7235_v54 = vpop.eup %7234 }
 0x543   :  { %7244 = vrcp.f32 %v3448_v31  ;;  %6268 = vmatpush3.bf16.xpose.msra.mxu0 %v4449_v29  ;;  %v3785_v13 = vmul.f32 %v7235_v54, %v11149_v39  ;;  %v11154_v29 = vld [vmem:[#allocation100_spill] sm:$0xff] }
 0x544   :  { %v3873_v44 = vpack.c.bf16 %v3791_v58, %v3790_v17  ;;  %6269 = vmatprep.subr.bf16.mxu0 %v10880_v40  ;;  %7246 = vrcp.f32 %v9796_v7 }
 0x545   :  { %v7237_v22 = vpop.eup %7236 }
 0x546   :  { %v3472_v16 = vpop.xlane.xlu1 %3471  ;;  %v4504_v11 = vsel %vm2419_vm3, %v3873_v44, 0  ;;  %v3784_v3 = vmul.f32 %v7237_v22, %v9524_v41  ;;  %v7239_v20 = vpop.eup %7238  ;;  %v11151_v41 = vld [vmem:[#allocation33_spill] sm:$0xff] }
 0x547   :  { %7248 = vrcp.f32 %v3472_v16  ;;  %6280 = vmatpush3.bf16.xpose.msra.mxu1 %v4504_v11  ;;  %v3793_v6 = vmul.f32 %v7239_v20, %v11151_v41  ;;  %v11156_v16 = vld [vmem:[#allocation21_spill] sm:$0xff] }
 0x548   :  { %v3870_v50 = vpack.c.bf16 %v3785_v13, %v3784_v3  ;;  %6281 = vmatprep.subr.bf16.mxu1 %v10880_v40  ;;  %7250 = vrcp.f32 %v9806_v15  ;;  %v3517_v15 = vpop.xlane.xlu0 %3516 }
 0x549   :  { %v7241_v14 = vpop.eup %7240  ;;  %v9845_v55 = vpop.f32.mrb[76].mxu0 }
 0x54a   :  { %v3478_v7 = vpop.xlane.xlu1 %3477  ;;  %v4452_v36 = vsel %vm2419_vm3, %v3870_v50, 0  ;;  %v3792_v47 = vmul.f32 %v7241_v14, %v11150_v24  ;;  %v7243_v49 = vpop.eup %7242  ;;  %v11158_v14 = vld [vmem:[#allocation67_spill] sm:$0xff] }
 0x54b   :  { %v6155_v1 = vpop.f32.mrb[77].mxu0  ;;  %7252 = vrcp.f32 %v3478_v7  ;;  %6270 = vmatpush3.bf16.xpose.msra.mxu0 %v4452_v36  ;;  %v3787_v51 = vmul.f32 %v7243_v49, %v11153_v53  ;;  %v11159_v36 = vld [vmem:[#allocation51_spill] sm:$0xff] }
 0x54c   :  { %v3944_v33 = vpop.f32.mrb[78].mxu0  ;;  %v3874_v18 = vpack.c.bf16 %v3793_v6, %v3792_v47  ;;  %6271 = vmatprep.subr.bf16.mxu0 %v10880_v40  ;;  %7254 = vrcp.f32 %v9814_v19  ;;  %v3499_v44 = vpop.xlane.xlu0 %3498 }
 0x54d   :  { %v7245_v28 = vpop.eup %7244  ;;  %v6156_v34 = vpop.f32.mrb[79].mxu0 }
 0x54e   :  { %v3502_v48 = vpop.xlane.xlu1 %3501  ;;  %v4507_v5 = vsel %vm2419_vm3, %v3874_v18, 0  ;;  %v3786_v52 = vmul.f32 %v7245_v28, %v11152_v4  ;;  %v7247_v30 = vpop.eup %7246  ;;  %v11160_v34 = vld [vmem:[#allocation54_spill] sm:$0xff] }
 0x54f   :  { %7256 = vrcp.f32 %v3502_v48  ;;  %6282 = vmatpush3.bf16.xpose.msra.mxu1 %v4507_v5  ;;  %v3795_v58 = vmul.f32 %v7247_v30, %v11155_v32  ;;  %v11161_v30 = vld [vmem:[#allocation94_spill] sm:$0xff] }
 0x550   :  { %v3871_v59 = vpack.c.bf16 %v3787_v51, %v3786_v52  ;;  %6283 = vmatprep.subr.bf16.mxu1 %v10880_v40  ;;  %7258 = vrcp.f32 %v9825_v46  ;;  %v11157_v46 = vld [vmem:[#allocation98_spill] sm:$0xff]  ;;  %v3523_v33 = vpop.xlane.xlu0 %3522 }
 0x551   :  { %v7249_v27 = vpop.eup %7248  ;;  %v9857_v23 = vpop.f32.mrb[76].mxu1  ;;  %v454_v11 = vadd.f32 %v11157_v46, %v11156_v16 }
 0x552   :  { %v4788_v19 = vcombine.low %v9845_v55, %v9857_v23  ;;  %v6167_v35 = vpop.f32.mrb[77].mxu1  ;;  %v3484_v63 = vpop.xlane.xlu1 %3483  ;;  %v4455_v31 = vsel %vm2419_vm3, %v3871_v59, 0  ;;  %v3794_v17 = vmul.f32 %v7249_v27, %v11154_v29 }
 0x553   :  { %v7251_v54 = vpop.eup %7250  ;;  %7260 = vrcp.f32 %v3484_v63  ;;  %v3999_v22 = vpop.f32.mrb[78].mxu1  ;;  %6272 = vmatpush3.bf16.xpose.msra.mxu0 %v4455_v31  ;;  %v1110_v41 = vcombine.high %v454_v11, %v454_v11  ;;  %v1131_v6 = vpack.c.bf16 %v454_v11, %v454_v11 }
 0x554   :  { %v6168_v3 = vpop.f32.mrb[79].mxu1  ;;  %v3875_v39 = vpack.c.bf16 %v3795_v58, %v3794_v17  ;;  %6289 = vmatprep.subr.bf16.mxu0 %v10880_v40  ;;  %7262 = vrcp.f32 %v3511_v0  ;;  %v3797_v24 = vmul.f32 %v7251_v54, %v11159_v36  ;;  %v3529_v35 = vpop.xlane.xlu0 %3528  ;;  %v11165_v36 = vld [vmem:[#allocation60_spill] sm:$0xff] }
 0x555   :  { %v7253_v13 = vpop.eup %7252  ;;  %v1132_v4 = vpack.c.bf16 %v1110_v41, %v1110_v41 }
 0x556   :  { %v3508_v20 = vpop.xlane.xlu1 %3507  ;;  %v4510_v50 = vsel %vm2419_vm3, %v3875_v39, 0  ;;  %v3796_v7 = vmul.f32 %v7253_v13, %v11158_v14  ;;  %v7255_v47 = vpop.eup %7254  ;;  %v11164_v39 = vld [vmem:[#allocation49_spill] sm:$0xff] }
 0x557   :  { %7264 = vrcp.f32 %v3508_v20  ;;  %6284 = vmatpush3.bf16.xpose.msra.mxu1 %v4510_v50  ;;  %v3805_v48 = vmul.f32 %v7255_v47, %v11160_v34  ;;  %v11166_v47 = vld [vmem:[#allocation142_spill] sm:$0xff] }
 0x558   :  { %v3876_v49 = vpack.c.bf16 %v3797_v24, %v3796_v7  ;;  %6301 = vmatprep.subr.bf16.mxu1 %v10880_v40  ;;  %7266 = vrcp.f32 %v3493_v2  ;;  %v3553_v16 = vpop.xlane.xlu0 %3552  ;;  %v11167_v34 = vld [vmem:[#allocation58_spill] sm:$0xff] }
 0x559   :  { %v7257_v1 = vpop.eup %7256 }
 0x55a   :  { %6274 = vmatmul.mubr.msk.bf16.vlgmr.msra.gmra.mrb[96].mxu0 %vm2419_vm3, %v1131_v6  ;;  %v3490_v0 = vpop.xlane.xlu1 %3489  ;;  %v4556_v18 = vsel %vm2419_vm3, %v3876_v49, 0  ;;  %v3804_v28 = vmul.f32 %v7257_v1, %v9576_v8  ;;  %v7259_v5 = vpop.eup %7258 }
 0x55b   :  { %7268 = vrcp.f32 %v3490_v0  ;;  %6290 = vmatpush3.bf16.xpose.msra.mxu0 %v4556_v18  ;;  %6297 = vmatprep.mubr.msk.bf16.mxu0 %vm7355_vm4, %v10880_v40  ;;  %v3799_v59 = vmul.f32 %v7259_v5, %v11161_v30 }
 0x55c   :  { %v3880_v52 = vpack.c.bf16 %v3805_v48, %v3804_v28  ;;  %6291 = vmatprep.subr.bf16.mxu0 %v10880_v40  ;;  %7270 = vrcp.f32 %v3517_v15  ;;  %v3535_v49 = vpop.xlane.xlu0 %3534 }
 0x55d   :  { %v7261_v2 = vpop.eup %7260 }
 0x55e   :  { %6286 = vmatmul.mubr.msk.bf16.vlgmr.msra.gmra.mrb[96].mxu1 %vm2419_vm3, %v1132_v4  ;;  %v3514_v53 = vpop.xlane.xlu1 %3513  ;;  %v4611_v51 = vsel %vm2419_vm3, %v3880_v52, 0  ;;  %v3798_v8 = vmul.f32 %v7261_v2, %v9587_v61  ;;  %v7263_v27 = vpop.eup %7262  ;;  %v11162_v61 = vld [vmem:[#allocation53_spill] sm:$0xff] }
 0x55f   :  { %7272 = vrcp.f32 %v3514_v53  ;;  %6302 = vmatpush3.bf16.xpose.msra.mxu1 %v4611_v51  ;;  %6309 = vmatprep.mubr.msk.bf16.mxu1 %vm7355_vm4, %v10880_v40  ;;  %v3807_v32 = vmul.f32 %v7263_v27, %v11162_v61  ;;  %v11168_v27 = vld [vmem:[#allocation105_spill] sm:$0xff] }
 0x560   :  { %v3877_v63 = vpack.c.bf16 %v3799_v59, %v3798_v8  ;;  %6303 = vmatprep.subr.bf16.mxu1 %v10880_v40  ;;  %7274 = vrcp.f32 %v3499_v44  ;;  %v11163_v44 = vld [vmem:[#allocation64_spill] sm:$0xff]  ;;  %v3559_v2 = vpop.xlane.xlu0 %3558 }
 0x561   :  { %v7265_v15 = vpop.eup %7264 }
 0x562   :  { %v3496_v31 = vpop.xlane.xlu1 %3495  ;;  %v4559_v29 = vsel %vm2419_vm3, %v3877_v63, 0  ;;  %v3806_v17 = vmul.f32 %v7265_v15, %v9605_v25  ;;  %v7267_v58 = vpop.eup %7266  ;;  %v11169_v15 = vld [vmem:[#allocation106_spill] sm:$0xff] }
 0x563   :  { %7276 = vrcp.f32 %v3496_v31  ;;  %6292 = vmatpush3.bf16.xpose.msra.mxu0 %v4559_v29  ;;  %v3801_v13 = vmul.f32 %v7267_v58, %v11164_v39  ;;  %v11170_v31 = vld [vmem:[#allocation14_spill] sm:$0xff] }
 0x564   :  { %v3881_v54 = vpack.c.bf16 %v3807_v32, %v3806_v17  ;;  %6293 = vmatprep.subr.bf16.mxu0 %v10880_v40  ;;  %7278 = vrcp.f32 %v3523_v33  ;;  %v455_v29 = vadd.f32 %v11170_v31, %v11169_v15 }
 0x565   :  { %v7269_v22 = vpop.eup %7268 }
 0x566   :  { %v3520_v46 = vpop.xlane.xlu1 %3519  ;;  %v4614_v11 = vsel %vm2419_vm3, %v3881_v54, 0  ;;  %v3800_v3 = vmul.f32 %v7269_v22, %v11163_v44  ;;  %v7271_v20 = vpop.eup %7270  ;;  %v11171_v22 = vld [vmem:[#allocation62_spill] sm:$0xff]  ;;  %v1133_v44 = vpack.c.bf16 %v455_v29, %v455_v29 }
 0x567   :  { %7280 = vrcp.f32 %v3520_v46  ;;  %6304 = vmatpush3.bf16.xpose.msra.mxu1 %v4614_v11  ;;  %v3809_v41 = vmul.f32 %v7271_v20, %v11166_v47  ;;  %v1111_v11 = vcombine.high %v455_v29, %v455_v29 }
 0x568   :  { %v3878_v25 = vpack.c.bf16 %v3801_v13, %v3800_v3  ;;  %6305 = vmatprep.subr.bf16.mxu1 %v10880_v40  ;;  %7282 = vrcp.f32 %v3529_v35 }
 0x569   :  { %v7273_v50 = vpop.eup %7272  ;;  %v1134_v47 = vpack.c.bf16 %v1111_v11, %v1111_v11 }
 0x56a   :  { %v3526_v14 = vpop.xlane.xlu1 %3525  ;;  %v4562_v7 = vsel %vm2419_vm3, %v3878_v25, 0  ;;  %v3808_v24 = vmul.f32 %v7273_v50, %v11165_v36  ;;  %v7275_v6 = vpop.eup %7274 }
 0x56b   :  { %7284 = vrcp.f32 %v3526_v14  ;;  %6294 = vmatpush3.bf16.xpose.msra.mxu0 %v4562_v7  ;;  %v3803_v48 = vmul.f32 %v7275_v6, %v11167_v34  ;;  %v11172_v14 = vld [vmem:[#allocation143_spill] sm:$0xff] }
 0x56c   :  { %v3882_v1 = vpack.c.bf16 %v3809_v41, %v3808_v24  ;;  %6295 = vmatprep.subr.bf16.mxu0 %v10880_v40  ;;  %7286 = vrcp.f32 %v3553_v16 }
 0x56d   :  { %v7277_v33 = vpop.eup %7276 }
 0x56e   :  { %v3550_v0 = vpop.xlane.xlu1 %3549  ;;  %v4617_v18 = vsel %vm2419_vm3, %v3882_v1, 0  ;;  %v3802_v28 = vmul.f32 %v7277_v33, %v9635_v10  ;;  %v7279_v5 = vpop.eup %7278 }
 0x56f   :  { %7288 = vrcp.f32 %v3550_v0  ;;  %6306 = vmatpush3.bf16.xpose.msra.mxu1 %v4617_v18  ;;  %v3811_v10 = vmul.f32 %v7279_v5, %v11168_v27  ;;  %v11173_v0 = vld [vmem:[#allocation104_spill] sm:$0xff] }
 0x570   :  { %v3879_v4 = vpack.c.bf16 %v3803_v48, %v3802_v28  ;;  %6307 = vmatprep.subr.bf16.mxu1 %v10880_v40  ;;  %7290 = vrcp.f32 %v3535_v49  ;;  %v11174_v48 = vld [vmem:[#allocation63_spill] sm:$0xff] }
 0x571   :  { %v7281_v52 = vpop.eup %7280  ;;  %v4051_v53 = vpop.f32.mrb[80].mxu0 }
 0x572   :  { %v6179_v51 = vpop.f32.mrb[81].mxu0  ;;  %v3532_v8 = vpop.xlane.xlu1 %3531  ;;  %v4565_v30 = vsel %vm2419_vm3, %v3879_v4, 0  ;;  %v3810_v59 = vmul.f32 %v7281_v52, %v9649_v57 }
 0x573   :  { %v7283_v35 = vpop.eup %7282  ;;  %7292 = vrcp.f32 %v3532_v8  ;;  %v4054_v63 = vpop.f32.mrb[82].mxu0  ;;  %6296 = vmatpush3.bf16.xpose.msra.mxu0 %v4565_v30  ;;  %v9951_v8 = vld [vmem:[%s10328_s5 + $0x10] sm:$0xff] }
 0x574   :  { %v6180_v17 = vpop.f32.mrb[83].mxu0  ;;  %v3883_v61 = vpack.c.bf16 %v3811_v10, %v3810_v59  ;;  %6313 = vmatprep.subr.bf16.mxu0 %v10880_v40  ;;  %7294 = vrcp.f32 %v3559_v2  ;;  %v3813_v16 = vmul.f32 %v7283_v35, %v11171_v22  ;;  %v7356_v2 = vmov 3   ;;  %v9959_v10 = vld [vmem:[%s10328_s5 + $0x18] sm:$0xff] }
 0x575   :  { %v7285_v32 = vpop.eup %7284  ;;  %6773 = vset.pattern.permute.xlu1 %v7356_v2  ;;  %6774 = vset.pattern.permute.xlu0 %v7356_v2 }
 0x576   :  { %v3556_v58 = vpop.xlane.xlu1 %3555  ;;  %v4620_v54 = vsel %vm2419_vm3, %v3883_v61, 0  ;;  %v3812_v57 = vmul.f32 %v7285_v32, %v9661_v56  ;;  %v7287_v46 = vpop.eup %7286 }
 0x577   :  { %7296 = vrcp.f32 %v3556_v58  ;;  %6308 = vmatpush3.bf16.xpose.msra.mxu1 %v4620_v54  ;;  %v3821_v7 = vmul.f32 %v7287_v46, %v11172_v14 }
 0x578   :  { %v3884_v3 = vpack.c.bf16 %v3813_v16, %v3812_v57  ;;  %6325 = vmatprep.subr.bf16.mxu1 %v10880_v40 }
 0x579   :  { %v7289_v39 = vpop.eup %7288  ;;  %v4106_v13 = vpop.f32.mrb[80].mxu1 }
 0x57a   :  { %v4789_v20 = vcombine.low %v4051_v53, %v4106_v13  ;;  %v6191_v25 = vpop.f32.mrb[81].mxu1  ;;  %6298 = vmatmul.mubr.msk.bf16.vlgmr.msra.gmra.mrb[100].mxu0 %vm2419_vm3, %v1133_v44  ;;  %v4666_v50 = vsel %vm2419_vm3, %v3884_v3, 0  ;;  %v3820_v56 = vmul.f32 %v7289_v39, %v9664_v43  ;;  %v7291_v36 = vpop.eup %7290  ;;  %v9939_v53 = vld [vmem:[%s10328_s5] sm:$0xff] }
 0x57b   :  { %v4109_v24 = vpop.f32.mrb[82].mxu1  ;;  %6314 = vmatpush3.bf16.xpose.msra.mxu0 %v4666_v50  ;;  %6321 = vmatprep.mubr.msk.bf16.mxu0 %vm7355_vm4, %v10880_v40  ;;  %v3815_v18 = vmul.f32 %v7291_v36, %v11173_v0  ;;  %v7357_v25 = vmov 5  }
 0x57c   :  { %v9920_v41 = vpack.c.bf16 %v4789_v20, %v4788_v19  ;;  %v6192_v6 = vpop.f32.mrb[83].mxu1  ;;  %v3888_v49 = vpack.c.bf16 %v3821_v7, %v3820_v56  ;;  %6315 = vmatprep.subr.bf16.mxu0 %v10880_v40  ;;  %4809 = vperm.xlu1 %6773, %v9939_v53   ;;  %v11175_v7 = vmov 0  }
 0x57d   :  { %v7293_v1 = vpop.eup %7292  ;;  %v11176_v6 = vld [vmem:[#allocation59_spill] sm:$0xff] }
 0x57e   :  { %6310 = vmatmul.mubr.msk.bf16.vlgmr.msra.gmra.mrb[100].mxu1 %vm2419_vm3, %v1134_v47  ;;  %v4721_v43 = vsel %vm2419_vm3, %v3888_v49, 0  ;;  %v3814_v33 = vmul.f32 %v7293_v1, %v9668_v42  ;;  %v7295_v28 = vpop.eup %7294  ;;  %v7358_v47 = vmov 6   ;;  %v1135_v49 = vpack.c.bf16 %v11176_v6, %v11176_v6 }
 0x57f   :  { %6326 = vmatpush3.bf16.xpose.msra.mxu1 %v4721_v43  ;;  %6333 = vmatprep.mubr.msk.bf16.mxu1 %vm7355_vm4, %v10880_v40  ;;  %v3823_v5 = vmul.f32 %v7295_v28, %v11174_v48 }
 0x580   :  { %v3885_v55 = vpack.c.bf16 %v3815_v18, %v3814_v33  ;;  %6327 = vmatprep.subr.bf16.mxu1 %v10880_v40  ;;  %4817 = vperm.xlu1 %6773, %v9951_v8  }
 0x581   :  { %v7297_v23 = vpop.eup %7296 }
 0x582   :  { %v4669_v19 = vsel %vm2419_vm3, %v3885_v55, 0  ;;  %v3822_v34 = vmul.f32 %v7297_v23, %v9679_v26  ;;  %v9945_v26 = vld [vmem:[%s10328_s5 + $0x8] sm:$0xff] }
 0x583   :  { %6316 = vmatpush3.bf16.xpose.msra.mxu0 %v4669_v19  ;;  %4813 = vperm.xlu0 %6774, %v9945_v26  }
 0x584   :  { %v3889_v4 = vpack.c.bf16 %v3823_v5, %v3822_v34  ;;  %6317 = vmatprep.subr.bf16.mxu0 %v10880_v40  ;;  %4821 = vperm.xlu1 %6773, %v9959_v10  }
 0x586   :  { %v4724_v42 = vsel %vm2419_vm3, %v3889_v4, 0 }
 0x587   :  { %6328 = vmatpush3.bf16.xpose.msra.mxu1 %v4724_v42  ;;  %6778 = vset.pattern.permute.xlu0 %v7357_v25 }
 0x588   :  { %6329 = vmatprep.subr.bf16.mxu1 %v10880_v40  ;;  %6775 = vset.pattern.permute.xlu1 %v7357_v25 }
 0x589   :  { %5036 = vperm.xlu1 %6775, %v9939_v53   ;;  %5048 = vperm.xlu0 %6778, %v9959_v10  }
 0x58d   :  { %5040 = vperm.xlu1 %6775, %v9945_v26   ;;  %6780 = vset.pattern.permute.xlu0 %v11175_v7 }
 0x591   :  { %6776 = vset.pattern.permute.xlu1 %v7358_v47 }
 0x592   :  { %5060 = vperm.xlu1 %6776, %v9939_v53  }
 0x595   :  { %v3538_v52 = vpop.xlane.xlu1 %3537 }
 0x596   :  { %7298 = vrcp.f32 %v3538_v52  ;;  %5064 = vperm.xlu1 %6776, %v9945_v26  }
 0x598   :  { %v3541_v51 = vpop.xlane.xlu0 %3540 }
 0x599   :  { %7300 = vrcp.f32 %v3541_v51 }
 0x59a   :  { %6777 = vset.pattern.permute.xlu1 %v7357_v25 }
 0x59b   :  { %5044 = vperm.xlu1 %6777, %v9951_v8  }
 0x59c   :  { %v3562_v30 = vpop.xlane.xlu1 %3561 }
 0x59d   :  { %v9954_v59 = vpop.f32.mrb[84].mxu0  ;;  %7302 = vrcp.f32 %v3562_v30 }
 0x59e   :  { %v6203_v27 = vpop.f32.mrb[85].mxu0 }
 0x59f   :  { %v4164_v35 = vpop.f32.mrb[86].mxu0  ;;  %6779 = vset.pattern.permute.xlu1 %v7358_v47 }
 0x5a0   :  { %v6204_v63 = vpop.f32.mrb[87].mxu0  ;;  %v3565_v15 = vpop.xlane.xlu0 %3564  ;;  %5068 = vperm.xlu1 %6779, %v9951_v8  }
 0x5a1   :  { %v7299_v31 = vpop.eup %7298  ;;  %7304 = vrcp.f32 %v3565_v15 }
 0x5a2   :  { %v3816_v17 = vmul.f32 %v7299_v31, %v9731_v12 }
 0x5a3   :  { %v7301_v29 = vpop.eup %7300 }
 0x5a4   :  { %v3817_v61 = vmul.f32 %v7301_v29, %v9740_v45  ;;  %5072 = vperm.xlu1 %6779, %v9959_v10  }
 0x5a5   :  { %v9964_v32 = vpop.f32.mrb[84].mxu1 }
 0x5a6   :  { %v4790_v58 = vcombine.low %v9954_v59, %v9964_v32  ;;  %v6215_v54 = vpop.f32.mrb[85].mxu1  ;;  %v3886_v57 = vpack.c.bf16 %v3817_v61, %v3816_v17 }
 0x5a7   :  { %v4219_v22 = vpop.f32.mrb[86].mxu1  ;;  %v7303_v11 = vpop.eup %7302 }
 0x5a8   :  { %v6216_v16 = vpop.f32.mrb[87].mxu1  ;;  %v4672_v46 = vsel %vm2419_vm3, %v3886_v57, 0  ;;  %v3824_v12 = vmul.f32 %v7303_v11, %v9745_v62  ;;  %6781 = vset.pattern.permute.xlu1 %v11175_v7  ;;  %v108_v7 = vld [vmem:[%s10329_s6 + $0x20] sm:$0xff] }
 0x5a9   :  { %6318 = vmatpush3.bf16.xpose.msra.mxu0 %v4672_v46 }
 0x5aa   :  { %6319 = vmatprep.subr.bf16.mxu0 %v10880_v40 }
 0x5ab   :  { %v7305_v44 = vpop.eup %7304 }
 0x5ac   :  { %v3544_v3 = vpop.xlane.xlu1 %3543  ;;  %v3825_v45 = vmul.f32 %v7305_v44, %v9752_v21 }
 0x5ad   :  { %7306 = vrcp.f32 %v3544_v3 }
 0x5ae   :  { %v3890_v39 = vpack.c.bf16 %v3825_v45, %v3824_v12 }
 0x5b0   :  { %v3547_v13 = vpop.xlane.xlu0 %3546  ;;  %v4727_v20 = vsel %vm2419_vm3, %v3890_v39, 0 }
 0x5b1   :  { %7308 = vrcp.f32 %v3547_v13  ;;  %6330 = vmatpush3.bf16.xpose.msra.mxu1 %v4727_v20 }
 0x5b2   :  { %6331 = vmatprep.subr.bf16.mxu1 %v10880_v40 }
 0x5b4   :  { %v3568_v56 = vpop.xlane.xlu1 %3567 }
 0x5b5   :  { %7310 = vrcp.f32 %v3568_v56  ;;  %v104_v56 = vld [vmem:[%s10329_s6] sm:$0xff] }
 0x5b6   :  { %5089 = vperm.xlu0 %6780, %v104_v56  }
 0x5b7   :  { %v7307_v50 = vpop.eup %7306 }
 0x5b8   :  { %v3818_v21 = vmul.f32 %v7307_v50, %v9770_v38  ;;  %v10016_v50 = vld [vmem:[%s10326_s3 + $0x40] sm:$0xff]  }
 0x5bb   :  { %v7309_v62 = vpop.eup %7308 }
 0x5bc   :  { %v3819_v14 = vmul.f32 %v7309_v62, %v9779_v9  ;;  %v6794_v9 = vld [vmem:[%s10326_s3 + $0x30] sm:$0xff]   ;;  %v105_v62 = vld [vmem:[%s10329_s6 + $0x8] sm:$0xff] }
 0x5bd   :  { %5094 = vperm.xlu1 %6781, %v105_v62  }
 0x5be   :  { %v3887_v36 = vpack.c.bf16 %v3819_v14, %v3818_v21  ;;  %v106_v21 = vld [vmem:[%s10329_s6 + $0x10] sm:$0xff]  ;;  %v107_v14 = vld [vmem:[%s10329_s6 + $0x18] sm:$0xff] }
 0x5bf   :  { %v7311_v0 = vpop.eup %7310  ;;  %5104 = vperm.xlu0 %6780, %v107_v14  }
 0x5c0   :  { %v3571_v40 = vpop.xlane.xlu0 %3570  ;;  %v4675_v24 = vsel %vm2419_vm3, %v3887_v36, 0  ;;  %v3826_v28 = vmul.f32 %v7311_v0, %v9788_v37  ;;  %v1112_v37 = vcombine.high %v11176_v6, %v11176_v6  ;;  %v109_v36 = vld [vmem:[%s10329_s6 + $0x28] sm:$0xff] }
 0x5c1   :  { %7312 = vrcp.f32 %v3571_v40  ;;  %6320 = vmatpush3.bf16.xpose.msra.mxu0 %v4675_v24  ;;  %5099 = vperm.xlu1 %6781, %v106_v21   ;;  %v110_v40 = vld [vmem:[%s10329_s6 + $0x30] sm:$0xff]  ;;  %v111_v24 = vld [vmem:[%s10329_s6 + $0x38] sm:$0xff] }
 0x5c2   :  { %6337 = vmatprep.subr.bf16.mxu0 %v9920_v41  ;;  %v1136_v52 = vpack.c.bf16 %v1112_v37, %v1112_v37  ;;  %v11178_v37 = vld [vmem:[#allocation5_spill] sm:$0xff] }
 0x5c3   :  { %5114 = vperm.xlu0 %6780, %v109_v36  }
 0x5c5   :  { %v4271_v38 = vpop.f32.mrb[88].mxu0  ;;  %5109 = vperm.xlu1 %6781, %v108_v7  }
 0x5c6   :  { %v6227_v1 = vpop.f32.mrb[89].mxu0 }
 0x5c7   :  { %v4274_v43 = vpop.f32.mrb[90].mxu0  ;;  %5124 = vperm.xlu0 %6780, %v111_v24  }
 0x5c8   :  { %v6228_v33 = vpop.f32.mrb[91].mxu0  ;;  %6322 = vmatmul.mubr.msk.bf16.vlgmr.msra.gmra.mrb[104].mxu0 %vm2419_vm3, %v1135_v49 }
 0x5c9   :  { %6338 = vmatpush3.bf16.msra.mxu0 %v9920_v41  ;;  %6341 = vmatprep.mubr.msk.bf16.mxu0 %vm142_vm0, %v6794_v9 }
 0x5ca   :  { %5119 = vperm.xlu1 %6781, %v110_v40  }
 0x5cb   :  { %v7313_v18 = vpop.eup %7312 }
 0x5cc   :  { %v3827_v55 = vmul.f32 %v7313_v18, %v9803_v60  ;;  %v10005_v60 = vld [vmem:[%s10326_s3 + $0x38] sm:$0xff]  }
 0x5cd   :  { %v4326_v23 = vpop.f32.mrb[88].mxu1 }
 0x5ce   :  { %v4791_v19 = vcombine.low %v4271_v38, %v4326_v23  ;;  %v6239_v34 = vpop.f32.mrb[89].mxu1  ;;  %v3891_v48 = vpack.c.bf16 %v3827_v55, %v3826_v28 }
 0x5cf   :  { %v4329_v5 = vpop.f32.mrb[90].mxu1 }
 0x5d0   :  { %v4805_v41 = vpack.c.bf16 %v4791_v19, %v4790_v58  ;;  %v6240_v4 = vpop.f32.mrb[91].mxu1  ;;  %v4730_v42 = vsel %vm2419_vm3, %v3891_v48, 0 }
 0x5d1   :  { %6332 = vmatpush3.bf16.xpose.msra.mxu1 %v4730_v42 }
 0x5d2   :  { %6339 = vmatprep.subr.bf16.mxu0 %v4805_v41 }
 0x5d3   :  { %6340 = vmatpush3.bf16.msra.mxu0 %v4805_v41  ;;  %v11177_v41 = vld [vmem:[#allocation9_spill] sm:$0xff] }
 0x5d6   :  { %6342 = vmatmul.mubr.msk.bf16.vlgmr.msra.gmra.mrb[108].mxu0 %vm142_vm0, %v10005_v60 }
 0x5d7   :  { %6357 = vmatprep.mubr.msk.bf16.mxu0 %vm142_vm0, %v10016_v50 }
 0x5d8   :  { %6334 = vmatmul.mubr.msk.bf16.vlgmr.msra.gmra.mrb[104].mxu1 %vm2419_vm3, %v1136_v52 }
 0x5d9   :  { %6349 = vmatprep.mubr.msk.bf16.mxu1 %vm142_vm0, %v6794_v9 }
 0x5f5   :  { %v4381_v2 = vpop.f32.mrb[92].mxu0 }
 0x5f6   :  { %v6251_v51 = vpop.f32.mrb[93].mxu0 }
 0x5f7   :  { %v4384_v30 = vpop.f32.mrb[94].mxu0 }
 0x5f8   :  { %v6252_v59 = vpop.f32.mrb[95].mxu0 }
 0x5fb   :  { %v10044_v6 = vpop.permute.xlu1 %4809 }
 0x5ff   :  { %v10046_v1 = vpop.permute.xlu1 %4817 }
 0x602   :  { %v10050_v18 = vpop.permute.xlu0 %4813 }
 0x603   :  { %v10048_v33 = vpop.permute.xlu1 %4821 }
 0x611   :  { %v4436_v27 = vpop.f32.mrb[92].mxu1 }
 0x612   :  { %v4792_v35 = vcombine.low %v4381_v2, %v4436_v27  ;;  %v6263_v63 = vpop.f32.mrb[93].mxu1  ;;  %v11179_v27 = vld [vmem:[#allocation10_spill] sm:$0xff] }
 0x613   :  { %v4439_v15 = vpop.f32.mrb[94].mxu1 }
 0x614   :  { %v6264_v31 = vpop.f32.mrb[95].mxu1 }
 0x615   :  { %v11180_v31 = vld [vmem:[#allocation6_spill] sm:$0xff] }
 0x62d   :  { %v4491_v29 = vpop.f32.mrb[96].mxu0 }
 0x62e   :  { %v6275_v17 = vpop.f32.mrb[97].mxu0 }
 0x62f   :  { %v4494_v61 = vpop.f32.mrb[98].mxu0 }
 0x630   :  { %v6276_v32 = vpop.f32.mrb[99].mxu0 }
 0x631   :  { %v4546_v58 = vpop.f32.mrb[96].mxu1 }
 0x632   :  { %v4793_v54 = vcombine.low %v4491_v29, %v4546_v58  ;;  %v6287_v57 = vpop.f32.mrb[97].mxu1 }
 0x633   :  { %v4549_v22 = vpop.f32.mrb[98].mxu1 }
 0x634   :  { %v4806_v16 = vpack.c.bf16 %v4793_v54, %v4792_v35  ;;  %v6288_v46 = vpop.f32.mrb[99].mxu1 }
 0x636   :  { %6345 = vmatprep.subr.bf16.mxu1 %v4806_v16 }
 0x637   :  { %6346 = vmatpush3.bf16.msra.mxu1 %v4806_v16 }
 0x64d   :  { %v4601_v11 = vpop.f32.mrb[100].mxu0 }
 0x64e   :  { %v6299_v44 = vpop.f32.mrb[101].mxu0 }
 0x64f   :  { %v4604_v3 = vpop.f32.mrb[102].mxu0 }
 0x650   :  { %v6300_v12 = vpop.f32.mrb[103].mxu0 }
 0x651   :  { %v4656_v45 = vpop.f32.mrb[100].mxu1  ;;  %v10074_v12 = vpop.permute.xlu1 %5036 }
 0x652   :  { %v4794_v39 = vcombine.low %v4601_v11, %v4656_v45  ;;  %v6311_v13 = vpop.f32.mrb[101].mxu1 }
 0x653   :  { %v4659_v20 = vpop.f32.mrb[102].mxu1 }
 0x654   :  { %v6312_v25 = vpop.f32.mrb[103].mxu1 }
 0x655   :  { %v10079_v21 = vpop.permute.xlu1 %5040 }
 0x69b   :  { %v4711_v47 = vpop.f32.mrb[104].mxu0 }
 0x69c   :  { %v6323_v38 = vpop.f32.mrb[105].mxu0 }
 0x69d   :  { %v4714_v9 = vpop.f32.mrb[106].mxu0 }
 0x69e   :  { %v6324_v49 = vpop.f32.mrb[107].mxu0 }
 0x6a9   :  { %v6343_v43 = vpop.f32.mrb[108].mxu0 }
 0x6aa   :  { %v4874_v0 = vpop.f32.mrb[109].mxu0  ;;  %v4883_v28 = vadd.f32 %v6343_v43, %v10046_v1 }
 0x6ab   :  { %v4875_v55 = vadd.f32 %v4874_v0, %v10044_v6  ;;  %v4766_v23 = vpop.f32.mrb[104].mxu1  ;;  %v6344_v19 = vpop.f32.mrb[110].mxu0 }
 0x6ac   :  { %v4795_v34 = vcombine.low %v4711_v47, %v4766_v23  ;;  %v6335_v48 = vpop.f32.mrb[105].mxu1  ;;  %v4877_v5 = vpop.f32.mrb[111].mxu0  ;;  %v10055_v4 = vadd.f32 %v4883_v28, %v11177_v41  ;;  %v4886_v42 = vadd.f32 %v6344_v19, %v10048_v33 }
 0x6ad   :  { %v4938_v52 = vadd.f32 %v4875_v55, %v11178_v37  ;;  %v4878_v2 = vadd.f32 %v4877_v5, %v10050_v18  ;;  %v4769_v51 = vpop.f32.mrb[106].mxu1  ;;  %v10081_v47 = vpop.permute.xlu1 %5060 }
 0x6ae   :  { %v4807_v30 = vpack.c.bf16 %v4795_v34, %v4794_v39  ;;  %v6336_v59 = vpop.f32.mrb[107].mxu1  ;;  %v4941_v35 = vadd.f32 %v4886_v42, %v11179_v27  ;;  %v4977_v17 = vmul.f32 %v10055_v4, %v10055_v4  ;;  %v4949_v61 = vsel %vm2419_vm3, %v10055_v4, 0.0 }
 0x6af   :  { %v4946_v63 = vsel %vm2419_vm3, %v4938_v52, 0.0  ;;  %v4975_v15 = vmul.f32 %v4938_v52, %v4938_v52  ;;  %v4939_v29 = vadd.f32 %v4878_v2, %v11180_v31  ;;  %v10090_v2 = vpop.permute.xlu0 %5048 }
 0x6b0   :  { %6347 = vmatprep.subr.bf16.mxu1 %v4807_v30  ;;  %v4978_v57 = vmul.f32 %v4941_v35, %v4941_v35  ;;  %v4986_v46 = vsel %vm2419_vm3, %v4977_v17, 0.0  ;;  %v4951_v11 = vsel %vm2419_vm3, %v4941_v35, 0.0 }
 0x6b1   :  { %v4983_v32 = vsel %vm2419_vm3, %v4975_v15, 0.0  ;;  %v4947_v58 = vsel %vm2419_vm3, %v4939_v29, 0.0  ;;  %v4976_v54 = vmul.f32 %v4939_v29, %v4939_v29  ;;  %6348 = vmatpush3.bf16.msra.mxu1 %v4807_v30  ;;  %v10083_v23 = vpop.permute.xlu1 %5064 }
 0x6b2   :  { %v4948_v22 = vadd.f32 %v4947_v58, %v4946_v63  ;;  %v4988_v45 = vsel %vm2419_vm3, %v4978_v57, 0.0  ;;  %v10122_v57 = vld [vmem:[%s10326_s3 + $0x50] sm:$0xff]  }
 0x6b3   :  { %v4984_v16 = vsel %vm2419_vm3, %v4976_v54, 0.0  ;;  %v10117_v54 = vld [vmem:[%s10326_s3 + $0x48] sm:$0xff]  }
 0x6b4   :  { %v4985_v44 = vadd.f32 %v4984_v16, %v4983_v32  ;;  %v4950_v3 = vadd.f32 %v4949_v61, %v4948_v22  ;;  %6350 = vmatmul.mubr.msk.bf16.vlgmr.msra.gmra.mrb[108].mxu1 %vm142_vm0, %v10005_v60  ;;  %v10131_v22 = vld [vmem:[%s10326_s3 + $0x58] sm:$0xff]   ;;  %v10138_v16 = vld [vmem:[%s10327_s4] sm:$0xff]  }
 0x6b5   :  { %6369 = vmatprep.mubr.msk.bf16.mxu1 %vm142_vm0, %v10016_v50  ;;  %v10086_v41 = vpop.permute.xlu1 %5044 }
 0x6b6   :  { %v4987_v39 = vadd.f32 %v4986_v46, %v4985_v44  ;;  %v4952_v13 = vadd.f32 %v4951_v11, %v4950_v3  ;;  %v7359_v46 = vmov 4   ;;  %v7360_v11 = vmov 7  }
 0x6b7   :  { %6782 = vset.pattern.permute.xlu1 %v7359_v46  ;;  %6783 = vset.pattern.permute.xlu0 %v7359_v46  ;;  %v7361_v44 = vmov 8  }
 0x6b8   :  { %v4953_v20 = vrot.slane %v4952_v13, 4  ;;  %v4989_v25 = vadd.f32 %v4988_v45, %v4987_v39  ;;  %5314 = vperm.xlu1 %6782, %v9939_v53   ;;  %5318 = vperm.xlu0 %6783, %v9945_v26  }
 0x6b9   :  { %v10088_v42 = vpop.permute.xlu1 %5068 }
 0x6ba   :  { %v4954_v62 = vadd.f32 %v4953_v20, %v4952_v13  ;;  %v4990_v56 = vrot.slane %v4989_v25, 4 }
 0x6bc   :  { %v4955_v14 = vrot.slane %v4954_v62, 2  ;;  %v4991_v7 = vadd.f32 %v4990_v56, %v4989_v25  ;;  %5322 = vperm.xlu1 %6782, %v9951_v8   ;;  %6784 = vset.pattern.permute.xlu0 %v7360_v11 }
 0x6bd   :  { %v10092_v27 = vpop.permute.xlu1 %5072  ;;  %5540 = vperm.xlu0 %6784, %v9939_v53  }
 0x6be   :  { %v4956_v36 = vadd.f32 %v4955_v14, %v4954_v62  ;;  %v4992_v40 = vrot.slane %v4991_v7, 2  ;;  %v11182_v14 = vld [vmem:[#allocation7_spill] sm:$0xff] }
 0x6c0   :  { %v4957_v60 = vrot.slane %v4956_v36, 1  ;;  %v4993_v24 = vadd.f32 %v4992_v40, %v4991_v7  ;;  %5326 = vperm.xlu1 %6782, %v9959_v10  }
 0x6c1   :  { %5552 = vperm.xlu0 %6784, %v9959_v10  }
 0x6c2   :  { %v4958_v38 = vadd.f32 %v4957_v60, %v4956_v36  ;;  %v4994_v9 = vrot.slane %v4993_v24, 1 }
 0x6c4   :  { %v4973_v49 = vmul.f32 0.03125, %v4958_v38  ;;  %v4995_v50 = vadd.f32 %v4994_v9, %v4993_v24  ;;  %6785 = vset.pattern.permute.xlu1 %v7360_v11 }
 0x6c5   :  { %5544 = vperm.xlu1 %6785, %v9945_v26   ;;  %6787 = vset.pattern.permute.xlu0 %v7361_v44 }
 0x6c6   :  { %v5009_v43 = vmul.f32 0.03125, %v4995_v50  ;;  %v5011_v0 = vmul.f32 %v4973_v49, %v4973_v49  ;;  %v5019_v28 = vsub.f32 %v4938_v52, %v4973_v49  ;;  %v5020_v55 = vsub.f32 %v4939_v29, %v4973_v49  ;;  %5568 = vperm.xlu0 %6787, %v9945_v26   ;;  %v11181_v26 = vld [vmem:[#allocation11_spill] sm:$0xff] }
 0x6c7   :  { %v5021_v19 = vsub.f32 %v10055_v4, %v4973_v49  ;;  %v5022_v34 = vsub.f32 %v4941_v35, %v4973_v49 }
 0x6c8   :  { %v5013_v48 = vsub.f32 %v5009_v43, %v5011_v0 }
 0x6c9   :  { %5548 = vperm.xlu1 %6785, %v9951_v8  }
 0x6ca   :  { %v5015_v5 = vadd.f32 1e-05, %v5013_v48 }
 0x6cc   :  { %7314 = vrsqrt.f32 %v5015_v5 }
 0x6cd   :  { %6786 = vset.pattern.permute.xlu1 %v7361_v44 }
 0x6ce   :  { %5564 = vperm.xlu1 %6786, %v9939_v53  }
 0x6d2   :  { %5572 = vperm.xlu1 %6786, %v9951_v8   ;;  %v11183_v8 = vld [vmem:[#allocation12_spill] sm:$0xff] }
 0x6d6   :  { %v7315_v37 = vpop.eup %7314  ;;  %5576 = vperm.xlu1 %6786, %v9959_v10   ;;  %v11184_v10 = vld [vmem:[#allocation8_spill] sm:$0xff] }
 0x6d7   :  { %v5027_v51 = vmul.f32 %v7315_v37, %v5019_v28  ;;  %v5028_v30 = vmul.f32 %v7315_v37, %v5020_v55  ;;  %v5029_v59 = vmul.f32 %v7315_v37, %v5021_v19  ;;  %v5030_v52 = vmul.f32 %v7315_v37, %v5022_v34 }
 0x6d9   :  { %v5051_v63 = vmul.f32 %v10074_v12, %v5027_v51  ;;  %v5052_v4 = vmul.f32 %v10079_v21, %v5028_v30  ;;  %v5053_v35 = vmul.f32 %v10086_v41, %v5029_v59  ;;  %v5054_v15 = vmul.f32 %v10090_v2, %v5030_v52 }
 0x6db   :  { %v10099_v31 = vadd.f32 %v10081_v47, %v5051_v63  ;;  %v10102_v29 = vadd.f32 %v10083_v23, %v5052_v4  ;;  %v10105_v17 = vadd.f32 %v10088_v42, %v5053_v35  ;;  %v10108_v61 = vadd.f32 %v10092_v27, %v5054_v15 }
 0x6dd   :  { %v5083_v32 = vpack.c.bf16 %v10102_v29, %v10099_v31  ;;  %v5084_v58 = vpack.c.bf16 %v10108_v61, %v10105_v17 }
 0x6df   :  { %6353 = vmatprep.subr.bf16.mxu0 %v5083_v32 }
 0x6e0   :  { %6354 = vmatpush3.bf16.msra.mxu0 %v5083_v32 }
 0x6e1   :  { %6355 = vmatprep.subr.bf16.mxu0 %v5084_v58 }
 0x6e4   :  { %6356 = vmatpush3.bf16.msra.mxu0 %v5084_v58 }
 0x6e7   :  { %6358 = vmatmul.mubr.msk.bf16.vlgmr.msra.gmra.mrb[112].mxu0 %vm142_vm0, %v10117_v54 }
 0x6e8   :  { %6361 = vmatprep.mubr.msk.bf16.mxu0 %vm142_vm0, %v10122_v57 }
 0x6ef   :  { %6362 = vmatmul.mubr.msk.bf16.gmra.mrb[116].mxu0 %vm142_vm0, %v10131_v22 }
 0x6f0   :  { %6385 = vmatprep.mubr.msk.bf16.mxu0 %vm2419_vm3, %v10138_v16 }
 0x787   :  { %v6351_v3 = vpop.f32.mrb[108].mxu1 }
 0x788   :  { %v4932_v45 = vadd.f32 %v6351_v3, %v10046_v1  ;;  %v4923_v39 = vpop.f32.mrb[109].mxu1 }
 0x789   :  { %v4924_v13 = vadd.f32 %v4923_v39, %v10044_v6  ;;  %v6352_v20 = vpop.f32.mrb[110].mxu1 }
 0x78a   :  { %v4935_v25 = vadd.f32 %v6352_v20, %v10048_v33  ;;  %v4926_v62 = vpop.f32.mrb[111].mxu1  ;;  %v4944_v56 = vadd.f32 %v4932_v45, %v11181_v26  ;;  %v10170_v26 = vpop.permute.xlu1 %5094 }
 0x78b   :  { %v4942_v7 = vadd.f32 %v4924_v13, %v11182_v14  ;;  %v4927_v53 = vadd.f32 %v4926_v62, %v10050_v18  ;;  %v10172_v14 = vpop.permute.xlu0 %5089 }
 0x78c   :  { %v4945_v40 = vadd.f32 %v4935_v25, %v11183_v8  ;;  %v4981_v24 = vmul.f32 %v4944_v56, %v4944_v56  ;;  %v4962_v33 = vsel %vm2419_vm3, %v4944_v56, 0.0 }
 0x78d   :  { %v4979_v36 = vmul.f32 %v4942_v7, %v4942_v7  ;;  %v4943_v60 = vadd.f32 %v4927_v53, %v11184_v10  ;;  %v4959_v1 = vsel %vm2419_vm3, %v4942_v7, 0.0 }
 0x78e   :  { %v4982_v50 = vmul.f32 %v4945_v40, %v4945_v40  ;;  %v4999_v28 = vsel %vm2419_vm3, %v4981_v24, 0.0  ;;  %v4964_v55 = vsel %vm2419_vm3, %v4945_v40, 0.0 }
 0x78f   :  { %v4960_v6 = vsel %vm2419_vm3, %v4943_v60, 0.0  ;;  %v4980_v38 = vmul.f32 %v4943_v60, %v4943_v60  ;;  %v4996_v49 = vsel %vm2419_vm3, %v4979_v36, 0.0  ;;  %v10174_v36 = vpop.permute.xlu1 %5099 }
 0x790   :  { %v4961_v9 = vadd.f32 %v4960_v6, %v4959_v1  ;;  %v5001_v48 = vsel %vm2419_vm3, %v4982_v50, 0.0  ;;  %v10176_v6 = vpop.permute.xlu0 %5104 }
 0x791   :  { %v4997_v43 = vsel %vm2419_vm3, %v4980_v38, 0.0 }
 0x792   :  { %v4963_v18 = vadd.f32 %v4962_v33, %v4961_v9  ;;  %v4998_v0 = vadd.f32 %v4997_v43, %v4996_v49 }
 0x794   :  { %v4965_v19 = vadd.f32 %v4964_v55, %v4963_v18  ;;  %v5000_v34 = vadd.f32 %v4999_v28, %v4998_v0 }
 0x796   :  { %v4966_v5 = vrot.slane %v4965_v19, 4  ;;  %v5002_v37 = vadd.f32 %v5001_v48, %v5000_v34 }
 0x798   :  { %v4967_v51 = vadd.f32 %v4966_v5, %v4965_v19  ;;  %v5003_v30 = vrot.slane %v5002_v37, 4 }
 0x79a   :  { %v4968_v59 = vrot.slane %v4967_v51, 2  ;;  %v5004_v52 = vadd.f32 %v5003_v30, %v5002_v37 }
 0x79c   :  { %v4969_v63 = vadd.f32 %v4968_v59, %v4967_v51  ;;  %v5005_v4 = vrot.slane %v5004_v52, 2 }
 0x79e   :  { %v4970_v35 = vrot.slane %v4969_v63, 1  ;;  %v5006_v15 = vadd.f32 %v5005_v4, %v5004_v52 }
 0x7a0   :  { %v4971_v32 = vadd.f32 %v4970_v35, %v4969_v63  ;;  %v5007_v58 = vrot.slane %v5006_v15, 1 }
 0x7a2   :  { %v4974_v46 = vmul.f32 0.03125, %v4971_v32  ;;  %v5008_v11 = vadd.f32 %v5007_v58, %v5006_v15 }
 0x7a4   :  { %v5010_v44 = vmul.f32 0.03125, %v5008_v11  ;;  %v5012_v3 = vmul.f32 %v4974_v46, %v4974_v46  ;;  %v5024_v45 = vsub.f32 %v4943_v60, %v4974_v46  ;;  %v5023_v39 = vsub.f32 %v4942_v7, %v4974_v46 }
 0x7a5   :  { %v5025_v13 = vsub.f32 %v4944_v56, %v4974_v46  ;;  %v5026_v20 = vsub.f32 %v4945_v40, %v4974_v46 }
 0x7a6   :  { %v5014_v25 = vsub.f32 %v5010_v44, %v5012_v3 }
 0x7a8   :  { %v5016_v62 = vadd.f32 1e-05, %v5014_v25 }
 0x7aa   :  { %7316 = vrsqrt.f32 %v5016_v62 }
 0x7b4   :  { %v7317_v53 = vpop.eup %7316 }
 0x7b5   :  { %v5032_v8 = vmul.f32 %v7317_v53, %v5024_v45  ;;  %v5031_v10 = vmul.f32 %v7317_v53, %v5023_v39  ;;  %v5033_v24 = vmul.f32 %v7317_v53, %v5025_v13  ;;  %v5034_v1 = vmul.f32 %v7317_v53, %v5026_v20 }
 0x7b7   :  { %v5055_v7 = vmul.f32 %v10074_v12, %v5031_v10  ;;  %v5056_v56 = vmul.f32 %v10079_v21, %v5032_v8  ;;  %v5057_v40 = vmul.f32 %v10086_v41, %v5033_v24  ;;  %v5058_v60 = vmul.f32 %v10090_v2, %v5034_v1  ;;  %v10194_v12 = vpop.permute.xlu1 %5109 }
 0x7b9   :  { %v10183_v38 = vadd.f32 %v10081_v47, %v5055_v7  ;;  %v10186_v9 = vadd.f32 %v10083_v23, %v5056_v56  ;;  %v10189_v33 = vadd.f32 %v10088_v42, %v5057_v40  ;;  %v10192_v49 = vadd.f32 %v10092_v27, %v5058_v60  ;;  %v10200_v23 = vpop.permute.xlu0 %5114 }
 0x7ba   :  { %v6359_v50 = vpop.f32.mrb[112].mxu0 }
 0x7bb   :  { %v5193_v21 = vpop.f32.mrb[113].mxu0  ;;  %v5085_v41 = vpack.c.bf16 %v10186_v9, %v10183_v38  ;;  %v5202_v2 = vadd.f32 %v6359_v50, %v10174_v36  ;;  %v5086_v42 = vpack.c.bf16 %v10192_v49, %v10189_v33  ;;  %v5120_v48 = vpop.permute.xlu1 %5119 }
 0x7bc   :  { %v6360_v47 = vpop.f32.mrb[114].mxu0  ;;  %v5194_v43 = vadd.f32 %v5193_v21, %v10172_v14 }
 0x7bd   :  { %v5196_v18 = vpop.f32.mrb[115].mxu0  ;;  %6365 = vmatprep.subr.bf16.mxu1 %v5085_v41  ;;  %v5205_v27 = vadd.f32 %v6360_v47, %v10176_v6  ;;  %v5291_v0 = vmax.f32 %v5202_v2, 0.0  ;;  %v5125_v30 = vpop.permute.xlu0 %5124 }
 0x7be   :  { %v5289_v28 = vmax.f32 %v5194_v43, 0.0  ;;  %v5197_v55 = vadd.f32 %v5196_v18, %v10170_v26  ;;  %6366 = vmatpush3.bf16.msra.mxu1 %v5085_v41 }
 0x7bf   :  { %6367 = vmatprep.subr.bf16.mxu1 %v5086_v42  ;;  %v5292_v19 = vmax.f32 %v5205_v27, 0.0 }
 0x7c0   :  { %v5290_v34 = vmax.f32 %v5197_v55, 0.0 }
 0x7c1   :  { %v5306_v5 = vpack.c.bf16 %v5292_v19, %v5291_v0  ;;  %v10236_v19 = vpop.permute.xlu0 %5318 }
 0x7c2   :  { %v6363_v37 = vpop.f32.mrb[116].mxu0  ;;  %6368 = vmatpush3.bf16.msra.mxu1 %v5086_v42  ;;  %v5305_v51 = vpack.c.bf16 %v5290_v34, %v5289_v28 }
 0x7c3   :  { %v5209_v59 = vpop.f32.mrb[117].mxu0  ;;  %v5218_v52 = vadd.f32 %v6363_v37, %v5120_v48 }
 0x7c4   :  { %v6364_v63 = vpop.f32.mrb[118].mxu0  ;;  %6377 = vmatprep.subr.bf16.mxu0 %v5305_v51  ;;  %v5210_v4 = vadd.f32 %v5209_v59, %v10194_v12 }
 0x7c5   :  { %v5212_v35 = vpop.f32.mrb[119].mxu0  ;;  %6370 = vmatmul.mubr.msk.bf16.vlgmr.msra.gmra.mrb[112].mxu1 %vm142_vm0, %v10117_v54  ;;  %6378 = vmatpush3.bf16.msra.mxu0 %v5305_v51  ;;  %v5221_v15 = vadd.f32 %v6364_v63, %v5125_v30  ;;  %v5295_v32 = vmax.f32 %v5218_v52, 0.0  ;;  %v10219_v54 = vld [vmem:[%s10327_s4 + $0x8] sm:$0xff]   ;;  %s7362_s4 = smov [#allocation2]  }
 0x7c6   :  { %v5213_v58 = vadd.f32 %v5212_v35, %v10200_v23  ;;  %v5293_v46 = vmax.f32 %v5210_v4, 0.0  ;;  %6379 = vmatprep.subr.bf16.mxu0 %v5306_v5  ;;  %6373 = vmatprep.mubr.msk.bf16.mxu1 %vm142_vm0, %v10122_v57  ;;  %s5600_s1 = sshll.u32 %s7362_s4, 4  ;;  %s5601_s1 = int_to_ptr.vmem [resolvable:$true] %s5600_s1 }
 0x7c7   :  { %v5296_v11 = vmax.f32 %v5221_v15, 0.0  ;;  %s7327_s22 = scalar_lea.vmem %s5601_s1, 1024  ;;  %p7332_p1 = scmp.lt.s32.totalorder %s5601_s1, %s5601_s1 }
 0x7c8   :  { %v5294_v44 = vmax.f32 %v5213_v58, 0.0  ;;  %p7328_p0 = scmp.ne.s32.totalorder %s5601_s1, %s7327_s22  ;;  %p7333_p2 = scmp.lt.s32.totalorder %s7327_s22, %s7327_s22 }
 0x7c9   :  { %6380 = vmatpush3.bf16.msra.mxu0 %v5306_v5  ;;  %v5308_v3 = vpack.c.bf16 %v5296_v11, %v5295_v32 }
 0x7ca   :  { %v5307_v45 = vpack.c.bf16 %v5294_v44, %v5293_v46  ;;  %p7334_p3 = por %p7333_p2, %p7332_p1 }
 0x7cc   :  { %6381 = vmatprep.subr.bf16.mxu0 %v5307_v45  ;;  %p7335_p4 = pnand %p7334_p3, %p7328_p0 }
 0x7cd   :  { %6374 = vmatmul.mubr.msk.bf16.gmra.mrb[116].mxu1 %vm142_vm0, %v10131_v22  ;;  %6382 = vmatpush3.bf16.msra.mxu0 %v5307_v45 }
 0x7ce   :  { %6383 = vmatprep.subr.bf16.mxu0 %v5308_v3  ;;  %6397 = vmatprep.mubr.msk.bf16.mxu1 %vm2419_vm3, %v10138_v16  ;;  %v10226_v16 = vpop.permute.xlu1 %5314 }
 0x7d1   :  { %6384 = vmatpush3.bf16.msra.mxu0 %v5308_v3 }
 0x7d2   :  { %v10229_v50 = vpop.permute.xlu1 %5322 }
 0x7d4   :  { %6386 = vmatmul.mubr.msk.bf16.vlgmr.msra.gmra.mrb[120].mxu0 %vm2419_vm3, %v10219_v54 }
 0x7d6   :  { %v10233_v0 = vpop.permute.xlu1 %5326 }
 0x898   :  { %v6371_v57 = vpop.f32.mrb[112].mxu1 }
 0x899   :  { %v5267_v39 = vadd.f32 %v6371_v57, %v10174_v36  ;;  %v5258_v13 = vpop.f32.mrb[113].mxu1 }
 0x89a   :  { %v5259_v22 = vadd.f32 %v5258_v13, %v10172_v14  ;;  %v6372_v20 = vpop.f32.mrb[114].mxu1 }
 0x89b   :  { %v5270_v25 = vadd.f32 %v6372_v20, %v10176_v6  ;;  %v5261_v62 = vpop.f32.mrb[115].mxu1  ;;  %v5299_v8 = vmax.f32 %v5267_v39, 0.0 }
 0x89c   :  { %v5262_v53 = vadd.f32 %v5261_v62, %v10170_v26  ;;  %v5297_v24 = vmax.f32 %v5259_v22, 0.0 }
 0x89d   :  { %v5300_v10 = vmax.f32 %v5270_v25, 0.0 }
 0x89e   :  { %v5298_v1 = vmax.f32 %v5262_v53, 0.0 }
 0x89f   :  { %v5310_v7 = vpack.c.bf16 %v5300_v10, %v5299_v8 }
 0x8a0   :  { %v5309_v56 = vpack.c.bf16 %v5298_v1, %v5297_v24  ;;  %v6375_v40 = vpop.f32.mrb[116].mxu1 }
 0x8a1   :  { %v5283_v60 = vadd.f32 %v6375_v40, %v5120_v48  ;;  %v5274_v36 = vpop.f32.mrb[117].mxu1 }
 0x8a2   :  { %v5275_v14 = vadd.f32 %v5274_v36, %v10194_v12  ;;  %v6376_v21 = vpop.f32.mrb[118].mxu1  ;;  %6389 = vmatprep.subr.bf16.mxu1 %v5309_v56 }
 0x8a3   :  { %v5286_v6 = vadd.f32 %v6376_v21, %v5125_v30  ;;  %v5277_v41 = vpop.f32.mrb[119].mxu1  ;;  %6390 = vmatpush3.bf16.msra.mxu1 %v5309_v56  ;;  %v5303_v2 = vmax.f32 %v5283_v60, 0.0 }
 0x8a4   :  { %v5278_v26 = vadd.f32 %v5277_v41, %v10200_v23  ;;  %6391 = vmatprep.subr.bf16.mxu1 %v5310_v7  ;;  %v5301_v43 = vmax.f32 %v5275_v14, 0.0 }
 0x8a5   :  { %v5304_v47 = vmax.f32 %v5286_v6, 0.0 }
 0x8a6   :  { %v5302_v18 = vmax.f32 %v5278_v26, 0.0 }
 0x8a7   :  { %v5312_v42 = vpack.c.bf16 %v5304_v47, %v5303_v2  ;;  %v6387_v27 = vpop.f32.mrb[120].mxu0  ;;  %6392 = vmatpush3.bf16.msra.mxu1 %v5310_v7  ;;  %v10255_v7 = vpop.permute.xlu1 %5544 }
 0x8a8   :  { %v5311_v28 = vpack.c.bf16 %v5302_v18, %v5301_v43  ;;  %v5388_v12 = vadd.f32 %v6387_v27, %v10229_v50  ;;  %v5379_v55 = vpop.f32.mrb[121].mxu0  ;;  %v10259_v18 = vpop.permute.xlu0 %5540 }
 0x8a9   :  { %v5380_v34 = vadd.f32 %v5379_v55, %v10226_v16  ;;  %v6388_v48 = vpop.f32.mrb[122].mxu0 }
 0x8aa   :  { %v5391_v23 = vadd.f32 %v6388_v48, %v10233_v0  ;;  %v5382_v5 = vpop.f32.mrb[123].mxu0  ;;  %6393 = vmatprep.subr.bf16.mxu1 %v5311_v28  ;;  %v5445_v37 = vadd.f32 %v5388_v12, %v10105_v17 }
 0x8ab   :  { %v5443_v51 = vadd.f32 %v5380_v34, %v10099_v31  ;;  %v5383_v30 = vadd.f32 %v5382_v5, %v10236_v19  ;;  %6394 = vmatpush3.bf16.msra.mxu1 %v5311_v28  ;;  %v10257_v41 = vpop.permute.xlu1 %5548 }
 0x8ac   :  { %6395 = vmatprep.subr.bf16.mxu1 %v5312_v42  ;;  %v5446_v52 = vadd.f32 %v5391_v23, %v10108_v61  ;;  %v5481_v4 = vmul.f32 %v5445_v37, %v5445_v37  ;;  %v5454_v17 = vsel %vm2419_vm3, %v5445_v37, 0.0  ;;  %v10263_v27 = vpop.permute.xlu0 %5552 }
 0x8ad   :  { %v5479_v59 = vmul.f32 %v5443_v51, %v5443_v51  ;;  %v5444_v63 = vadd.f32 %v5383_v30, %v10102_v29  ;;  %v5451_v35 = vsel %vm2419_vm3, %v5443_v51, 0.0 }
 0x8ae   :  { %v5482_v46 = vmul.f32 %v5446_v52, %v5446_v52  ;;  %v5490_v29 = vsel %vm2419_vm3, %v5481_v4, 0.0  ;;  %v5456_v61 = vsel %vm2419_vm3, %v5446_v52, 0.0 }
 0x8af   :  { %v5452_v15 = vsel %vm2419_vm3, %v5444_v63, 0.0  ;;  %v5480_v32 = vmul.f32 %v5444_v63, %v5444_v63  ;;  %6396 = vmatpush3.bf16.msra.mxu1 %v5312_v42  ;;  %v5487_v31 = vsel %vm2419_vm3, %v5479_v59, 0.0  ;;  %v10261_v42 = vpop.permute.xlu1 %5564 }
 0x8b0   :  { %v5453_v58 = vadd.f32 %v5452_v15, %v5451_v35  ;;  %v5492_v39 = vsel %vm2419_vm3, %v5482_v46, 0.0  ;;  %v10267_v5 = vpop.permute.xlu0 %5568 }
 0x8b1   :  { %v5488_v11 = vsel %vm2419_vm3, %v5480_v32, 0.0 }
 0x8b2   :  { %v5455_v44 = vadd.f32 %v5454_v17, %v5453_v58  ;;  %v5489_v3 = vadd.f32 %v5488_v11, %v5487_v31  ;;  %6398 = vmatmul.mubr.msk.bf16.vlgmr.msra.gmra.mrb[120].mxu1 %vm2419_vm3, %v10219_v54 }
 0x8b3   :  { %v10265_v28 = vpop.permute.xlu1 %5572 }
 0x8b4   :  { %v5457_v45 = vadd.f32 %v5456_v61, %v5455_v44  ;;  %v5491_v57 = vadd.f32 %v5490_v29, %v5489_v3 }
 0x8b6   :  { %v5458_v13 = vrot.slane %v5457_v45, 4  ;;  %v5493_v22 = vadd.f32 %v5492_v39, %v5491_v57 }
 0x8b8   :  { %v5459_v20 = vadd.f32 %v5458_v13, %v5457_v45  ;;  %v5494_v25 = vrot.slane %v5493_v22, 4 }
 0x8ba   :  { %v5460_v62 = vrot.slane %v5459_v20, 2  ;;  %v5495_v53 = vadd.f32 %v5494_v25, %v5493_v22 }
 0x8bc   :  { %v5461_v8 = vadd.f32 %v5460_v62, %v5459_v20  ;;  %v5496_v10 = vrot.slane %v5495_v53, 2 }
 0x8be   :  { %v5462_v24 = vrot.slane %v5461_v8, 1  ;;  %v5497_v1 = vadd.f32 %v5496_v10, %v5495_v53 }
 0x8c0   :  { %v5463_v54 = vadd.f32 %v5462_v24, %v5461_v8  ;;  %v5498_v56 = vrot.slane %v5497_v1, 1 }
 0x8c2   :  { %v5499_v40 = vadd.f32 %v5498_v56, %v5497_v1  ;;  %v5477_v60 = vmul.f32 0.03125, %v5463_v54 }
 0x8c4   :  { %v5513_v36 = vmul.f32 0.03125, %v5499_v40  ;;  %v5515_v14 = vmul.f32 %v5477_v60, %v5477_v60  ;;  %v5524_v21 = vsub.f32 %v5444_v63, %v5477_v60  ;;  %v5525_v6 = vsub.f32 %v5445_v37, %v5477_v60  ;;  %v10269_v37 = vpop.permute.xlu1 %5576 }
 0x8c5   :  { %v5523_v26 = vsub.f32 %v5443_v51, %v5477_v60  ;;  %v5526_v2 = vsub.f32 %v5446_v52, %v5477_v60 }
 0x8c6   :  { %v5517_v47 = vsub.f32 %v5513_v36, %v5515_v14 }
 0x8c8   :  { %v5519_v43 = vadd.f32 1e-05, %v5517_v47 }
 0x8ca   :  { %7318 = vrsqrt.f32 %v5519_v43 }
 0x8d4   :  { %v7319_v12 = vpop.eup %7318 }
 0x8d5   :  { %v5532_v55 = vmul.f32 %v7319_v12, %v5524_v21  ;;  %v5533_v34 = vmul.f32 %v7319_v12, %v5525_v6  ;;  %v5531_v48 = vmul.f32 %v7319_v12, %v5523_v26  ;;  %v5534_v23 = vmul.f32 %v7319_v12, %v5526_v2 }
 0x8d7   :  { %v5556_v51 = vmul.f32 %v10255_v7, %v5532_v55  ;;  %v5557_v30 = vmul.f32 %v10257_v41, %v5533_v34  ;;  %v5555_v59 = vmul.f32 %v10259_v18, %v5531_v48  ;;  %v5558_v52 = vmul.f32 %v10263_v27, %v5534_v23 }
 0x8d9   :  { %v5579_v63 = vadd.f32 %v10261_v42, %v5555_v59  ;;  %v5581_v4 = vadd.f32 %v10265_v28, %v5557_v30  ;;  %v5580_v35 = vadd.f32 %v10267_v5, %v5556_v51  ;;  %v5582_v15 = vadd.f32 %v10269_v37, %v5558_v52 }
 0x8db   :  { %5587 = vst.msk [vmem:[#allocation2] sm:$0xff] %vm2419_vm3, %v5579_v63  ;;  %5589 = vst.msk [vmem:[#allocation2 + $0x10] sm:$0xff] %vm2419_vm3, %v5581_v4 }
 0x8dc   :  { %5588 = vst.msk [vmem:[#allocation2 + $0x8] sm:$0xff] %vm2419_vm3, %v5580_v35  ;;  %5590 = vst.msk [vmem:[#allocation2 + $0x18] sm:$0xff] %vm2419_vm3, %v5582_v15 }
 0x985   :  { %v6399_v32 = vpop.f32.mrb[120].mxu1 }
 0x986   :  { %v5437_v58 = vadd.f32 %v6399_v32, %v10229_v50  ;;  %v5428_v17 = vpop.f32.mrb[121].mxu1 }
 0x987   :  { %v5429_v31 = vadd.f32 %v5428_v17, %v10226_v16  ;;  %v6400_v46 = vpop.f32.mrb[122].mxu1 }
 0x988   :  { %v5440_v11 = vadd.f32 %v6400_v46, %v10233_v0  ;;  %v5431_v44 = vpop.f32.mrb[123].mxu1  ;;  %v5449_v3 = vadd.f32 %v5437_v58, %v10189_v33 }
 0x989   :  { %v5447_v29 = vadd.f32 %v5429_v31, %v10183_v38  ;;  %v5432_v61 = vadd.f32 %v5431_v44, %v10236_v19 }
 0x98a   :  { %v5450_v57 = vadd.f32 %v5440_v11, %v10192_v49  ;;  %v5485_v13 = vmul.f32 %v5449_v3, %v5449_v3  ;;  %v5467_v0 = vsel %vm2419_vm3, %v5449_v3, 0.0 }
 0x98b   :  { %v5483_v45 = vmul.f32 %v5447_v29, %v5447_v29  ;;  %v5448_v39 = vadd.f32 %v5432_v61, %v10186_v9  ;;  %v5464_v50 = vsel %vm2419_vm3, %v5447_v29, 0.0 }
 0x98c   :  { %v5486_v25 = vmul.f32 %v5450_v57, %v5450_v57  ;;  %v5503_v49 = vsel %vm2419_vm3, %v5485_v13, 0.0  ;;  %v5469_v9 = vsel %vm2419_vm3, %v5450_v57, 0.0 }
 0x98d   :  { %v5465_v16 = vsel %vm2419_vm3, %v5448_v39, 0.0  ;;  %v5484_v22 = vmul.f32 %v5448_v39, %v5448_v39  ;;  %v5500_v33 = vsel %vm2419_vm3, %v5483_v45, 0.0 }
 0x98e   :  { %v5466_v20 = vadd.f32 %v5465_v16, %v5464_v50  ;;  %v5505_v10 = vsel %vm2419_vm3, %v5486_v25, 0.0 }
 0x98f   :  { %v5501_v38 = vsel %vm2419_vm3, %v5484_v22, 0.0 }
 0x990   :  { %v5468_v19 = vadd.f32 %v5467_v0, %v5466_v20  ;;  %v5502_v62 = vadd.f32 %v5501_v38, %v5500_v33 }
 0x992   :  { %v5470_v53 = vadd.f32 %v5469_v9, %v5468_v19  ;;  %v5504_v8 = vadd.f32 %v5503_v49, %v5502_v62 }
 0x994   :  { %v5471_v24 = vrot.slane %v5470_v53, 4  ;;  %v5506_v1 = vadd.f32 %v5505_v10, %v5504_v8 }
 0x996   :  { %v5472_v54 = vadd.f32 %v5471_v24, %v5470_v53  ;;  %v5507_v56 = vrot.slane %v5506_v1, 4 }
 0x998   :  { %v5473_v40 = vrot.slane %v5472_v54, 2  ;;  %v5508_v60 = vadd.f32 %v5507_v56, %v5506_v1 }
 0x99a   :  { %v5474_v36 = vadd.f32 %v5473_v40, %v5472_v54  ;;  %v5509_v14 = vrot.slane %v5508_v60, 2 }
 0x99c   :  { %v5475_v21 = vrot.slane %v5474_v36, 1  ;;  %v5510_v6 = vadd.f32 %v5509_v14, %v5508_v60 }
 0x99e   :  { %v5476_v26 = vadd.f32 %v5475_v21, %v5474_v36  ;;  %v5511_v2 = vrot.slane %v5510_v6, 1 }
 0x9a0   :  { %v5478_v47 = vmul.f32 0.03125, %v5476_v26  ;;  %v5512_v43 = vadd.f32 %v5511_v2, %v5510_v6 }
 0x9a2   :  { %v5514_v12 = vmul.f32 0.03125, %v5512_v43  ;;  %v5516_v55 = vmul.f32 %v5478_v47, %v5478_v47  ;;  %v5527_v34 = vsub.f32 %v5447_v29, %v5478_v47  ;;  %v5528_v48 = vsub.f32 %v5448_v39, %v5478_v47 }
 0x9a3   :  { %v5529_v23 = vsub.f32 %v5449_v3, %v5478_v47  ;;  %v5530_v51 = vsub.f32 %v5450_v57, %v5478_v47 }
 0x9a4   :  { %v5518_v30 = vsub.f32 %v5514_v12, %v5516_v55 }
 0x9a6   :  { %v5520_v59 = vadd.f32 1e-05, %v5518_v30 }
 0x9a8   :  { %7320 = vrsqrt.f32 %v5520_v59 }
 0x9b2   :  { %v7321_v52 = vpop.eup %7320 }
 0x9b3   :  { %v5535_v63 = vmul.f32 %v7321_v52, %v5527_v34  ;;  %v5536_v4 = vmul.f32 %v7321_v52, %v5528_v48  ;;  %v5537_v35 = vmul.f32 %v7321_v52, %v5529_v23  ;;  %v5538_v15 = vmul.f32 %v7321_v52, %v5530_v51 }
 0x9b5   :  { %v5559_v32 = vmul.f32 %v10259_v18, %v5535_v63  ;;  %v5560_v58 = vmul.f32 %v10255_v7, %v5536_v4  ;;  %v5561_v17 = vmul.f32 %v10257_v41, %v5537_v35  ;;  %v5562_v31 = vmul.f32 %v10263_v27, %v5538_v15 }
 0x9b7   :  { %v5583_v46 = vadd.f32 %v10261_v42, %v5559_v32  ;;  %v5584_v11 = vadd.f32 %v10267_v5, %v5560_v58  ;;  %v5585_v44 = vadd.f32 %v10265_v28, %v5561_v17  ;;  %v5586_v3 = vadd.f32 %v10269_v37, %v5562_v31 }
 0x9b9   :  { %5592 = vst.msk [vmem:[#allocation2 + $0x28] sm:$0xff] %vm2419_vm3, %v5584_v11  ;;  %5591 = vst.msk [vmem:[#allocation2 + $0x20] sm:$0xff] %vm2419_vm3, %v5583_v46 }
 0x9ba   :  { %5593 = vst.msk [vmem:[#allocation2 + $0x30] sm:$0xff] %vm2419_vm3, %v5585_v44  ;;  %5594 = vst.msk [vmem:[#allocation2 + $0x38] sm:$0xff] %vm2419_vm3, %v5586_v3 }
 0x9bb   :  { %7338 = shalt.err (!%p7335_p4)
}
 0x9bc   :  { %s7339_s2 = scalar_lea.hbm %s10330_s7, 1024 }
 0x9bd   :  { %p7340_p5 = scmp.ne.s32.totalorder %s10330_s7, %s7339_s2  ;;  %p7343_p6 = scmp.lt.u32.totalorder %s7339_s2, %s10330_s7 }
 0x9bf   :  { %p7345_p7 = pnand %p7343_p6, %p7340_p5 }
 0x9c1   :  { %7348 = shalt.err (!%p7345_p7)
}
 0x9c2   :  { %s7363_s28 = smov 128   ;;  %s7364_s29 = smov 8  }
 0x9c3   :  { %5606 = dma.vmem_to_hbm [thread:$0]  %s5601_s1, 1024, %s10330_s7, [#allocation3], %s7363_s28, %s7363_s28, %s7364_s29  }
 0x9c4   :  { %7349 = dma.done.wait [#allocation3], 1024  }
 0x9c5   :  { %7350 = vsyncadd [#allocation3], 4294966272 }
 0x9c6   :  { %5610 = vsyncpa [#allocation3], 1 }

</bundles_post_ra>
